<compile_context>
chip_gen: v7x
topology: tpu7x:2x2x1
jax: 0.10.0
libtpu: 0.0.40
codegen_flags: <defaults>
</compile_context>

<pallas_src>
import jax
import jax.numpy as jnp
from jax import lax
from jax.experimental import pallas as pl
from jax.experimental.pallas import tpu as pltpu


def _dwconv_kernel(x_ref, w_ref, b_ref, o_ref, pad_ref):
    """Depthwise 3x3 conv (stride 1, pad 1, bias) on an NHWC block.

    x_ref:   (Nb, H, W, C)
    w_ref:   (3, 3, C)        per-channel taps
    b_ref:   (1, C)
    o_ref:   (Nb, H, W, C)
    pad_ref: (Nb, H+2, W+2, C) VMEM scratch with a 1-pixel halo
    """
    Nb, H, W, C = x_ref.shape

    # Zero only the thin halo border (cheap) -- the interior is fully
    # overwritten right below, so the padded buffer never needs a full zero.
    zrow = jnp.zeros((Nb, 1, W + 2, C), jnp.float32)
    zcol = jnp.zeros((Nb, H, 1, C), jnp.float32)
    pad_ref[:, 0:1, :, :] = zrow
    pad_ref[:, H + 1:H + 2, :, :] = zrow
    pad_ref[:, 1:H + 1, 0:1, :] = zcol
    pad_ref[:, 1:H + 1, W + 1:W + 2, :] = zcol

    # Interior <- input block.
    pad_ref[:, 1:H + 1, 1:W + 1, :] = x_ref[...].astype(jnp.float32)

    w = w_ref[...].astype(jnp.float32)      # (3, 3, C)
    b = b_ref[...].astype(jnp.float32)      # (1, C)

    # Load the three H-shifted views once (slices along H don't touch the last
    # two dims -> tile-aligned, no relayout).
    row0 = pad_ref[:, 0:H, :, :]            # (Nb, H, W+2, C)
    row1 = pad_ref[:, 1:H + 1, :, :]
    row2 = pad_ref[:, 2:H + 2, :, :]

    # Fold the kernel-row taps on the full padded width, then apply the three
    # W shifts (sublane-unaligned slices) only on the folded result:
    # 3 relayout-ing slices instead of 9.
    acc = jnp.zeros((Nb, H, W, C), jnp.float32)
    for kj in range(3):
        t = row0 * w[0, kj] + row1 * w[1, kj] + row2 * w[2, kj]   # (Nb,H,W+2,C)
        acc = acc + t[:, :, kj:kj + W, :]

    o_ref[...] = (acc + b.reshape(1, 1, 1, C)).astype(o_ref.dtype)


def _pick_block_n(n, bytes_per_batch, budget_bytes=2 << 20):
    """Largest divisor of n whose x-block fits a small VMEM budget."""
    cap = max(1, budget_bytes // max(1, bytes_per_batch))
    for d in range(min(n, cap), 0, -1):
        if n % d == 0:
            return d
    return 1


def dwconv(x_nchw, weight_oihw, bias):
    """Matches nn.Conv2d(C, C, 3, 1, 1, bias=True, groups=C).forward.

    x_nchw:      (N, C, H, W) float32
    weight_oihw: (C, 1, 3, 3) float32 (PyTorch depthwise layout)
    bias:        (C,)         float32
    returns      (N, C, H, W) float32
    """
    N, C, H, W = x_nchw.shape
    assert weight_oihw.shape == (C, 1, 3, 3)
    assert bias.shape == (C,)

    # NCHW -> NHWC (channels on the lane axis).
    x_nhwc = jnp.transpose(x_nchw, (0, 2, 3, 1)).astype(jnp.float32)
    w_kkc = jnp.transpose(weight_oihw[:, 0], (1, 2, 0)).astype(jnp.float32)  # (3,3,C)
    b_1c = bias.reshape(1, C).astype(jnp.float32)

    # Lane-dense channels: zero-pad C up to a multiple of 128.  Padded channels
    # have zero weights/bias, so their outputs are zero and get sliced off.
    Cp = ((C + 127) // 128) * 128
    if Cp != C:
        x_nhwc = jnp.pad(x_nhwc, ((0, 0), (0, 0), (0, 0), (0, Cp - C)))
        w_kkc = jnp.pad(w_kkc, ((0, 0), (0, 0), (0, Cp - C)))
        b_1c = jnp.pad(b_1c, ((0, 0), (0, Cp - C)))

    # Fold several batch elements into each grid step to amortize per-step cost.
    bytes_per_batch = H * W * Cp * 4
    blk_n = _pick_block_n(N, bytes_per_batch, budget_bytes=2 << 20)
    grid = (N // blk_n,)

    # Rough per-step VMEM residency: double-buffered in/out, halo scratch and
    # kernel temporaries (3 row views + folded partial + accumulator).
    blk_bytes = blk_n * bytes_per_batch
    pad_bytes = blk_n * (H + 2) * (W + 2) * Cp * 4
    est_vmem = 4 * blk_bytes + pad_bytes + 6 * blk_bytes + 10 * Cp * 4 + (1 << 20)
    cp_kwargs = dict(dimension_semantics=("parallel",))
    if est_vmem > 24 * 1024 * 1024:
        # v7x has only 64 MiB VMEM (32 MiB default scoped limit).
        cp_kwargs["vmem_limit_bytes"] = min(int(est_vmem * 1.25),
                                            100 * 1024 * 1024)

    out_nhwc = pl.pallas_call(
        _dwconv_kernel,
        out_shape=jax.ShapeDtypeStruct((N, H, W, Cp), jnp.float32),
        grid=grid,
        in_specs=[
            pl.BlockSpec((blk_n, H, W, Cp), lambda n: (n, 0, 0, 0)),
            pl.BlockSpec((3, 3, Cp), lambda n: (0, 0, 0)),
            pl.BlockSpec((1, Cp), lambda n: (0, 0)),
        ],
        out_specs=pl.BlockSpec((blk_n, H, W, Cp), lambda n: (n, 0, 0, 0)),
        scratch_shapes=[
            pltpu.VMEM((blk_n, H + 2, W + 2, Cp), jnp.float32),
        ],
        compiler_params=pltpu.CompilerParams(**cp_kwargs),
    )(x_nhwc, w_kkc, b_1c)

    if Cp != C:
        out_nhwc = out_nhwc[..., :C]
    return jnp.transpose(out_nhwc, (0, 3, 1, 2))


# ---------------------------------------------------------------------------
# Pure-JAX reference (NCHW), mirrors the PyTorch module.
# ---------------------------------------------------------------------------
def dwconv_ref(x_nchw, weight_oihw, bias):
    C = x_nchw.shape[1]
    y = lax.conv_general_dilated(
        x_nchw, weight_oihw, (1, 1), [(1, 1), (1, 1)],
        dimension_numbers=("NCHW", "OIHW", "NCHW"),
        feature_group_count=C)
    return y + bias.reshape(1, -1, 1, 1)


if __name__ == "__main__":
    # Small but lane-dense shapes (C = 128 -> exactly one lane tile).
    N, C, H, W = 2, 128, 16, 16

    key = jax.random.PRNGKey(0)
    k1, k2, k3 = jax.random.split(key, 3)
    x = jax.random.normal(k1, (N, C, H, W), jnp.float32)
    weight = jax.random.normal(k2, (C, 1, 3, 3), jnp.float32) * 0.2
    bias = jax.random.normal(k3, (C,), jnp.float32) * 0.1

    out = dwconv(x, weight, bias)
    jax.block_until_ready(out)

    ref = dwconv_ref(x, weight, bias)
    jax.block_until_ready(ref)

    assert out.shape == (N, C, H, W)
    if not jnp.allclose(out, ref, atol=1e-4, rtol=1e-4):
        max_err = float(jnp.max(jnp.abs(out - ref)))
        raise AssertionError(f"Pallas kernel mismatch vs reference, max_err={max_err}")

    print("KERNEL_OK")
</pallas_src>

<mosaic_0001>
module attributes {stable_mosaic.version = 11 : i64} {
  func.func @_dwconv_kernel(%arg0: i32, %arg1: memref<2x16x16x128xf32, #tpu.memory_space<vmem>>, %arg2: memref<3x3x128xf32, #tpu.memory_space<vmem>>, %arg3: memref<1x128xf32, #tpu.memory_space<vmem>>, %arg4: memref<2x16x16x128xf32, #tpu.memory_space<vmem>>, %arg5: memref<2x18x18x128xf32, #tpu.memory_space<vmem>>) attributes {dimension_semantics = [#tpu.dimension_semantics<parallel>], iteration_bounds = array<i64: 1>, scalar_prefetch = 0 : i64, scratch_operands = 1 : i64, tpu.core_type = #tpu.core_type<tc>, window_params = [{transform_indices = @transform_0, window_bounds = array<i64: 2, 16, 16, 128>}, {pipeline_mode = #tpu.pipeline_mode<synchronous>, transform_indices = @transform_1, window_bounds = array<i64: 3, 3, 128>}, {pipeline_mode = #tpu.pipeline_mode<synchronous>, transform_indices = @transform_2, window_bounds = array<i64: 1, 128>}, {transform_indices = @transform_3, window_bounds = array<i64: 2, 16, 16, 128>}]} {
    %cst = arith.constant 0.000000e+00 : f32
    %0 = vector.broadcast %cst : f32 to vector<2x1x18x128xf32>
    %cst_0 = arith.constant 0.000000e+00 : f32
    %1 = vector.broadcast %cst_0 : f32 to vector<2x16x1x128xf32>
    %c0 = arith.constant 0 : index
    %c0_1 = arith.constant 0 : index
    %c0_2 = arith.constant 0 : index
    %c0_3 = arith.constant 0 : index
    %2 = vector.load %arg5[%c0, %c0_1, %c0_2, %c0_3] : memref<2x18x18x128xf32, #tpu.memory_space<vmem>>, vector<2x1x18x128xf32>
    tpu.vector_store %arg5[%c0, %c0_1, %c0_2, %c0_3], %0 {strides = array<i32>} : memref<2x18x18x128xf32, #tpu.memory_space<vmem>>, vector<2x1x18x128xf32>,
    %c0_4 = arith.constant 0 : index
    %c17 = arith.constant 17 : index
    %c0_5 = arith.constant 0 : index
    %c0_6 = arith.constant 0 : index
    %3 = vector.load %arg5[%c0_4, %c17, %c0_5, %c0_6] : memref<2x18x18x128xf32, #tpu.memory_space<vmem>>, vector<2x1x18x128xf32>
    tpu.vector_store %arg5[%c0_4, %c17, %c0_5, %c0_6], %0 {strides = array<i32>} : memref<2x18x18x128xf32, #tpu.memory_space<vmem>>, vector<2x1x18x128xf32>,
    %c0_7 = arith.constant 0 : index
    %c1 = arith.constant 1 : index
    %c0_8 = arith.constant 0 : index
    %c0_9 = arith.constant 0 : index
    %4 = vector.load %arg5[%c0_7, %c1, %c0_8, %c0_9] : memref<2x18x18x128xf32, #tpu.memory_space<vmem>>, vector<2x16x1x128xf32>
    tpu.vector_store %arg5[%c0_7, %c1, %c0_8, %c0_9], %1 {strides = array<i32>} : memref<2x18x18x128xf32, #tpu.memory_space<vmem>>, vector<2x16x1x128xf32>,
    %c0_10 = arith.constant 0 : index
    %c1_11 = arith.constant 1 : index
    %c17_12 = arith.constant 17 : index
    %c0_13 = arith.constant 0 : index
    %5 = vector.load %arg5[%c0_10, %c1_11, %c17_12, %c0_13] : memref<2x18x18x128xf32, #tpu.memory_space<vmem>>, vector<2x16x1x128xf32>
    tpu.vector_store %arg5[%c0_10, %c1_11, %c17_12, %c0_13], %1 {strides = array<i32>} : memref<2x18x18x128xf32, #tpu.memory_space<vmem>>, vector<2x16x1x128xf32>,
    %c0_14 = arith.constant 0 : index
    %c0_15 = arith.constant 0 : index
    %c0_16 = arith.constant 0 : index
    %c0_17 = arith.constant 0 : index
    %6 = vector.load %arg1[%c0_14, %c0_15, %c0_16, %c0_17] : memref<2x16x16x128xf32, #tpu.memory_space<vmem>>, vector<2x16x16x128xf32>
    %c0_18 = arith.constant 0 : index
    %c1_19 = arith.constant 1 : index
    %c1_20 = arith.constant 1 : index
    %c0_21 = arith.constant 0 : index
    %7 = vector.load %arg5[%c0_18, %c1_19, %c1_20, %c0_21] : memref<2x18x18x128xf32, #tpu.memory_space<vmem>>, vector<2x16x16x128xf32>
    tpu.vector_store %arg5[%c0_18, %c1_19, %c1_20, %c0_21], %6 {strides = array<i32>} : memref<2x18x18x128xf32, #tpu.memory_space<vmem>>, vector<2x16x16x128xf32>,
    %c0_22 = arith.constant 0 : index
    %c0_23 = arith.constant 0 : index
    %c0_24 = arith.constant 0 : index
    %8 = vector.load %arg2[%c0_22, %c0_23, %c0_24] : memref<3x3x128xf32, #tpu.memory_space<vmem>>, vector<3x3x128xf32>
    %c0_25 = arith.constant 0 : index
    %c0_26 = arith.constant 0 : index
    %9 = vector.load %arg3[%c0_25, %c0_26] : memref<1x128xf32, #tpu.memory_space<vmem>>, vector<1x128xf32>
    %c0_27 = arith.constant 0 : index
    %c0_28 = arith.constant 0 : index
    %c0_29 = arith.constant 0 : index
    %c0_30 = arith.constant 0 : index
    %10 = vector.load %arg5[%c0_27, %c0_28, %c0_29, %c0_30] : memref<2x18x18x128xf32, #tpu.memory_space<vmem>>, vector<2x16x18x128xf32>
    %c0_31 = arith.constant 0 : index
    %c1_32 = arith.constant 1 : index
    %c0_33 = arith.constant 0 : index
    %c0_34 = arith.constant 0 : index
    %11 = vector.load %arg5[%c0_31, %c1_32, %c0_33, %c0_34] : memref<2x18x18x128xf32, #tpu.memory_space<vmem>>, vector<2x16x18x128xf32>
    %c0_35 = arith.constant 0 : index
    %c2 = arith.constant 2 : index
    %c0_36 = arith.constant 0 : index
    %c0_37 = arith.constant 0 : index
    %12 = vector.load %arg5[%c0_35, %c2, %c0_36, %c0_37] : memref<2x18x18x128xf32, #tpu.memory_space<vmem>>, vector<2x16x18x128xf32>
    %cst_38 = arith.constant 0.000000e+00 : f32
    %13 = vector.broadcast %cst_38 : f32 to vector<2x16x16x128xf32>
    %14 = vector.extract_strided_slice %8 {offsets = [0, 0, 0], sizes = [1, 1, 128], strides = [1, 1, 1]} : vector<3x3x128xf32> to vector<1x1x128xf32>
    %15 = vector.shape_cast %14 : vector<1x1x128xf32> to vector<128xf32>
    %16 = vector.shape_cast %15 : vector<128xf32> to vector<1x1x1x128xf32>
    %17 = vector.broadcast %16 : vector<1x1x1x128xf32> to vector<2x16x18x128xf32>
    %18 = arith.mulf %10, %17 : vector<2x16x18x128xf32>
    %19 = vector.extract_strided_slice %8 {offsets = [1, 0, 0], sizes = [1, 1, 128], strides = [1, 1, 1]} : vector<3x3x128xf32> to vector<1x1x128xf32>
    %20 = vector.shape_cast %19 : vector<1x1x128xf32> to vector<128xf32>
    %21 = vector.shape_cast %20 : vector<128xf32> to vector<1x1x1x128xf32>
    %22 = vector.broadcast %21 : vector<1x1x1x128xf32> to vector<2x16x18x128xf32>
    %23 = arith.mulf %11, %22 : vector<2x16x18x128xf32>
    %24 = arith.addf %18, %23 : vector<2x16x18x128xf32>
    %25 = vector.extract_strided_slice %8 {offsets = [2, 0, 0], sizes = [1, 1, 128], strides = [1, 1, 1]} : vector<3x3x128xf32> to vector<1x1x128xf32>
    %26 = vector.shape_cast %25 : vector<1x1x128xf32> to vector<128xf32>
    %27 = vector.shape_cast %26 : vector<128xf32> to vector<1x1x1x128xf32>
    %28 = vector.broadcast %27 : vector<1x1x1x128xf32> to vector<2x16x18x128xf32>
    %29 = arith.mulf %12, %28 : vector<2x16x18x128xf32>
    %30 = arith.addf %24, %29 : vector<2x16x18x128xf32>
    %31 = vector.extract_strided_slice %30 {offsets = [0, 0, 0, 0], sizes = [2, 16, 16, 128], strides = [1, 1, 1, 1]} : vector<2x16x18x128xf32> to vector<2x16x16x128xf32>
    %32 = arith.addf %13, %31 : vector<2x16x16x128xf32>
    %33 = vector.extract_strided_slice %8 {offsets = [0, 1, 0], sizes = [1, 1, 128], strides = [1, 1, 1]} : vector<3x3x128xf32> to vector<1x1x128xf32>
    %34 = vector.shape_cast %33 : vector<1x1x128xf32> to vector<128xf32>
    %35 = vector.shape_cast %34 : vector<128xf32> to vector<1x1x1x128xf32>
    %36 = vector.broadcast %35 : vector<1x1x1x128xf32> to vector<2x16x18x128xf32>
    %37 = arith.mulf %10, %36 : vector<2x16x18x128xf32>
    %38 = vector.extract_strided_slice %8 {offsets = [1, 1, 0], sizes = [1, 1, 128], strides = [1, 1, 1]} : vector<3x3x128xf32> to vector<1x1x128xf32>
    %39 = vector.shape_cast %38 : vector<1x1x128xf32> to vector<128xf32>
    %40 = vector.shape_cast %39 : vector<128xf32> to vector<1x1x1x128xf32>
    %41 = vector.broadcast %40 : vector<1x1x1x128xf32> to vector<2x16x18x128xf32>
    %42 = arith.mulf %11, %41 : vector<2x16x18x128xf32>
    %43 = arith.addf %37, %42 : vector<2x16x18x128xf32>
    %44 = vector.extract_strided_slice %8 {offsets = [2, 1, 0], sizes = [1, 1, 128], strides = [1, 1, 1]} : vector<3x3x128xf32> to vector<1x1x128xf32>
    %45 = vector.shape_cast %44 : vector<1x1x128xf32> to vector<128xf32>
    %46 = vector.shape_cast %45 : vector<128xf32> to vector<1x1x1x128xf32>
    %47 = vector.broadcast %46 : vector<1x1x1x128xf32> to vector<2x16x18x128xf32>
    %48 = arith.mulf %12, %47 : vector<2x16x18x128xf32>
    %49 = arith.addf %43, %48 : vector<2x16x18x128xf32>
    %50 = vector.extract_strided_slice %49 {offsets = [0, 0, 1, 0], sizes = [2, 16, 16, 128], strides = [1, 1, 1, 1]} : vector<2x16x18x128xf32> to vector<2x16x16x128xf32>
    %51 = arith.addf %32, %50 : vector<2x16x16x128xf32>
    %52 = vector.extract_strided_slice %8 {offsets = [0, 2, 0], sizes = [1, 1, 128], strides = [1, 1, 1]} : vector<3x3x128xf32> to vector<1x1x128xf32>
    %53 = vector.shape_cast %52 : vector<1x1x128xf32> to vector<128xf32>
    %54 = vector.shape_cast %53 : vector<128xf32> to vector<1x1x1x128xf32>
    %55 = vector.broadcast %54 : vector<1x1x1x128xf32> to vector<2x16x18x128xf32>
    %56 = arith.mulf %10, %55 : vector<2x16x18x128xf32>
    %57 = vector.extract_strided_slice %8 {offsets = [1, 2, 0], sizes = [1, 1, 128], strides = [1, 1, 1]} : vector<3x3x128xf32> to vector<1x1x128xf32>
    %58 = vector.shape_cast %57 : vector<1x1x128xf32> to vector<128xf32>
    %59 = vector.shape_cast %58 : vector<128xf32> to vector<1x1x1x128xf32>
    %60 = vector.broadcast %59 : vector<1x1x1x128xf32> to vector<2x16x18x128xf32>
    %61 = arith.mulf %11, %60 : vector<2x16x18x128xf32>
    %62 = arith.addf %56, %61 : vector<2x16x18x128xf32>
    %63 = vector.extract_strided_slice %8 {offsets = [2, 2, 0], sizes = [1, 1, 128], strides = [1, 1, 1]} : vector<3x3x128xf32> to vector<1x1x128xf32>
    %64 = vector.shape_cast %63 : vector<1x1x128xf32> to vector<128xf32>
    %65 = vector.shape_cast %64 : vector<128xf32> to vector<1x1x1x128xf32>
    %66 = vector.broadcast %65 : vector<1x1x1x128xf32> to vector<2x16x18x128xf32>
    %67 = arith.mulf %12, %66 : vector<2x16x18x128xf32>
    %68 = arith.addf %62, %67 : vector<2x16x18x128xf32>
    %69 = vector.extract_strided_slice %68 {offsets = [0, 0, 2, 0], sizes = [2, 16, 16, 128], strides = [1, 1, 1, 1]} : vector<2x16x18x128xf32> to vector<2x16x16x128xf32>
    %70 = arith.addf %51, %69 : vector<2x16x16x128xf32>
    %71 = vector.shape_cast %9 : vector<1x128xf32> to vector<1x1x1x128xf32>
    %72 = vector.broadcast %71 : vector<1x1x1x128xf32> to vector<2x16x16x128xf32>
    %73 = arith.addf %70, %72 : vector<2x16x16x128xf32>
    %c0_39 = arith.constant 0 : index
    %c0_40 = arith.constant 0 : index
    %c0_41 = arith.constant 0 : index
    %c0_42 = arith.constant 0 : index
    %74 = vector.load %arg4[%c0_39, %c0_40, %c0_41, %c0_42] : memref<2x16x16x128xf32, #tpu.memory_space<vmem>>, vector<2x16x16x128xf32>
    tpu.vector_store %arg4[%c0_39, %c0_40, %c0_41, %c0_42], %73 {strides = array<i32>} : memref<2x16x16x128xf32, #tpu.memory_space<vmem>>, vector<2x16x16x128xf32>,
    return
  }
  func.func @transform_0(%arg0: i32) -> (i32, i32, i32, i32) {
    %c0_i32 = arith.constant 0 : i32
    %c0_i32_0 = arith.constant 0 : i32
    %c0_i32_1 = arith.constant 0 : i32
    %c0_i32_2 = arith.constant 0 : i32
    return %arg0, %c0_i32, %c0_i32_0, %c0_i32_1 : i32, i32, i32, i32
  }
  func.func @transform_1(%arg0: i32) -> (i32, i32, i32) {
    %c0_i32 = arith.constant 0 : i32
    %c0_i32_0 = arith.constant 0 : i32
    %c0_i32_1 = arith.constant 0 : i32
    %c0_i32_2 = arith.constant 0 : i32
    return %c0_i32, %c0_i32_0, %c0_i32_1 : i32, i32, i32
  }
  func.func @transform_2(%arg0: i32) -> (i32, i32) {
    %c0_i32 = arith.constant 0 : i32
    %c0_i32_0 = arith.constant 0 : i32
    %c0_i32_1 = arith.constant 0 : i32
    return %c0_i32, %c0_i32_0 : i32, i32
  }
  func.func @transform_3(%arg0: i32) -> (i32, i32, i32, i32) {
    %c0_i32 = arith.constant 0 : i32
    %c0_i32_0 = arith.constant 0 : i32
    %c0_i32_1 = arith.constant 0 : i32
    %c0_i32_2 = arith.constant 0 : i32
    return %arg0, %c0_i32, %c0_i32_0, %c0_i32_1 : i32, i32, i32, i32
  }
}

</mosaic_0001>

<bundles_post_ra>
// kernel: tpu_custom_call.1
= control target key start
LH: loop header
LB: loop body
LE: loop exit
PB: predicated region body
PF: predicated region fallthrough
CT: control target
= control target key end

     0   :  { %8 = vsyncpa [#allocation4], 0  ;;  %s4743_s0 = inlined_call_operand.hbm [shape: f32[2,16,16,128], index: 0, kind: input, shape index: {}]   ;;  %s4744_s1 = inlined_call_operand.hbm [shape: f32[3,3,128], index: 1, kind: input, shape index: {}]   ;;  %s4745_s2 = inlined_call_operand.vmem [shape: f32[1,128], index: 2, kind: input, shape index: {}]   ;;  %s4746_s3 = inlined_call_operand.hbm [shape: f32[2,16,16,128], index: 3, kind: output, shape index: {}]  }
   0x1   :  { %9 = vsyncpa [#allocation7], 0 }
   0x2   :  { %10 = vsyncpa [#allocation5], 0  ;;  %s2930_s12 = smov [#allocation3]   ;;  %s2858_s16 = scalar_lea.hbm %s4743_s0, 8192 }
   0x3   :  { %s16_s13 = sshll.u32 %s2930_s12, 4  ;;  %p2859_p0 = scmp.ne.s32.totalorder %s4743_s0, %s2858_s16  ;;  %s17_s13 = int_to_ptr.vmem [resolvable:$true] %s16_s13 }
   0x4   :  { %p2862_p1 = scmp.lt.u32.totalorder %s2858_s16, %s4743_s0 }
   0x6   :  { %p2864_p2 = pnand %p2862_p1, %p2859_p0 }
   0x8   :  { %2867 = shalt.err (!%p2864_p2)
}
   0x9   :  { %s2868_s21 = scalar_lea.vmem %s17_s13, 8192  ;;  %p2873_p4 = scmp.lt.s32.totalorder %s17_s13, %s17_s13 }
   0xa   :  { %p2869_p3 = scmp.ne.s32.totalorder %s17_s13, %s2868_s21  ;;  %p2874_p5 = scmp.lt.s32.totalorder %s2868_s21, %s2868_s21 }
   0xc   :  { %p2875_p6 = por %p2874_p5, %p2873_p4 }
   0xe   :  { %p2876_p7 = pnand %p2875_p6, %p2869_p3 }
  0x10   :  { %2879 = shalt.err (!%p2876_p7)
}
  0x11   :  { %s2931_s22 = smov 128   ;;  %s2932_s23 = smov 8  }
  0x12   :  { %22 = dma.hbm_to_vmem [thread:$0]  %s4743_s0, 8192, %s17_s13, [#allocation4], %s2931_s22, %s2931_s22, %s2932_s23  }
  0x13   :  { %s2933_s26 = smov [#allocation6]   ;;  %s2880_s30 = scalar_lea.hbm %s4744_s1, 192 }
  0x14   :  { %s28_s27 = sshll.u32 %s2933_s26, 4  ;;  %p2881_p8 = scmp.ne.s32.totalorder %s4744_s1, %s2880_s30  ;;  %s29_s27 = int_to_ptr.vmem [resolvable:$true] %s28_s27 }
  0x15   :  { %p2884_p9 = scmp.lt.u32.totalorder %s2880_s30, %s4744_s1 }
  0x17   :  { %p2886_p10 = pnand %p2884_p9, %p2881_p8 }
  0x19   :  { %2889 = shalt.err (!%p2886_p10)
}
  0x1a   :  { %s2890_s8 = scalar_lea.vmem %s29_s27, 192  ;;  %p2895_p12 = scmp.lt.s32.totalorder %s29_s27, %s29_s27 }
  0x1b   :  { %p2891_p11 = scmp.ne.s32.totalorder %s29_s27, %s2890_s8  ;;  %p2896_p13 = scmp.lt.s32.totalorder %s2890_s8, %s2890_s8 }
  0x1d   :  { %p2897_p0 = por %p2896_p13, %p2895_p12 }
  0x1f   :  { %p2898_p1 = pnand %p2897_p0, %p2891_p11 }
  0x21   :  { %2901 = shalt.err (!%p2898_p1)
}
  0x22   :  { %s2934_s0 = smov 64   ;;  %s2935_s9 = smov 4  }
  0x23   :  { %34 = dma.hbm_to_vmem [thread:$0]  %s4744_s1, 192, %s29_s27, [#allocation7], %s2934_s0, %s2934_s0, %s2935_s9  }
  0x24   :  { %2924 = dma.done.wait [#allocation4], 8192  }
  0x25   :  { %2925 = vsyncadd [#allocation4], 4294959104 }
  0x26   :  { %2926 = dma.done.wait [#allocation7], 192  }
  0x27   :  { %2927 = vsyncadd [#allocation7], 4294967104  ;;  %v2936_v0 = vmov 0.0   ;;  %v121_v1 = vld [vmem:[#allocation3] sm:$0xff]  ;;  %v122_v2 = vld [vmem:[#allocation3 + $0x8] sm:$0xff]  ;;  %v542_v34 = vlaneseq  ;;  %vm1526_vm0 = vcmask 1046528  }
  0x28   :  { %43 = vst [vmem:[#allocation2] sm:$0xff] %v2936_v0  ;;  %45 = vst [vmem:[#allocation2 + $0x10] sm:$0x3] %v2936_v0  ;;  %v123_v3 = vld [vmem:[#allocation3 + $0x10] sm:$0xff]  ;;  %v124_v4 = vld [vmem:[#allocation3 + $0x18] sm:$0xff]  ;;  %vm2403_vm1 = vcmask 1045504  }
  0x29   :  { %48 = vst [vmem:[#allocation2 + $0x1c0] sm:$0x3] %v2936_v0  ;;  %52 = vst [vmem:[#allocation2 + $0x1a8] sm:$0x3] %v2936_v0  ;;  %v125_v5 = vld [vmem:[#allocation3 + $0x20] sm:$0xff]  ;;  %v126_v6 = vld [vmem:[#allocation3 + $0x28] sm:$0xff] }
  0x2a   :  { %55 = vst [vmem:[#allocation2 + $0x358] sm:$0x3] %v2936_v0  ;;  %57 = vst [vmem:[#allocation2 + $0x18] sm:$0x1] %v2936_v0  ;;  %v127_v7 = vld [vmem:[#allocation3 + $0x30] sm:$0xff]  ;;  %v128_v8 = vld [vmem:[#allocation3 + $0x38] sm:$0xff] }
  0x2b   :  { %58 = vst [vmem:[#allocation2 + $0x30] sm:$0x1] %v2936_v0  ;;  %59 = vst [vmem:[#allocation2 + $0x48] sm:$0x1] %v2936_v0  ;;  %v129_v9 = vld [vmem:[#allocation3 + $0x40] sm:$0xff]  ;;  %v130_v10 = vld [vmem:[#allocation3 + $0x48] sm:$0xff] }
  0x2c   :  { %60 = vst [vmem:[#allocation2 + $0x60] sm:$0x1] %v2936_v0  ;;  %61 = vst [vmem:[#allocation2 + $0x78] sm:$0x1] %v2936_v0  ;;  %v131_v11 = vld [vmem:[#allocation3 + $0x50] sm:$0xff]  ;;  %v132_v12 = vld [vmem:[#allocation3 + $0x58] sm:$0xff] }
  0x2d   :  { %62 = vst [vmem:[#allocation2 + $0x90] sm:$0x1] %v2936_v0  ;;  %63 = vst [vmem:[#allocation2 + $0xa8] sm:$0x1] %v2936_v0  ;;  %v133_v13 = vld [vmem:[#allocation3 + $0x60] sm:$0xff]  ;;  %v134_v14 = vld [vmem:[#allocation3 + $0x68] sm:$0xff] }
  0x2e   :  { %64 = vst [vmem:[#allocation2 + $0xc0] sm:$0x1] %v2936_v0  ;;  %65 = vst [vmem:[#allocation2 + $0xd8] sm:$0x1] %v2936_v0  ;;  %v135_v15 = vld [vmem:[#allocation3 + $0x70] sm:$0xff]  ;;  %v136_v16 = vld [vmem:[#allocation3 + $0x78] sm:$0xff] }
  0x2f   :  { %66 = vst [vmem:[#allocation2 + $0xf0] sm:$0x1] %v2936_v0  ;;  %67 = vst [vmem:[#allocation2 + $0x108] sm:$0x1] %v2936_v0  ;;  %v137_v17 = vld [vmem:[#allocation3 + $0x80] sm:$0xff]  ;;  %v138_v18 = vld [vmem:[#allocation3 + $0x88] sm:$0xff] }
  0x30   :  { %68 = vst [vmem:[#allocation2 + $0x120] sm:$0x1] %v2936_v0  ;;  %69 = vst [vmem:[#allocation2 + $0x138] sm:$0x1] %v2936_v0  ;;  %v139_v19 = vld [vmem:[#allocation3 + $0x90] sm:$0xff]  ;;  %v140_v20 = vld [vmem:[#allocation3 + $0x98] sm:$0xff] }
  0x31   :  { %70 = vst [vmem:[#allocation2 + $0x150] sm:$0x1] %v2936_v0  ;;  %71 = vst [vmem:[#allocation2 + $0x168] sm:$0x1] %v2936_v0  ;;  %v141_v21 = vld [vmem:[#allocation3 + $0xa0] sm:$0xff]  ;;  %v142_v22 = vld [vmem:[#allocation3 + $0xa8] sm:$0xff] }
  0x32   :  { %72 = vst [vmem:[#allocation2 + $0x180] sm:$0x1] %v2936_v0  ;;  %73 = vst [vmem:[#allocation2 + $0x1c8] sm:$0x1] %v2936_v0  ;;  %v143_v23 = vld [vmem:[#allocation3 + $0xb0] sm:$0xff]  ;;  %v144_v24 = vld [vmem:[#allocation3 + $0xb8] sm:$0xff] }
  0x33   :  { %74 = vst [vmem:[#allocation2 + $0x1e0] sm:$0x1] %v2936_v0  ;;  %75 = vst [vmem:[#allocation2 + $0x1f8] sm:$0x1] %v2936_v0  ;;  %v145_v25 = vld [vmem:[#allocation3 + $0xc0] sm:$0xff]  ;;  %v146_v26 = vld [vmem:[#allocation3 + $0xc8] sm:$0xff] }
  0x34   :  { %76 = vst [vmem:[#allocation2 + $0x210] sm:$0x1] %v2936_v0  ;;  %77 = vst [vmem:[#allocation2 + $0x228] sm:$0x1] %v2936_v0  ;;  %v147_v27 = vld [vmem:[#allocation3 + $0xd0] sm:$0xff]  ;;  %v148_v28 = vld [vmem:[#allocation3 + $0xd8] sm:$0xff] }
  0x35   :  { %78 = vst [vmem:[#allocation2 + $0x240] sm:$0x1] %v2936_v0  ;;  %79 = vst [vmem:[#allocation2 + $0x258] sm:$0x1] %v2936_v0  ;;  %v149_v29 = vld [vmem:[#allocation3 + $0xe0] sm:$0xff]  ;;  %v150_v30 = vld [vmem:[#allocation3 + $0xe8] sm:$0xff] }
  0x36   :  { %80 = vst [vmem:[#allocation2 + $0x270] sm:$0x1] %v2936_v0  ;;  %81 = vst [vmem:[#allocation2 + $0x288] sm:$0x1] %v2936_v0  ;;  %v151_v31 = vld [vmem:[#allocation3 + $0xf0] sm:$0xff]  ;;  %v152_v32 = vld [vmem:[#allocation3 + $0xf8] sm:$0xff] }
  0x37   :  { %82 = vst [vmem:[#allocation2 + $0x2a0] sm:$0x1] %v2936_v0  ;;  %83 = vst [vmem:[#allocation2 + $0x2b8] sm:$0x1] %v2936_v0  ;;  %v153_v33 = vld [vmem:[#allocation3 + $0x100] sm:$0xff]  ;;  %v154_v35 = vld [vmem:[#allocation3 + $0x108] sm:$0xff] }
  0x38   :  { %84 = vst [vmem:[#allocation2 + $0x2d0] sm:$0x1] %v2936_v0  ;;  %85 = vst [vmem:[#allocation2 + $0x2e8] sm:$0x1] %v2936_v0  ;;  %v155_v36 = vld [vmem:[#allocation3 + $0x110] sm:$0xff]  ;;  %v156_v37 = vld [vmem:[#allocation3 + $0x118] sm:$0xff] }
  0x39   :  { %86 = vst [vmem:[#allocation2 + $0x300] sm:$0x1] %v2936_v0  ;;  %87 = vst [vmem:[#allocation2 + $0x318] sm:$0x1] %v2936_v0  ;;  %v157_v38 = vld [vmem:[#allocation3 + $0x120] sm:$0xff]  ;;  %v158_v39 = vld [vmem:[#allocation3 + $0x128] sm:$0xff] }
  0x3a   :  { %88 = vst [vmem:[#allocation2 + $0x330] sm:$0x1] %v2936_v0  ;;  %89 = vst [vmem:[#allocation2 + $0x29] sm:$0x1] %v2936_v0  ;;  %v159_v40 = vld [vmem:[#allocation3 + $0x130] sm:$0xff]  ;;  %v160_v41 = vld [vmem:[#allocation3 + $0x138] sm:$0xff] }
  0x3b   :  { %90 = vst [vmem:[#allocation2 + $0x41] sm:$0x1] %v2936_v0  ;;  %91 = vst [vmem:[#allocation2 + $0x59] sm:$0x1] %v2936_v0  ;;  %v161_v42 = vld [vmem:[#allocation3 + $0x140] sm:$0xff]  ;;  %v162_v43 = vld [vmem:[#allocation3 + $0x148] sm:$0xff] }
  0x3c   :  { %92 = vst [vmem:[#allocation2 + $0x71] sm:$0x1] %v2936_v0  ;;  %93 = vst [vmem:[#allocation2 + $0x89] sm:$0x1] %v2936_v0  ;;  %v163_v44 = vld [vmem:[#allocation3 + $0x150] sm:$0xff]  ;;  %v164_v45 = vld [vmem:[#allocation3 + $0x158] sm:$0xff] }
  0x3d   :  { %94 = vst [vmem:[#allocation2 + $0xa1] sm:$0x1] %v2936_v0  ;;  %95 = vst [vmem:[#allocation2 + $0xb9] sm:$0x1] %v2936_v0  ;;  %v165_v46 = vld [vmem:[#allocation3 + $0x160] sm:$0xff]  ;;  %v543_v47 = vshrl.u32 %v542_v34, 7 }
  0x3e   :  { %96 = vst [vmem:[#allocation2 + $0xd1] sm:$0x1] %v2936_v0  ;;  %97 = vst [vmem:[#allocation2 + $0xe9] sm:$0x1] %v2936_v0  ;;  %v166_v48 = vld [vmem:[#allocation3 + $0x168] sm:$0xff]  ;;  %v167_v49 = vld [vmem:[#allocation3 + $0x170] sm:$0xff] }
  0x3f   :  { %98 = vst [vmem:[#allocation2 + $0x101] sm:$0x1] %v2936_v0  ;;  %99 = vst [vmem:[#allocation2 + $0x119] sm:$0x1] %v2936_v0  ;;  %v168_v50 = vld [vmem:[#allocation3 + $0x178] sm:$0xff]  ;;  %v169_v51 = vld [vmem:[#allocation3 + $0x180] sm:$0xff] }
  0x40   :  { %100 = vst [vmem:[#allocation2 + $0x131] sm:$0x1] %v2936_v0  ;;  %101 = vst [vmem:[#allocation2 + $0x149] sm:$0x1] %v2936_v0  ;;  %v170_v52 = vld [vmem:[#allocation3 + $0x188] sm:$0xff]  ;;  %v171_v53 = vld [vmem:[#allocation3 + $0x190] sm:$0xff] }
  0x41   :  { %102 = vst [vmem:[#allocation2 + $0x161] sm:$0x1] %v2936_v0  ;;  %103 = vst [vmem:[#allocation2 + $0x179] sm:$0x1] %v2936_v0  ;;  %v172_v54 = vld [vmem:[#allocation3 + $0x198] sm:$0xff]  ;;  %v173_v55 = vld [vmem:[#allocation3 + $0x1a0] sm:$0xff] }
  0x42   :  { %104 = vst [vmem:[#allocation2 + $0x191] sm:$0x1] %v2936_v0  ;;  %105 = vst [vmem:[#allocation2 + $0x1d9] sm:$0x1] %v2936_v0  ;;  %v174_v56 = vld [vmem:[#allocation3 + $0x1a8] sm:$0xff]  ;;  %v175_v57 = vld [vmem:[#allocation3 + $0x1b0] sm:$0xff] }
  0x43   :  { %106 = vst [vmem:[#allocation2 + $0x1f1] sm:$0x1] %v2936_v0  ;;  %107 = vst [vmem:[#allocation2 + $0x209] sm:$0x1] %v2936_v0  ;;  %v176_v58 = vld [vmem:[#allocation3 + $0x1b8] sm:$0xff]  ;;  %v177_v59 = vld [vmem:[#allocation3 + $0x1c0] sm:$0xff] }
  0x44   :  { %108 = vst [vmem:[#allocation2 + $0x221] sm:$0x1] %v2936_v0  ;;  %109 = vst [vmem:[#allocation2 + $0x239] sm:$0x1] %v2936_v0  ;;  %v544_v60 = vsub.s32 0, %v543_v47  ;;  %v940_v61 = vsub.s32 1, %v543_v47 }
  0x45   :  { %110 = vst [vmem:[#allocation2 + $0x251] sm:$0x1] %v2936_v0  ;;  %111 = vst [vmem:[#allocation2 + $0x269] sm:$0x1] %v2936_v0  ;;  %v178_v62 = vld [vmem:[#allocation3 + $0x1c8] sm:$0xff]  ;;  %v179_v63 = vld [vmem:[#allocation3 + $0x1d0] sm:$0xff] }
  0x46   :  { %112 = vst [vmem:[#allocation2 + $0x281] sm:$0x1] %v2936_v0  ;;  %113 = vst [vmem:[#allocation2 + $0x299] sm:$0x1] %v2936_v0 }
  0x47   :  { %114 = vst [vmem:[#allocation2 + $0x2b1] sm:$0x1] %v2936_v0  ;;  %115 = vst [vmem:[#allocation2 + $0x2c9] sm:$0x1] %v2936_v0 }
  0x48   :  { %116 = vst [vmem:[#allocation2 + $0x2e1] sm:$0x1] %v2936_v0  ;;  %117 = vst [vmem:[#allocation2 + $0x2f9] sm:$0x1] %v2936_v0 }
  0x49   :  { %118 = vst [vmem:[#allocation2 + $0x311] sm:$0x1] %v2936_v0  ;;  %119 = vst [vmem:[#allocation2 + $0x329] sm:$0x1] %v2936_v0 }
  0x4a   :  { %120 = vst [vmem:[#allocation2 + $0x341] sm:$0x1] %v2936_v0  ;;  %185 = vst [vmem:[#allocation2 + $0x19] sm:$0xff] %v121_v1  ;;  %v180_v0 = vld [vmem:[#allocation3 + $0x1d8] sm:$0xff]  ;;  %v1817_v1 = vsub.s32 2, %v543_v47 }
  0x4b   :  { %186 = vst [vmem:[#allocation2 + $0x21] sm:$0xff] %v122_v2  ;;  %187 = vst [vmem:[#allocation2 + $0x31] sm:$0xff] %v123_v3  ;;  %v181_v2 = vld [vmem:[#allocation3 + $0x1e0] sm:$0xff]  ;;  %v182_v3 = vld [vmem:[#allocation3 + $0x1e8] sm:$0xff] }
  0x4c   :  { %188 = vst [vmem:[#allocation2 + $0x39] sm:$0xff] %v124_v4  ;;  %189 = vst [vmem:[#allocation2 + $0x49] sm:$0xff] %v125_v5  ;;  %v183_v4 = vld [vmem:[#allocation3 + $0x1f0] sm:$0xff]  ;;  %v184_v5 = vld [vmem:[#allocation3 + $0x1f8] sm:$0xff] }
  0x4d   :  { %190 = vst [vmem:[#allocation2 + $0x51] sm:$0xff] %v126_v6  ;;  %191 = vst [vmem:[#allocation2 + $0x61] sm:$0xff] %v127_v7  ;;  %v249_v6 = vld [vmem:[#allocation6] sm:$0x7]  ;;  %v250_v7 = vld [vmem:[#allocation6 + $0x4] sm:$0x7] }
  0x4e   :  { %192 = vst [vmem:[#allocation2 + $0x69] sm:$0xff] %v128_v8  ;;  %193 = vst [vmem:[#allocation2 + $0x79] sm:$0xff] %v129_v9  ;;  %v251_v8 = vld [vmem:[#allocation6 + $0x8] sm:$0x7] }
  0x4f   :  { %194 = vst [vmem:[#allocation2 + $0x81] sm:$0xff] %v130_v10  ;;  %195 = vst [vmem:[#allocation2 + $0x91] sm:$0xff] %v131_v11  ;;  %v3056_v10 = vrot.slane %v249_v6, %v544_v60  ;;  %v3058_v11 = vrot.slane %v250_v7, %v544_v60 }
  0x50   :  { %196 = vst [vmem:[#allocation2 + $0x99] sm:$0xff] %v132_v12  ;;  %197 = vst [vmem:[#allocation2 + $0xa9] sm:$0xff] %v133_v13  ;;  %v3060_v12 = vrot.slane %v249_v6, %v940_v61  ;;  %v3062_v13 = vrot.slane %v250_v7, %v940_v61 }
  0x51   :  { %198 = vst [vmem:[#allocation2 + $0xb1] sm:$0xff] %v134_v14  ;;  %199 = vst [vmem:[#allocation2 + $0xc1] sm:$0xff] %v135_v15  ;;  %v3054_v9 = vld [vmem:[#allocation2 + $0x18] sm:$0xff] }
  0x52   :  { %200 = vst [vmem:[#allocation2 + $0xc9] sm:$0xff] %v136_v16  ;;  %201 = vst [vmem:[#allocation2 + $0xd9] sm:$0xff] %v137_v17  ;;  %v3064_v14 = vld [vmem:[#allocation2 + $0x20] sm:$0xff]  ;;  %v3066_v15 = vld [vmem:[#allocation2 + $0x30] sm:$0xff]  ;;  %v3070_v17 = vrot.slane %v251_v8, %v544_v60 }
  0x53   :  { %202 = vst [vmem:[#allocation2 + $0xe1] sm:$0xff] %v138_v18  ;;  %203 = vst [vmem:[#allocation2 + $0xf1] sm:$0xff] %v139_v19  ;;  %v3068_v16 = vld [vmem:[#allocation2 + $0x38] sm:$0xff]  ;;  %v3072_v18 = vrot.slane %v251_v8, %v940_v61  ;;  %v3074_v19 = vrot.slane %v249_v6, %v1817_v1  ;;  %v3112_v60 = vld [vmem:[#allocation2 + $0x48] sm:$0xff] }
  0x54   :  { %204 = vst [vmem:[#allocation2 + $0xf9] sm:$0xff] %v140_v20  ;;  %205 = vst [vmem:[#allocation2 + $0x109] sm:$0xff] %v141_v21  ;;  %v3076_v20 = vrot.slane %v250_v7, %v1817_v1  ;;  %v546_v21 = vmul.f32 0.0, %v3056_v10  ;;  %v3124_v7 = vld [vmem:[#allocation2 + $0x50] sm:$0xff] }
  0x55   :  { %206 = vst [vmem:[#allocation2 + $0x111] sm:$0xff] %v142_v22  ;;  %207 = vst [vmem:[#allocation2 + $0x121] sm:$0xff] %v143_v23  ;;  %v614_v22 = vmul.f32 %v3058_v11, %v3054_v9  ;;  %v942_v23 = vmul.f32 0.0, %v3060_v12 }
  0x56   :  { %208 = vst [vmem:[#allocation2 + $0x129] sm:$0xff] %v144_v24  ;;  %209 = vst [vmem:[#allocation2 + $0x139] sm:$0xff] %v145_v25  ;;  %v1042_v24 = vmul.f32 %v3062_v13, %v3054_v9  ;;  %v746_v25 = vmul.f32 %v3070_v17, %v3066_v15  ;;  %v1920_v34 = vmul.f32 %v3076_v20, %v3064_v14 }
  0x57   :  { %210 = vst [vmem:[#allocation2 + $0x141] sm:$0xff] %v146_v26  ;;  %211 = vst [vmem:[#allocation2 + $0x151] sm:$0xff] %v147_v27  ;;  %v1043_v26 = vmul.f32 %v3062_v13, %v3064_v14  ;;  %v1238_v27 = vmul.f32 %v3072_v18, %v3066_v15 }
  0x58   :  { %212 = vst [vmem:[#allocation2 + $0x159] sm:$0xff] %v148_v28  ;;  %213 = vst [vmem:[#allocation2 + $0x169] sm:$0xff] %v149_v29  ;;  %v1239_v28 = vmul.f32 %v3072_v18, %v3068_v16  ;;  %v678_v29 = vadd.f32 %v614_v22, %v546_v21  ;;  %v945_v22 = vmul.f32 %v3060_v12, %v3054_v9 }
  0x59   :  { %214 = vst [vmem:[#allocation2 + $0x171] sm:$0xff] %v150_v30  ;;  %215 = vst [vmem:[#allocation2 + $0x181] sm:$0xff] %v151_v31  ;;  %v1138_v30 = vadd.f32 %v1042_v24, %v942_v23  ;;  %v1819_v31 = vmul.f32 0.0, %v3074_v19 }
  0x5a   :  { %216 = vst [vmem:[#allocation2 + $0x189] sm:$0xff] %v152_v32  ;;  %217 = vst [vmem:[#allocation2 + $0x1c9] sm:$0xff] %v153_v33  ;;  %v1919_v32 = vmul.f32 %v3076_v20, %v3054_v9  ;;  %v1139_v33 = vadd.f32 %v1043_v26, %v942_v23  ;;  %v946_v26 = vmul.f32 %v3060_v12, %v3064_v14 }
  0x5b   :  { %218 = vst [vmem:[#allocation2 + $0x1d1] sm:$0xff] %v154_v35  ;;  %219 = vst [vmem:[#allocation2 + $0x1e1] sm:$0xff] %v155_v36  ;;  %v3097_v35 = vrot.slane %v251_v8, %v1817_v1  ;;  %v255_v36 = vld [vmem:[#allocation2 + $0x10] sm:$0x3]  ;;  %v616_v8 = vmul.f32 %v3058_v11, %v3066_v15 }
  0x5c   :  { %220 = vst [vmem:[#allocation2 + $0x1e9] sm:$0xff] %v156_v37  ;;  %221 = vst [vmem:[#allocation2 + $0x1f9] sm:$0xff] %v157_v38  ;;  %v351_v37 = vld [vmem:[#allocation2 + $0x28] sm:$0x3]  ;;  %v615_v38 = vmul.f32 %v3058_v11, %v3064_v14 }
  0x5d   :  { %222 = vst [vmem:[#allocation2 + $0x201] sm:$0xff] %v158_v39  ;;  %223 = vst [vmem:[#allocation2 + $0x211] sm:$0xff] %v159_v40  ;;  %v810_v39 = vadd.f32 %v746_v25, %v678_v29  ;;  %v1334_v40 = vadd.f32 %v1238_v27, %v1138_v30  ;;  %v2116_v47 = vmul.f32 %v3097_v35, %v3068_v16 }
  0x5e   :  { %224 = vst [vmem:[#allocation2 + $0x219] sm:$0xff] %v160_v41  ;;  %225 = vst [vmem:[#allocation2 + $0x229] sm:$0xff] %v161_v42  ;;  %v2015_v41 = vadd.f32 %v1919_v32, %v1819_v31  ;;  %v448_v42 = vld [vmem:[#allocation2 + $0x40] sm:$0x3]  ;;  %v1046_v29 = vmul.f32 %v3062_v13, %v3068_v16  ;;  %v1241_v30 = vmul.f32 %v3072_v18, %v3112_v60 }
  0x5f   :  { %226 = vst [vmem:[#allocation2 + $0x231] sm:$0xff] %v162_v43  ;;  %227 = vst [vmem:[#allocation2 + $0x241] sm:$0xff] %v163_v44  ;;  %v747_v43 = vmul.f32 %v3070_v17, %v3068_v16  ;;  %v1335_v44 = vadd.f32 %v1239_v28, %v1139_v33  ;;  %v1045_v28 = vmul.f32 %v3062_v13, %v3066_v15 }
  0x60   :  { %228 = vst [vmem:[#allocation2 + $0x249] sm:$0xff] %v164_v45  ;;  %229 = vst [vmem:[#allocation2 + $0x259] sm:$0xff] %v165_v46  ;;  %v2016_v45 = vadd.f32 %v1920_v34, %v1819_v31  ;;  %v2115_v46 = vmul.f32 %v3097_v35, %v3066_v15  ;;  %v1242_v34 = vmul.f32 %v3072_v18, %v3124_v7 }
  0x61   :  { %230 = vst [vmem:[#allocation2 + $0x261] sm:$0xff] %v166_v48  ;;  %231 = vst [vmem:[#allocation2 + $0x271] sm:$0xff] %v167_v49  ;;  %v1527_v48 = vrot.slane %v1334_v40, 1  ;;  %v679_v49 = vadd.f32 %v615_v38, %v546_v21  ;;  %v748_v21 = vmul.f32 %v3070_v17, %v3112_v60  ;;  %v1141_v38 = vadd.f32 %v1045_v28, %v945_v22 }
  0x62   :  { %232 = vst [vmem:[#allocation2 + $0x279] sm:$0xff] %v168_v50  ;;  %233 = vst [vmem:[#allocation2 + $0x289] sm:$0xff] %v169_v51  ;;  %v944_v50 = vmul.f32 %v3060_v12, %v255_v36  ;;  %v1044_v51 = vmul.f32 %v3062_v13, %v351_v37 }
  0x63   :  { %234 = vst [vmem:[#allocation2 + $0x291] sm:$0xff] %v170_v52  ;;  %235 = vst [vmem:[#allocation2 + $0x2a1] sm:$0xff] %v171_v53  ;;  %v1528_v52 = vrot.slane %v1335_v44, 1  ;;  %v2211_v53 = vadd.f32 %v2115_v46, %v2015_v41  ;;  %v1822_v41 = vmul.f32 %v3074_v19, %v3054_v9 }
  0x64   :  { %236 = vst [vmem:[#allocation2 + $0x2a9] sm:$0xff] %v172_v54  ;;  %237 = vst [vmem:[#allocation2 + $0x2b9] sm:$0xff] %v173_v55  ;;  %v2212_v54 = vadd.f32 %v2116_v47, %v2016_v45  ;;  %v1240_v55 = vmul.f32 %v3072_v18, %v448_v42  ;;  %v1337_v45 = vadd.f32 %v1241_v30, %v1141_v38 }
  0x65   :  { %238 = vst [vmem:[#allocation2 + $0x2c1] sm:$0xff] %v174_v56  ;;  %239 = vst [vmem:[#allocation2 + $0x2d1] sm:$0xff] %v175_v57  ;;  %v811_v56 = vadd.f32 %v747_v43, %v679_v49  ;;  %v1140_v57 = vadd.f32 %v1044_v51, %v944_v50  ;;  %v1529_v61 = vsel %vm1526_vm0, %v1527_v48, %v1528_v52  ;;  %v258_v48 = vld [vmem:[#allocation2 + $0x28] sm:$0x3]  ;;  %v354_v51 = vld [vmem:[#allocation2 + $0x40] sm:$0x3] }
  0x66   :  { %240 = vst [vmem:[#allocation2 + $0x2d9] sm:$0xff] %v176_v58  ;;  %241 = vst [vmem:[#allocation2 + $0x2e9] sm:$0xff] %v177_v59  ;;  %v1821_v58 = vmul.f32 %v3074_v19, %v255_v36  ;;  %v1921_v59 = vmul.f32 %v3076_v20, %v351_v37  ;;  %v1751_v1 = vadd.f32 %v1529_v61, %v810_v39 }
  0x67   :  { %242 = vst [vmem:[#allocation2 + $0x2f1] sm:$0xff] %v178_v62  ;;  %243 = vst [vmem:[#allocation2 + $0x301] sm:$0xff] %v179_v63  ;;  %v2404_v62 = vrot.slane %v2211_v53, 2  ;;  %v2405_v63 = vrot.slane %v2212_v54, 2  ;;  %v1142_v39 = vadd.f32 %v1046_v29, %v946_v26  ;;  %v1922_v43 = vmul.f32 %v3076_v20, %v3066_v15 }
  0x68   :  { %244 = vst [vmem:[#allocation2 + $0x309] sm:$0xff] %v180_v0  ;;  %245 = vst [vmem:[#allocation2 + $0x319] sm:$0xff] %v181_v2  ;;  %v2117_v0 = vmul.f32 %v3097_v35, %v448_v42  ;;  %v1336_v2 = vadd.f32 %v1240_v55, %v1140_v57  ;;  %v1823_v42 = vmul.f32 %v3074_v19, %v3064_v14  ;;  %v1532_v55 = vrot.slane %v1337_v45, 1 }
  0x69   :  { %246 = vst [vmem:[#allocation2 + $0x321] sm:$0xff] %v182_v3  ;;  %247 = vst [vmem:[#allocation2 + $0x331] sm:$0xff] %v183_v4  ;;  %v2017_v3 = vadd.f32 %v1921_v59, %v1821_v58  ;;  %v548_v4 = vmul.f32 %v3056_v10, %v3054_v9  ;;  %v2406_v6 = vsel %vm2403_vm1, %v2404_v62, %v2405_v63 }
  0x6a   :  { %248 = vst [vmem:[#allocation2 + $0x339] sm:$0xff] %v184_v5  ;;  %v3121_v5 = vld [vmem:[%s4745_s2] ss:$0 sm:$0xff]  ;;  %v2628_v23 = vadd.f32 %v2406_v6, %v1751_v1  ;;  %v1530_v24 = vrot.slane %v1336_v2, 1  ;;  %v1338_v46 = vadd.f32 %v1242_v34, %v1142_v39  ;;  %v1923_v47 = vmul.f32 %v3076_v20, %v3068_v16 }
  0x6b   :  { %v2213_v25 = vadd.f32 %v2117_v0, %v2017_v3  ;;  %v680_v27 = vadd.f32 %v616_v8, %v548_v4  ;;  %v2018_v49 = vadd.f32 %v1922_v43, %v1822_v41  ;;  %v2118_v50 = vmul.f32 %v3097_v35, %v3112_v60  ;;  %v3168_v2 = vld [vmem:[#allocation2 + $0x60] sm:$0xff] }
  0x6c   :  { %v2698_v31 = vadd.f32 %v3121_v5, %v2628_v23  ;;  %v1531_v32 = vsel %vm1526_vm0, %v1528_v52, %v1530_v24  ;;  %v2119_v9 = vmul.f32 %v3097_v35, %v3124_v7  ;;  %v451_v52 = vld [vmem:[#allocation2 + $0x58] sm:$0x3]  ;;  %v549_v53 = vmul.f32 %v3056_v10, %v3064_v14 }
  0x6d   :  { %v2407_v33 = vrot.slane %v2213_v25, 2  ;;  %v1752_v36 = vadd.f32 %v1531_v32, %v811_v56  ;;  %v812_v37 = vadd.f32 %v748_v21, %v680_v27  ;;  %v1533_v56 = vrot.slane %v1338_v46, 1  ;;  %v3180_v32 = vld [vmem:[#allocation2 + $0x68] sm:$0xff] }
  0x6e   :  { %2762 = vst [vmem:[#allocation8] sm:$0xff] %v2698_v31  ;;  %v2019_v57 = vadd.f32 %v1923_v47, %v1823_v42  ;;  %v2214_v58 = vadd.f32 %v2118_v50, %v2018_v49  ;;  %v617_v59 = vmul.f32 %v3058_v11, %v3068_v16  ;;  %v749_v61 = vmul.f32 %v3070_v17, %v3124_v7 }
  0x6f   :  { %v2408_v40 = vsel %vm2403_vm1, %v2405_v63, %v2407_v33  ;;  %v947_v62 = vmul.f32 %v3060_v12, %v258_v48  ;;  %v1534_v63 = vsel %vm1526_vm0, %v1532_v55, %v1533_v56  ;;  %v1047_v14 = vmul.f32 %v3062_v13, %v354_v51 }
  0x70   :  { %v2629_v44 = vadd.f32 %v2408_v40, %v1752_v36  ;;  %v2215_v0 = vadd.f32 %v2119_v9, %v2019_v57  ;;  %v1243_v1 = vmul.f32 %v3072_v18, %v451_v52  ;;  %v1753_v3 = vadd.f32 %v1534_v63, %v812_v37  ;;  %v357_v63 = vld [vmem:[#allocation2 + $0x58] sm:$0x3] }
  0x71   :  { %v2409_v4 = vrot.slane %v2214_v58, 2  ;;  %v681_v6 = vadd.f32 %v617_v59, %v549_v53  ;;  %v1824_v8 = vmul.f32 %v3074_v19, %v258_v48  ;;  %v1143_v22 = vadd.f32 %v1047_v14, %v947_v62  ;;  %v261_v58 = vld [vmem:[#allocation2 + $0x40] sm:$0x3] }
  0x72   :  { %v2699_v54 = vadd.f32 %v3121_v5, %v2629_v44  ;;  %v2410_v21 = vrot.slane %v2215_v0, 2  ;;  %v1924_v23 = vmul.f32 %v3076_v20, %v354_v51  ;;  %v2120_v24 = vmul.f32 %v3097_v35, %v451_v52 }
  0x73   :  { %v813_v25 = vadd.f32 %v749_v61, %v681_v6  ;;  %v550_v26 = vmul.f32 %v3056_v10, %v3066_v15  ;;  %v618_v27 = vmul.f32 %v3058_v11, %v3112_v60  ;;  %v750_v28 = vmul.f32 %v3070_v17, %v3168_v2 }
  0x74   :  { %2763 = vst [vmem:[#allocation8 + $0x8] sm:$0xff] %v2699_v54  ;;  %v2411_v29 = vsel %vm2403_vm1, %v2409_v4, %v2410_v21  ;;  %v1339_v30 = vadd.f32 %v1243_v1, %v1143_v22  ;;  %v2020_v31 = vadd.f32 %v1924_v23, %v1824_v8  ;;  %v948_v33 = vmul.f32 %v3060_v12, %v3066_v15  ;;  %v454_v1 = vld [vmem:[#allocation2 + $0x70] sm:$0x3] }
  0x75   :  { %v2630_v34 = vadd.f32 %v2411_v29, %v1753_v3  ;;  %v682_v36 = vadd.f32 %v618_v27, %v550_v26  ;;  %v949_v37 = vmul.f32 %v3060_v12, %v3068_v16  ;;  %v1048_v38 = vmul.f32 %v3062_v13, %v3112_v60  ;;  %v3219_v27 = vld [vmem:[#allocation2 + $0x78] sm:$0xff] }
  0x76   :  { %v1535_v39 = vrot.slane %v1339_v30, 1  ;;  %v2216_v40 = vadd.f32 %v2120_v24, %v2020_v31  ;;  %v1049_v41 = vmul.f32 %v3062_v13, %v3124_v7  ;;  %v1244_v42 = vmul.f32 %v3072_v18, %v3168_v2 }
  0x77   :  { %v2700_v43 = vadd.f32 %v3121_v5, %v2630_v34  ;;  %v814_v44 = vadd.f32 %v750_v28, %v682_v36  ;;  %v1144_v45 = vadd.f32 %v1048_v38, %v948_v33  ;;  %v1245_v46 = vmul.f32 %v3072_v18, %v3180_v32 }
  0x78   :  { %v1536_v47 = vsel %vm1526_vm0, %v1533_v56, %v1535_v39  ;;  %v2412_v48 = vrot.slane %v2216_v40, 2  ;;  %v1145_v49 = vadd.f32 %v1049_v41, %v949_v37  ;;  %v1825_v50 = vmul.f32 %v3074_v19, %v3066_v15 }
  0x79   :  { %2764 = vst [vmem:[#allocation8 + $0x10] sm:$0xff] %v2700_v43  ;;  %v1754_v9 = vadd.f32 %v1536_v47, %v813_v25  ;;  %v1340_v51 = vadd.f32 %v1244_v42, %v1144_v45  ;;  %v1826_v52 = vmul.f32 %v3074_v19, %v3068_v16  ;;  %v1925_v53 = vmul.f32 %v3076_v20, %v3112_v60 }
  0x7a   :  { %v2413_v54 = vsel %vm2403_vm1, %v2410_v21, %v2412_v48  ;;  %v1341_v55 = vadd.f32 %v1245_v46, %v1145_v49  ;;  %v1926_v56 = vmul.f32 %v3076_v20, %v3124_v7  ;;  %v2121_v57 = vmul.f32 %v3097_v35, %v3168_v2 }
  0x7b   :  { %v2631_v15 = vadd.f32 %v2413_v54, %v1754_v9  ;;  %v1537_v59 = vrot.slane %v1340_v51, 1  ;;  %v2021_v61 = vadd.f32 %v1925_v53, %v1825_v50  ;;  %v2122_v62 = vmul.f32 %v3097_v35, %v3180_v32 }
  0x7c   :  { %v1538_v0 = vrot.slane %v1341_v55, 1  ;;  %v2022_v14 = vadd.f32 %v1926_v56, %v1826_v52  ;;  %v551_v3 = vmul.f32 %v3056_v10, %v3068_v16  ;;  %v619_v4 = vmul.f32 %v3058_v11, %v3124_v7 }
  0x7d   :  { %v2701_v6 = vadd.f32 %v3121_v5, %v2631_v15  ;;  %v2217_v8 = vadd.f32 %v2121_v57, %v2021_v61  ;;  %v751_v21 = vmul.f32 %v3070_v17, %v3180_v32  ;;  %v950_v22 = vmul.f32 %v3060_v12, %v261_v58 }
  0x7e   :  { %v1539_v23 = vsel %vm1526_vm0, %v1537_v59, %v1538_v0  ;;  %v2218_v24 = vadd.f32 %v2122_v62, %v2022_v14  ;;  %v683_v25 = vadd.f32 %v619_v4, %v551_v3  ;;  %v1050_v26 = vmul.f32 %v3062_v13, %v357_v63 }
  0x7f   :  { %2765 = vst [vmem:[#allocation8 + $0x18] sm:$0xff] %v2701_v6  ;;  %v1755_v16 = vadd.f32 %v1539_v23, %v814_v44  ;;  %v2414_v28 = vrot.slane %v2217_v8, 2  ;;  %v1246_v29 = vmul.f32 %v3072_v18, %v454_v1  ;;  %v1827_v30 = vmul.f32 %v3074_v19, %v261_v58  ;;  %v3232_v44 = vld [vmem:[#allocation2 + $0x80] sm:$0xff]  ;;  %v264_v6 = vld [vmem:[#allocation2 + $0x58] sm:$0x3] }
  0x80   :  { %v2415_v31 = vrot.slane %v2218_v24, 2  ;;  %v815_v33 = vadd.f32 %v751_v21, %v683_v25  ;;  %v1146_v34 = vadd.f32 %v1050_v26, %v950_v22  ;;  %v1927_v36 = vmul.f32 %v3076_v20, %v357_v63  ;;  %v360_v23 = vld [vmem:[#allocation2 + $0x70] sm:$0x3]  ;;  %v457_v26 = vld [vmem:[#allocation2 + $0x88] sm:$0x3] }
  0x81   :  { %v2123_v37 = vmul.f32 %v3097_v35, %v454_v1  ;;  %v552_v38 = vmul.f32 %v3056_v10, %v3112_v60  ;;  %v620_v39 = vmul.f32 %v3058_v11, %v3168_v2  ;;  %v752_v40 = vmul.f32 %v3070_v17, %v3219_v27 }
  0x82   :  { %v2416_v41 = vsel %vm2403_vm1, %v2414_v28, %v2415_v31  ;;  %v1342_v42 = vadd.f32 %v1246_v29, %v1146_v34  ;;  %v2023_v43 = vadd.f32 %v1927_v36, %v1827_v30  ;;  %v951_v45 = vmul.f32 %v3060_v12, %v3112_v60 }
  0x83   :  { %v2632_v46 = vadd.f32 %v2416_v41, %v1755_v16  ;;  %v684_v47 = vadd.f32 %v620_v39, %v552_v38  ;;  %v952_v48 = vmul.f32 %v3060_v12, %v3124_v7  ;;  %v1051_v49 = vmul.f32 %v3062_v13, %v3168_v2  ;;  %v3271_v39 = vld [vmem:[#allocation2 + $0x90] sm:$0xff] }
  0x84   :  { %v1540_v50 = vrot.slane %v1342_v42, 1  ;;  %v2219_v9 = vadd.f32 %v2123_v37, %v2023_v43  ;;  %v1052_v51 = vmul.f32 %v3062_v13, %v3180_v32  ;;  %v1247_v52 = vmul.f32 %v3072_v18, %v3219_v27 }
  0x85   :  { %v2702_v53 = vadd.f32 %v3121_v5, %v2632_v46  ;;  %v816_v54 = vadd.f32 %v752_v40, %v684_v47  ;;  %v1147_v55 = vadd.f32 %v1051_v49, %v951_v45  ;;  %v1248_v56 = vmul.f32 %v3072_v18, %v3232_v44 }
  0x86   :  { %v1541_v57 = vsel %vm1526_vm0, %v1538_v0, %v1540_v50  ;;  %v2417_v58 = vrot.slane %v2219_v9, 2  ;;  %v1148_v15 = vadd.f32 %v1052_v51, %v952_v48  ;;  %v1828_v59 = vmul.f32 %v3074_v19, %v3112_v60 }
  0x87   :  { %2766 = vst [vmem:[#allocation8 + $0x20] sm:$0xff] %v2702_v53  ;;  %v1756_v61 = vadd.f32 %v1541_v57, %v815_v33  ;;  %v1343_v62 = vadd.f32 %v1247_v52, %v1147_v55  ;;  %v1829_v63 = vmul.f32 %v3074_v19, %v3124_v7  ;;  %v1928_v14 = vmul.f32 %v3076_v20, %v3168_v2 }
  0x88   :  { %v2418_v1 = vsel %vm2403_vm1, %v2415_v31, %v2417_v58  ;;  %v1344_v3 = vadd.f32 %v1248_v56, %v1148_v15  ;;  %v1929_v0 = vmul.f32 %v3076_v20, %v3180_v32  ;;  %v2124_v4 = vmul.f32 %v3097_v35, %v3219_v27 }
  0x89   :  { %v2633_v60 = vadd.f32 %v2418_v1, %v1756_v61  ;;  %v1542_v8 = vrot.slane %v1343_v62, 1  ;;  %v2024_v21 = vadd.f32 %v1928_v14, %v1828_v59  ;;  %v2125_v22 = vmul.f32 %v3097_v35, %v3232_v44 }
  0x8a   :  { %v1543_v24 = vrot.slane %v1344_v3, 1  ;;  %v2025_v25 = vadd.f32 %v1929_v0, %v1829_v63  ;;  %v553_v16 = vmul.f32 %v3056_v10, %v3124_v7  ;;  %v621_v28 = vmul.f32 %v3058_v11, %v3180_v32 }
  0x8b   :  { %v2703_v29 = vadd.f32 %v3121_v5, %v2633_v60  ;;  %v2220_v30 = vadd.f32 %v2124_v4, %v2024_v21  ;;  %v753_v31 = vmul.f32 %v3070_v17, %v3232_v44  ;;  %v953_v33 = vmul.f32 %v3060_v12, %v264_v6 }
  0x8c   :  { %v1544_v34 = vsel %vm1526_vm0, %v1542_v8, %v1543_v24  ;;  %v2221_v36 = vadd.f32 %v2125_v22, %v2025_v25  ;;  %v685_v37 = vadd.f32 %v621_v28, %v553_v16  ;;  %v1053_v38 = vmul.f32 %v3062_v13, %v360_v23 }
  0x8d   :  { %2767 = vst [vmem:[#allocation8 + $0x28] sm:$0xff] %v2703_v29  ;;  %v1757_v7 = vadd.f32 %v1544_v34, %v816_v54  ;;  %v2419_v40 = vrot.slane %v2220_v30, 2  ;;  %v1249_v41 = vmul.f32 %v3072_v18, %v457_v26  ;;  %v1830_v42 = vmul.f32 %v3074_v19, %v264_v6  ;;  %v3284_v54 = vld [vmem:[#allocation2 + $0x98] sm:$0xff]  ;;  %v267_v29 = vld [vmem:[#allocation2 + $0x70] sm:$0x3] }
  0x8e   :  { %v2420_v43 = vrot.slane %v2221_v36, 2  ;;  %v817_v45 = vadd.f32 %v753_v31, %v685_v37  ;;  %v1149_v46 = vadd.f32 %v1053_v38, %v953_v33  ;;  %v1930_v47 = vmul.f32 %v3076_v20, %v360_v23  ;;  %v363_v34 = vld [vmem:[#allocation2 + $0x88] sm:$0x3]  ;;  %v460_v38 = vld [vmem:[#allocation2 + $0xa0] sm:$0x3] }
  0x8f   :  { %v2126_v48 = vmul.f32 %v3097_v35, %v457_v26  ;;  %v554_v49 = vmul.f32 %v3056_v10, %v3168_v2  ;;  %v622_v50 = vmul.f32 %v3058_v11, %v3219_v27  ;;  %v754_v9 = vmul.f32 %v3070_v17, %v3271_v39 }
  0x90   :  { %v2421_v51 = vsel %vm2403_vm1, %v2419_v40, %v2420_v43  ;;  %v1345_v52 = vadd.f32 %v1249_v41, %v1149_v46  ;;  %v2026_v53 = vadd.f32 %v1930_v47, %v1830_v42  ;;  %v954_v55 = vmul.f32 %v3060_v12, %v3168_v2 }
  0x91   :  { %v2634_v56 = vadd.f32 %v2421_v51, %v1757_v7  ;;  %v686_v57 = vadd.f32 %v622_v50, %v554_v49  ;;  %v955_v58 = vmul.f32 %v3060_v12, %v3180_v32  ;;  %v1054_v15 = vmul.f32 %v3062_v13, %v3219_v27  ;;  %v3323_v50 = vld [vmem:[#allocation2 + $0xa8] sm:$0xff] }
  0x92   :  { %v1545_v59 = vrot.slane %v1345_v52, 1  ;;  %v2222_v61 = vadd.f32 %v2126_v48, %v2026_v53  ;;  %v1055_v62 = vmul.f32 %v3062_v13, %v3232_v44  ;;  %v1250_v63 = vmul.f32 %v3072_v18, %v3271_v39 }
  0x93   :  { %v2704_v14 = vadd.f32 %v3121_v5, %v2634_v56  ;;  %v818_v1 = vadd.f32 %v754_v9, %v686_v57  ;;  %v1150_v3 = vadd.f32 %v1054_v15, %v954_v55  ;;  %v1251_v0 = vmul.f32 %v3072_v18, %v3284_v54 }
  0x94   :  { %v1546_v4 = vsel %vm1526_vm0, %v1543_v24, %v1545_v59  ;;  %v2422_v6 = vrot.slane %v2222_v61, 2  ;;  %v1151_v60 = vadd.f32 %v1055_v62, %v955_v58  ;;  %v1831_v8 = vmul.f32 %v3074_v19, %v3168_v2 }
  0x95   :  { %2768 = vst [vmem:[#allocation8 + $0x30] sm:$0xff] %v2704_v14  ;;  %v1758_v21 = vadd.f32 %v1546_v4, %v817_v45  ;;  %v1346_v22 = vadd.f32 %v1250_v63, %v1150_v3  ;;  %v1832_v23 = vmul.f32 %v3074_v19, %v3180_v32  ;;  %v1931_v25 = vmul.f32 %v3076_v20, %v3219_v27 }
  0x96   :  { %v2423_v26 = vsel %vm2403_vm1, %v2420_v43, %v2422_v6  ;;  %v1347_v16 = vadd.f32 %v1251_v0, %v1151_v60  ;;  %v1932_v24 = vmul.f32 %v3076_v20, %v3232_v44  ;;  %v2127_v28 = vmul.f32 %v3097_v35, %v3271_v39 }
  0x97   :  { %v2635_v2 = vadd.f32 %v2423_v26, %v1758_v21  ;;  %v1547_v30 = vrot.slane %v1346_v22, 1  ;;  %v2027_v31 = vadd.f32 %v1931_v25, %v1831_v8  ;;  %v2128_v33 = vmul.f32 %v3097_v35, %v3284_v54 }
  0x98   :  { %v1548_v36 = vrot.slane %v1347_v16, 1  ;;  %v2028_v37 = vadd.f32 %v1932_v24, %v1832_v23  ;;  %v555_v7 = vmul.f32 %v3056_v10, %v3180_v32  ;;  %v623_v40 = vmul.f32 %v3058_v11, %v3232_v44 }
  0x99   :  { %v2705_v41 = vadd.f32 %v3121_v5, %v2635_v2  ;;  %v2223_v42 = vadd.f32 %v2127_v28, %v2027_v31  ;;  %v755_v43 = vmul.f32 %v3070_v17, %v3284_v54  ;;  %v956_v45 = vmul.f32 %v3060_v12, %v267_v29 }
  0x9a   :  { %v1549_v46 = vsel %vm1526_vm0, %v1547_v30, %v1548_v36  ;;  %v2224_v47 = vadd.f32 %v2128_v33, %v2028_v37  ;;  %v687_v48 = vadd.f32 %v623_v40, %v555_v7  ;;  %v1056_v49 = vmul.f32 %v3062_v13, %v363_v34 }
  0x9b   :  { %2769 = vst [vmem:[#allocation8 + $0x38] sm:$0xff] %v2705_v41  ;;  %v1759_v32 = vadd.f32 %v1549_v46, %v818_v1  ;;  %v2424_v9 = vrot.slane %v2223_v42, 2  ;;  %v1252_v51 = vmul.f32 %v3072_v18, %v460_v38  ;;  %v1833_v52 = vmul.f32 %v3074_v19, %v267_v29  ;;  %v3336_v1 = vld [vmem:[#allocation2 + $0xb0] sm:$0xff]  ;;  %v270_v41 = vld [vmem:[#allocation2 + $0x88] sm:$0x3] }
  0x9c   :  { %v2425_v53 = vrot.slane %v2224_v47, 2  ;;  %v819_v55 = vadd.f32 %v755_v43, %v687_v48  ;;  %v1152_v56 = vadd.f32 %v1056_v49, %v956_v45  ;;  %v1933_v57 = vmul.f32 %v3076_v20, %v363_v34  ;;  %v366_v46 = vld [vmem:[#allocation2 + $0xa0] sm:$0x3]  ;;  %v463_v49 = vld [vmem:[#allocation2 + $0xb8] sm:$0x3] }
  0x9d   :  { %v2129_v58 = vmul.f32 %v3097_v35, %v460_v38  ;;  %v556_v15 = vmul.f32 %v3056_v10, %v3219_v27  ;;  %v624_v59 = vmul.f32 %v3058_v11, %v3271_v39  ;;  %v756_v61 = vmul.f32 %v3070_v17, %v3323_v50 }
  0x9e   :  { %v2426_v62 = vsel %vm2403_vm1, %v2424_v9, %v2425_v53  ;;  %v1348_v63 = vadd.f32 %v1252_v51, %v1152_v56  ;;  %v2029_v14 = vadd.f32 %v1933_v57, %v1833_v52  ;;  %v957_v3 = vmul.f32 %v3060_v12, %v3219_v27 }
  0x9f   :  { %v2636_v0 = vadd.f32 %v2426_v62, %v1759_v32  ;;  %v688_v4 = vadd.f32 %v624_v59, %v556_v15  ;;  %v958_v6 = vmul.f32 %v3060_v12, %v3232_v44  ;;  %v1057_v60 = vmul.f32 %v3062_v13, %v3271_v39  ;;  %v3375_v59 = vld [vmem:[#allocation2 + $0xc0] sm:$0xff] }
  0xa0   :  { %v1550_v8 = vrot.slane %v1348_v63, 1  ;;  %v2225_v21 = vadd.f32 %v2129_v58, %v2029_v14  ;;  %v1058_v22 = vmul.f32 %v3062_v13, %v3284_v54  ;;  %v1253_v23 = vmul.f32 %v3072_v18, %v3323_v50 }
  0xa1   :  { %v2706_v25 = vadd.f32 %v3121_v5, %v2636_v0  ;;  %v820_v26 = vadd.f32 %v756_v61, %v688_v4  ;;  %v1153_v16 = vadd.f32 %v1057_v60, %v957_v3  ;;  %v1254_v24 = vmul.f32 %v3072_v18, %v3336_v1 }
  0xa2   :  { %v1551_v28 = vsel %vm1526_vm0, %v1548_v36, %v1550_v8  ;;  %v2427_v29 = vrot.slane %v2225_v21, 2  ;;  %v1154_v2 = vadd.f32 %v1058_v22, %v958_v6  ;;  %v1834_v30 = vmul.f32 %v3074_v19, %v3219_v27 }
  0xa3   :  { %2770 = vst [vmem:[#allocation8 + $0x40] sm:$0xff] %v2706_v25  ;;  %v1760_v31 = vadd.f32 %v1551_v28, %v819_v55  ;;  %v1349_v33 = vadd.f32 %v1253_v23, %v1153_v16  ;;  %v1835_v34 = vmul.f32 %v3074_v19, %v3232_v44  ;;  %v1934_v37 = vmul.f32 %v3076_v20, %v3271_v39 }
  0xa4   :  { %v2428_v38 = vsel %vm2403_vm1, %v2425_v53, %v2427_v29  ;;  %v1350_v7 = vadd.f32 %v1254_v24, %v1154_v2  ;;  %v1935_v36 = vmul.f32 %v3076_v20, %v3284_v54  ;;  %v2130_v40 = vmul.f32 %v3097_v35, %v3323_v50 }
  0xa5   :  { %v2637_v27 = vadd.f32 %v2428_v38, %v1760_v31  ;;  %v1552_v42 = vrot.slane %v1349_v33, 1  ;;  %v2030_v43 = vadd.f32 %v1934_v37, %v1834_v30  ;;  %v2131_v45 = vmul.f32 %v3097_v35, %v3336_v1 }
  0xa6   :  { %v1553_v47 = vrot.slane %v1350_v7, 1  ;;  %v2031_v48 = vadd.f32 %v1935_v36, %v1835_v34  ;;  %v557_v32 = vmul.f32 %v3056_v10, %v3232_v44  ;;  %v625_v9 = vmul.f32 %v3058_v11, %v3284_v54 }
  0xa7   :  { %v2707_v51 = vadd.f32 %v3121_v5, %v2637_v27  ;;  %v2226_v52 = vadd.f32 %v2130_v40, %v2030_v43  ;;  %v757_v53 = vmul.f32 %v3070_v17, %v3336_v1  ;;  %v959_v55 = vmul.f32 %v3060_v12, %v270_v41 }
  0xa8   :  { %v1554_v56 = vsel %vm1526_vm0, %v1552_v42, %v1553_v47  ;;  %v2227_v57 = vadd.f32 %v2131_v45, %v2031_v48  ;;  %v689_v58 = vadd.f32 %v625_v9, %v557_v32  ;;  %v1059_v15 = vmul.f32 %v3062_v13, %v366_v46 }
  0xa9   :  { %2771 = vst [vmem:[#allocation8 + $0x48] sm:$0xff] %v2707_v51  ;;  %v1761_v44 = vadd.f32 %v1554_v56, %v820_v26  ;;  %v2429_v61 = vrot.slane %v2226_v52, 2  ;;  %v1255_v62 = vmul.f32 %v3072_v18, %v463_v49  ;;  %v1836_v63 = vmul.f32 %v3074_v19, %v270_v41  ;;  %v3388_v26 = vld [vmem:[#allocation2 + $0xc8] sm:$0xff]  ;;  %v273_v51 = vld [vmem:[#allocation2 + $0xa0] sm:$0x3] }
  0xaa   :  { %v2430_v14 = vrot.slane %v2227_v57, 2  ;;  %v821_v3 = vadd.f32 %v757_v53, %v689_v58  ;;  %v1155_v0 = vadd.f32 %v1059_v15, %v959_v55  ;;  %v1936_v4 = vmul.f32 %v3076_v20, %v366_v46  ;;  %v369_v56 = vld [vmem:[#allocation2 + $0xb8] sm:$0x3]  ;;  %v466_v15 = vld [vmem:[#allocation2 + $0xd0] sm:$0x3] }
  0xab   :  { %v2132_v6 = vmul.f32 %v3097_v35, %v463_v49  ;;  %v558_v60 = vmul.f32 %v3056_v10, %v3271_v39  ;;  %v626_v8 = vmul.f32 %v3058_v11, %v3323_v50  ;;  %v758_v21 = vmul.f32 %v3070_v17, %v3375_v59 }
  0xac   :  { %v2431_v22 = vsel %vm2403_vm1, %v2429_v61, %v2430_v14  ;;  %v1351_v23 = vadd.f32 %v1255_v62, %v1155_v0  ;;  %v2032_v25 = vadd.f32 %v1936_v4, %v1836_v63  ;;  %v960_v16 = vmul.f32 %v3060_v12, %v3271_v39 }
  0xad   :  { %v2638_v24 = vadd.f32 %v2431_v22, %v1761_v44  ;;  %v690_v28 = vadd.f32 %v626_v8, %v558_v60  ;;  %v961_v29 = vmul.f32 %v3060_v12, %v3284_v54  ;;  %v1060_v2 = vmul.f32 %v3062_v13, %v3323_v50  ;;  %v3427_v8 = vld [vmem:[#allocation2 + $0xd8] sm:$0xff] }
  0xae   :  { %v1555_v30 = vrot.slane %v1351_v23, 1  ;;  %v2228_v31 = vadd.f32 %v2132_v6, %v2032_v25  ;;  %v1061_v33 = vmul.f32 %v3062_v13, %v3336_v1  ;;  %v1256_v34 = vmul.f32 %v3072_v18, %v3375_v59 }
  0xaf   :  { %v2708_v37 = vadd.f32 %v3121_v5, %v2638_v24  ;;  %v822_v38 = vadd.f32 %v758_v21, %v690_v28  ;;  %v1156_v7 = vadd.f32 %v1060_v2, %v960_v16  ;;  %v1257_v36 = vmul.f32 %v3072_v18, %v3388_v26 }
  0xb0   :  { %v1556_v40 = vsel %vm1526_vm0, %v1553_v47, %v1555_v30  ;;  %v2432_v41 = vrot.slane %v2228_v31, 2  ;;  %v1157_v27 = vadd.f32 %v1061_v33, %v961_v29  ;;  %v1837_v42 = vmul.f32 %v3074_v19, %v3271_v39 }
  0xb1   :  { %2772 = vst [vmem:[#allocation8 + $0x50] sm:$0xff] %v2708_v37  ;;  %v1762_v43 = vadd.f32 %v1556_v40, %v821_v3  ;;  %v1352_v45 = vadd.f32 %v1256_v34, %v1156_v7  ;;  %v1838_v46 = vmul.f32 %v3074_v19, %v3284_v54  ;;  %v1937_v48 = vmul.f32 %v3076_v20, %v3323_v50 }
  0xb2   :  { %v2433_v49 = vsel %vm2403_vm1, %v2430_v14, %v2432_v41  ;;  %v1353_v32 = vadd.f32 %v1257_v36, %v1157_v27  ;;  %v1938_v47 = vmul.f32 %v3076_v20, %v3336_v1  ;;  %v2133_v9 = vmul.f32 %v3097_v35, %v3375_v59 }
  0xb3   :  { %v2639_v39 = vadd.f32 %v2433_v49, %v1762_v43  ;;  %v1557_v52 = vrot.slane %v1352_v45, 1  ;;  %v2033_v53 = vadd.f32 %v1937_v48, %v1837_v42  ;;  %v2134_v55 = vmul.f32 %v3097_v35, %v3388_v26 }
  0xb4   :  { %v1558_v57 = vrot.slane %v1353_v32, 1  ;;  %v2034_v58 = vadd.f32 %v1938_v47, %v1838_v46  ;;  %v559_v44 = vmul.f32 %v3056_v10, %v3284_v54  ;;  %v627_v61 = vmul.f32 %v3058_v11, %v3336_v1 }
  0xb5   :  { %v2709_v62 = vadd.f32 %v3121_v5, %v2639_v39  ;;  %v2229_v63 = vadd.f32 %v2133_v9, %v2033_v53  ;;  %v759_v14 = vmul.f32 %v3070_v17, %v3388_v26  ;;  %v962_v3 = vmul.f32 %v3060_v12, %v273_v51 }
  0xb6   :  { %v1559_v0 = vsel %vm1526_vm0, %v1557_v52, %v1558_v57  ;;  %v2230_v4 = vadd.f32 %v2134_v55, %v2034_v58  ;;  %v691_v6 = vadd.f32 %v627_v61, %v559_v44  ;;  %v1062_v60 = vmul.f32 %v3062_v13, %v369_v56 }
  0xb7   :  { %2773 = vst [vmem:[#allocation8 + $0x58] sm:$0xff] %v2709_v62  ;;  %v1763_v54 = vadd.f32 %v1559_v0, %v822_v38  ;;  %v2434_v21 = vrot.slane %v2229_v63, 2  ;;  %v1258_v22 = vmul.f32 %v3072_v18, %v466_v15  ;;  %v1839_v23 = vmul.f32 %v3074_v19, %v273_v51  ;;  %v3440_v38 = vld [vmem:[#allocation2 + $0xe0] sm:$0xff]  ;;  %v276_v62 = vld [vmem:[#allocation2 + $0xb8] sm:$0x3] }
  0xb8   :  { %v2435_v25 = vrot.slane %v2230_v4, 2  ;;  %v823_v16 = vadd.f32 %v759_v14, %v691_v6  ;;  %v1158_v24 = vadd.f32 %v1062_v60, %v962_v3  ;;  %v1939_v28 = vmul.f32 %v3076_v20, %v369_v56  ;;  %v372_v0 = vld [vmem:[#allocation2 + $0xd0] sm:$0x3]  ;;  %v469_v60 = vld [vmem:[#allocation2 + $0xe8] sm:$0x3] }
  0xb9   :  { %v2135_v29 = vmul.f32 %v3097_v35, %v466_v15  ;;  %v560_v2 = vmul.f32 %v3056_v10, %v3323_v50  ;;  %v628_v30 = vmul.f32 %v3058_v11, %v3375_v59  ;;  %v760_v31 = vmul.f32 %v3070_v17, %v3427_v8 }
  0xba   :  { %v2436_v33 = vsel %vm2403_vm1, %v2434_v21, %v2435_v25  ;;  %v1354_v34 = vadd.f32 %v1258_v22, %v1158_v24  ;;  %v2035_v37 = vadd.f32 %v1939_v28, %v1839_v23  ;;  %v963_v7 = vmul.f32 %v3060_v12, %v3323_v50 }
  0xbb   :  { %v2640_v36 = vadd.f32 %v2436_v33, %v1763_v54  ;;  %v692_v40 = vadd.f32 %v628_v30, %v560_v2  ;;  %v964_v41 = vmul.f32 %v3060_v12, %v3336_v1  ;;  %v1063_v27 = vmul.f32 %v3062_v13, %v3375_v59  ;;  %v3479_v30 = vld [vmem:[#allocation2 + $0xf0] sm:$0xff] }
  0xbc   :  { %v1560_v42 = vrot.slane %v1354_v34, 1  ;;  %v2231_v43 = vadd.f32 %v2135_v29, %v2035_v37  ;;  %v1064_v45 = vmul.f32 %v3062_v13, %v3388_v26  ;;  %v1259_v46 = vmul.f32 %v3072_v18, %v3427_v8 }
  0xbd   :  { %v2710_v48 = vadd.f32 %v3121_v5, %v2640_v36  ;;  %v824_v49 = vadd.f32 %v760_v31, %v692_v40  ;;  %v1159_v32 = vadd.f32 %v1063_v27, %v963_v7  ;;  %v1260_v47 = vmul.f32 %v3072_v18, %v3440_v38 }
  0xbe   :  { %v1561_v9 = vsel %vm1526_vm0, %v1558_v57, %v1560_v42  ;;  %v2437_v51 = vrot.slane %v2231_v43, 2  ;;  %v1160_v39 = vadd.f32 %v1064_v45, %v964_v41  ;;  %v1840_v52 = vmul.f32 %v3074_v19, %v3323_v50 }
  0xbf   :  { %2774 = vst [vmem:[#allocation8 + $0x60] sm:$0xff] %v2710_v48  ;;  %v1764_v53 = vadd.f32 %v1561_v9, %v823_v16  ;;  %v1355_v55 = vadd.f32 %v1259_v46, %v1159_v32  ;;  %v1841_v56 = vmul.f32 %v3074_v19, %v3336_v1  ;;  %v1940_v58 = vmul.f32 %v3076_v20, %v3375_v59 }
  0xc0   :  { %v2438_v15 = vsel %vm2403_vm1, %v2435_v25, %v2437_v51  ;;  %v1356_v44 = vadd.f32 %v1260_v47, %v1160_v39  ;;  %v1941_v57 = vmul.f32 %v3076_v20, %v3388_v26  ;;  %v2136_v61 = vmul.f32 %v3097_v35, %v3427_v8 }
  0xc1   :  { %v2641_v50 = vadd.f32 %v2438_v15, %v1764_v53  ;;  %v1562_v63 = vrot.slane %v1355_v55, 1  ;;  %v2036_v14 = vadd.f32 %v1940_v58, %v1840_v52  ;;  %v2137_v3 = vmul.f32 %v3097_v35, %v3440_v38 }
  0xc2   :  { %v1563_v4 = vrot.slane %v1356_v44, 1  ;;  %v2037_v6 = vadd.f32 %v1941_v57, %v1841_v56  ;;  %v561_v54 = vmul.f32 %v3056_v10, %v3336_v1  ;;  %v629_v21 = vmul.f32 %v3058_v11, %v3388_v26 }
  0xc3   :  { %v2711_v22 = vadd.f32 %v3121_v5, %v2641_v50  ;;  %v2232_v23 = vadd.f32 %v2136_v61, %v2036_v14  ;;  %v761_v25 = vmul.f32 %v3070_v17, %v3440_v38  ;;  %v965_v16 = vmul.f32 %v3060_v12, %v276_v62 }
  0xc4   :  { %v1564_v24 = vsel %vm1526_vm0, %v1562_v63, %v1563_v4  ;;  %v2233_v28 = vadd.f32 %v2137_v3, %v2037_v6  ;;  %v693_v29 = vadd.f32 %v629_v21, %v561_v54  ;;  %v1065_v2 = vmul.f32 %v3062_v13, %v372_v0 }
  0xc5   :  { %2775 = vst [vmem:[#allocation8 + $0x68] sm:$0xff] %v2711_v22  ;;  %v1765_v1 = vadd.f32 %v1564_v24, %v824_v49  ;;  %v2439_v31 = vrot.slane %v2232_v23, 2  ;;  %v1261_v33 = vmul.f32 %v3072_v18, %v469_v60  ;;  %v1842_v34 = vmul.f32 %v3074_v19, %v276_v62  ;;  %v3492_v49 = vld [vmem:[#allocation2 + $0xf8] sm:$0xff]  ;;  %v279_v22 = vld [vmem:[#allocation2 + $0xd0] sm:$0x3] }
  0xc6   :  { %v2440_v37 = vrot.slane %v2233_v28, 2  ;;  %v825_v7 = vadd.f32 %v761_v25, %v693_v29  ;;  %v1161_v36 = vadd.f32 %v1065_v2, %v965_v16  ;;  %v1942_v40 = vmul.f32 %v3076_v20, %v372_v0  ;;  %v375_v24 = vld [vmem:[#allocation2 + $0xe8] sm:$0x3]  ;;  %v472_v2 = vld [vmem:[#allocation2 + $0x100] sm:$0x3] }
  0xc7   :  { %v2138_v41 = vmul.f32 %v3097_v35, %v469_v60  ;;  %v562_v27 = vmul.f32 %v3056_v10, %v3375_v59  ;;  %v630_v42 = vmul.f32 %v3058_v11, %v3427_v8  ;;  %v762_v43 = vmul.f32 %v3070_v17, %v3479_v30 }
  0xc8   :  { %v2441_v45 = vsel %vm2403_vm1, %v2439_v31, %v2440_v37  ;;  %v1357_v46 = vadd.f32 %v1261_v33, %v1161_v36  ;;  %v2038_v48 = vadd.f32 %v1942_v40, %v1842_v34  ;;  %v966_v32 = vmul.f32 %v3060_v12, %v3375_v59 }
  0xc9   :  { %v2642_v47 = vadd.f32 %v2441_v45, %v1765_v1  ;;  %v694_v9 = vadd.f32 %v630_v42, %v562_v27  ;;  %v967_v51 = vmul.f32 %v3060_v12, %v3388_v26  ;;  %v1066_v39 = vmul.f32 %v3062_v13, %v3427_v8  ;;  %v3531_v42 = vld [vmem:[#allocation2 + $0x108] sm:$0xff] }
  0xca   :  { %v1565_v52 = vrot.slane %v1357_v46, 1  ;;  %v2234_v53 = vadd.f32 %v2138_v41, %v2038_v48  ;;  %v1067_v55 = vmul.f32 %v3062_v13, %v3440_v38  ;;  %v1262_v56 = vmul.f32 %v3072_v18, %v3479_v30 }
  0xcb   :  { %v2712_v58 = vadd.f32 %v3121_v5, %v2642_v47  ;;  %v826_v15 = vadd.f32 %v762_v43, %v694_v9  ;;  %v1162_v44 = vadd.f32 %v1066_v39, %v966_v32  ;;  %v1263_v57 = vmul.f32 %v3072_v18, %v3492_v49 }
  0xcc   :  { %v1566_v61 = vsel %vm1526_vm0, %v1563_v4, %v1565_v52  ;;  %v2442_v62 = vrot.slane %v2234_v53, 2  ;;  %v1163_v50 = vadd.f32 %v1067_v55, %v967_v51  ;;  %v1843_v63 = vmul.f32 %v3074_v19, %v3375_v59 }
  0xcd   :  { %2776 = vst [vmem:[#allocation8 + $0x70] sm:$0xff] %v2712_v58  ;;  %v1766_v14 = vadd.f32 %v1566_v61, %v825_v7  ;;  %v1358_v3 = vadd.f32 %v1262_v56, %v1162_v44  ;;  %v1844_v0 = vmul.f32 %v3074_v19, %v3388_v26  ;;  %v1943_v6 = vmul.f32 %v3076_v20, %v3427_v8  ;;  %v3544_v58 = vld [vmem:[#allocation2 + $0x110] sm:$0xff] }
  0xce   :  { %v2443_v60 = vsel %vm2403_vm1, %v2440_v37, %v2442_v62  ;;  %v1359_v54 = vadd.f32 %v1263_v57, %v1163_v50  ;;  %v1944_v4 = vmul.f32 %v3076_v20, %v3440_v38  ;;  %v2139_v21 = vmul.f32 %v3097_v35, %v3479_v30 }
  0xcf   :  { %v2643_v59 = vadd.f32 %v2443_v60, %v1766_v14  ;;  %v1567_v23 = vrot.slane %v1358_v3, 1  ;;  %v2039_v25 = vadd.f32 %v1943_v6, %v1843_v63  ;;  %v2140_v16 = vmul.f32 %v3097_v35, %v3492_v49 }
  0xd0   :  { %v1568_v28 = vrot.slane %v1359_v54, 1  ;;  %v2040_v29 = vadd.f32 %v1944_v4, %v1844_v0  ;;  %v563_v1 = vmul.f32 %v3056_v10, %v3388_v26  ;;  %v631_v31 = vmul.f32 %v3058_v11, %v3440_v38  ;;  %v3559_v0 = vld [vmem:[%s4745_s2] ss:$0 sm:$0xff] }
  0xd1   :  { %v2713_v33 = vadd.f32 %v3121_v5, %v2643_v59  ;;  %v2235_v34 = vadd.f32 %v2139_v21, %v2039_v25  ;;  %v763_v37 = vmul.f32 %v3070_v17, %v3492_v49  ;;  %v968_v7 = vmul.f32 %v3060_v12, %v279_v22 }
  0xd2   :  { %v1569_v36 = vsel %vm1526_vm0, %v1567_v23, %v1568_v28  ;;  %v2236_v40 = vadd.f32 %v2140_v16, %v2040_v29  ;;  %v695_v41 = vadd.f32 %v631_v31, %v563_v1  ;;  %v1068_v27 = vmul.f32 %v3062_v13, %v375_v24 }
  0xd3   :  { %2777 = vst [vmem:[#allocation8 + $0x78] sm:$0xff] %v2713_v33  ;;  %v1767_v26 = vadd.f32 %v1569_v36, %v826_v15  ;;  %v2444_v43 = vrot.slane %v2235_v34, 2  ;;  %v1264_v45 = vmul.f32 %v3072_v18, %v472_v2  ;;  %v1845_v5 = vmul.f32 %v3074_v19, %v279_v22  ;;  %v282_v33 = vld [vmem:[#allocation2 + $0xe8] sm:$0x3]  ;;  %v378_v36 = vld [vmem:[#allocation2 + $0x100] sm:$0x3] }
  0xd4   :  { %v2445_v46 = vrot.slane %v2236_v40, 2  ;;  %v827_v48 = vadd.f32 %v763_v37, %v695_v41  ;;  %v1164_v32 = vadd.f32 %v1068_v27, %v968_v7  ;;  %v1945_v47 = vmul.f32 %v3076_v20, %v375_v24  ;;  %v475_v27 = vld [vmem:[#allocation2 + $0x118] sm:$0x3] }
  0xd5   :  { %v2141_v9 = vmul.f32 %v3097_v35, %v472_v2  ;;  %v564_v51 = vmul.f32 %v3056_v10, %v3427_v8  ;;  %v632_v39 = vmul.f32 %v3058_v11, %v3479_v30  ;;  %v764_v52 = vmul.f32 %v3070_v17, %v3531_v42 }
  0xd6   :  { %v2446_v53 = vsel %vm2403_vm1, %v2444_v43, %v2445_v46  ;;  %v1360_v55 = vadd.f32 %v1264_v45, %v1164_v32  ;;  %v2041_v56 = vadd.f32 %v1945_v47, %v1845_v5  ;;  %v969_v15 = vmul.f32 %v3060_v12, %v3427_v8 }
  0xd7   :  { %v2644_v44 = vadd.f32 %v2446_v53, %v1767_v26  ;;  %v696_v57 = vadd.f32 %v632_v39, %v564_v51  ;;  %v970_v61 = vmul.f32 %v3060_v12, %v3440_v38  ;;  %v1069_v62 = vmul.f32 %v3062_v13, %v3479_v30  ;;  %v3588_v39 = vld [vmem:[#allocation2 + $0x120] sm:$0xff] }
  0xd8   :  { %v1570_v50 = vrot.slane %v1360_v55, 1  ;;  %v2237_v63 = vadd.f32 %v2141_v9, %v2041_v56  ;;  %v1070_v14 = vmul.f32 %v3062_v13, %v3492_v49  ;;  %v1265_v3 = vmul.f32 %v3072_v18, %v3531_v42 }
  0xd9   :  { %v2714_v6 = vadd.f32 %v3559_v0, %v2644_v44  ;;  %v828_v60 = vadd.f32 %v764_v52, %v696_v57  ;;  %v1165_v54 = vadd.f32 %v1069_v62, %v969_v15  ;;  %v1266_v4 = vmul.f32 %v3072_v18, %v3544_v58 }
  0xda   :  { %v1571_v21 = vsel %vm1526_vm0, %v1568_v28, %v1570_v50  ;;  %v2447_v22 = vrot.slane %v2237_v63, 2  ;;  %v1166_v59 = vadd.f32 %v1070_v14, %v970_v61  ;;  %v1846_v23 = vmul.f32 %v3074_v19, %v3427_v8 }
  0xdb   :  { %2778 = vst [vmem:[#allocation8 + $0x80] sm:$0xff] %v2714_v6  ;;  %v1768_v25 = vadd.f32 %v1571_v21, %v827_v48  ;;  %v1361_v16 = vadd.f32 %v1265_v3, %v1165_v54  ;;  %v1847_v24 = vmul.f32 %v3074_v19, %v3440_v38  ;;  %v1946_v29 = vmul.f32 %v3076_v20, %v3479_v30 }
  0xdc   :  { %v2448_v2 = vsel %vm2403_vm1, %v2445_v46, %v2447_v22  ;;  %v1362_v1 = vadd.f32 %v1266_v4, %v1166_v59  ;;  %v1947_v28 = vmul.f32 %v3076_v20, %v3492_v49  ;;  %v2142_v31 = vmul.f32 %v3097_v35, %v3531_v42 }
  0xdd   :  { %v2645_v8 = vadd.f32 %v2448_v2, %v1768_v25  ;;  %v1572_v34 = vrot.slane %v1361_v16, 1  ;;  %v2042_v37 = vadd.f32 %v1946_v29, %v1846_v23  ;;  %v2143_v7 = vmul.f32 %v3097_v35, %v3544_v58 }
  0xde   :  { %v1573_v40 = vrot.slane %v1362_v1, 1  ;;  %v2043_v41 = vadd.f32 %v1947_v28, %v1847_v24  ;;  %v565_v26 = vmul.f32 %v3056_v10, %v3440_v38  ;;  %v633_v43 = vmul.f32 %v3058_v11, %v3492_v49 }
  0xdf   :  { %v2715_v45 = vadd.f32 %v3559_v0, %v2645_v8  ;;  %v2238_v5 = vadd.f32 %v2142_v31, %v2042_v37  ;;  %v765_v46 = vmul.f32 %v3070_v17, %v3544_v58  ;;  %v971_v48 = vmul.f32 %v3060_v12, %v282_v33 }
  0xe0   :  { %v1574_v32 = vsel %vm1526_vm0, %v1572_v34, %v1573_v40  ;;  %v2239_v47 = vadd.f32 %v2143_v7, %v2043_v41  ;;  %v697_v9 = vadd.f32 %v633_v43, %v565_v26  ;;  %v1071_v51 = vmul.f32 %v3062_v13, %v378_v36 }
  0xe1   :  { %2779 = vst [vmem:[#allocation8 + $0x88] sm:$0xff] %v2715_v45  ;;  %v1769_v38 = vadd.f32 %v1574_v32, %v828_v60  ;;  %v2449_v52 = vrot.slane %v2238_v5, 2  ;;  %v1267_v53 = vmul.f32 %v3072_v18, %v475_v27  ;;  %v1848_v55 = vmul.f32 %v3074_v19, %v282_v33  ;;  %v3601_v60 = vld [vmem:[#allocation2 + $0x128] sm:$0xff]  ;;  %v285_v45 = vld [vmem:[#allocation2 + $0x100] sm:$0x3] }
  0xe2   :  { %v2450_v56 = vrot.slane %v2239_v47, 2  ;;  %v829_v15 = vadd.f32 %v765_v46, %v697_v9  ;;  %v1167_v44 = vadd.f32 %v1071_v51, %v971_v48  ;;  %v1948_v57 = vmul.f32 %v3076_v20, %v378_v36  ;;  %v381_v32 = vld [vmem:[#allocation2 + $0x118] sm:$0x3]  ;;  %v478_v51 = vld [vmem:[#allocation2 + $0x130] sm:$0x3] }
  0xe3   :  { %v2144_v61 = vmul.f32 %v3097_v35, %v475_v27  ;;  %v566_v62 = vmul.f32 %v3056_v10, %v3479_v30  ;;  %v634_v50 = vmul.f32 %v3058_v11, %v3531_v42  ;;  %v766_v63 = vmul.f32 %v3070_v17, %v3588_v39 }
  0xe4   :  { %v2451_v14 = vsel %vm2403_vm1, %v2449_v52, %v2450_v56  ;;  %v1363_v3 = vadd.f32 %v1267_v53, %v1167_v44  ;;  %v2044_v6 = vadd.f32 %v1948_v57, %v1848_v55  ;;  %v972_v54 = vmul.f32 %v3060_v12, %v3479_v30 }
  0xe5   :  { %v2646_v4 = vadd.f32 %v2451_v14, %v1769_v38  ;;  %v698_v21 = vadd.f32 %v634_v50, %v566_v62  ;;  %v973_v22 = vmul.f32 %v3060_v12, %v3492_v49  ;;  %v1072_v59 = vmul.f32 %v3062_v13, %v3531_v42  ;;  %v3640_v50 = vld [vmem:[#allocation2 + $0x138] sm:$0xff] }
  0xe6   :  { %v1575_v23 = vrot.slane %v1363_v3, 1  ;;  %v2240_v25 = vadd.f32 %v2144_v61, %v2044_v6  ;;  %v1073_v16 = vmul.f32 %v3062_v13, %v3544_v58  ;;  %v1268_v24 = vmul.f32 %v3072_v18, %v3588_v39 }
  0xe7   :  { %v2716_v29 = vadd.f32 %v3559_v0, %v2646_v4  ;;  %v830_v2 = vadd.f32 %v766_v63, %v698_v21  ;;  %v1168_v1 = vadd.f32 %v1072_v59, %v972_v54  ;;  %v1269_v28 = vmul.f32 %v3072_v18, %v3601_v60 }
  0xe8   :  { %v1576_v31 = vsel %vm1526_vm0, %v1573_v40, %v1575_v23  ;;  %v2452_v33 = vrot.slane %v2240_v25, 2  ;;  %v1169_v8 = vadd.f32 %v1073_v16, %v973_v22  ;;  %v1849_v34 = vmul.f32 %v3074_v19, %v3479_v30 }
  0xe9   :  { %2780 = vst [vmem:[#allocation8 + $0x90] sm:$0xff] %v2716_v29  ;;  %v1770_v37 = vadd.f32 %v1576_v31, %v829_v15  ;;  %v1364_v7 = vadd.f32 %v1268_v24, %v1168_v1  ;;  %v1850_v36 = vmul.f32 %v3074_v19, %v3492_v49  ;;  %v1949_v41 = vmul.f32 %v3076_v20, %v3531_v42 }
  0xea   :  { %v2453_v27 = vsel %vm2403_vm1, %v2450_v56, %v2452_v33  ;;  %v1365_v26 = vadd.f32 %v1269_v28, %v1169_v8  ;;  %v1950_v40 = vmul.f32 %v3076_v20, %v3544_v58  ;;  %v2145_v43 = vmul.f32 %v3097_v35, %v3588_v39 }
  0xeb   :  { %v2647_v30 = vadd.f32 %v2453_v27, %v1770_v37  ;;  %v1577_v5 = vrot.slane %v1364_v7, 1  ;;  %v2045_v46 = vadd.f32 %v1949_v41, %v1849_v34  ;;  %v2146_v48 = vmul.f32 %v3097_v35, %v3601_v60 }
  0xec   :  { %v1578_v47 = vrot.slane %v1365_v26, 1  ;;  %v2046_v9 = vadd.f32 %v1950_v40, %v1850_v36  ;;  %v567_v38 = vmul.f32 %v3056_v10, %v3492_v49  ;;  %v635_v52 = vmul.f32 %v3058_v11, %v3544_v58 }
  0xed   :  { %v2717_v53 = vadd.f32 %v3559_v0, %v2647_v30  ;;  %v2241_v55 = vadd.f32 %v2145_v43, %v2045_v46  ;;  %v767_v56 = vmul.f32 %v3070_v17, %v3601_v60  ;;  %v974_v15 = vmul.f32 %v3060_v12, %v285_v45 }
  0xee   :  { %v1579_v44 = vsel %vm1526_vm0, %v1577_v5, %v1578_v47  ;;  %v2242_v57 = vadd.f32 %v2146_v48, %v2046_v9  ;;  %v699_v61 = vadd.f32 %v635_v52, %v567_v38  ;;  %v1074_v62 = vmul.f32 %v3062_v13, %v381_v32 }
  0xef   :  { %2781 = vst [vmem:[#allocation8 + $0x98] sm:$0xff] %v2717_v53  ;;  %v1771_v49 = vadd.f32 %v1579_v44, %v830_v2  ;;  %v2454_v63 = vrot.slane %v2241_v55, 2  ;;  %v1270_v14 = vmul.f32 %v3072_v18, %v478_v51  ;;  %v1851_v3 = vmul.f32 %v3074_v19, %v285_v45  ;;  %v3653_v2 = vld [vmem:[#allocation2 + $0x140] sm:$0xff]  ;;  %v288_v53 = vld [vmem:[#allocation2 + $0x118] sm:$0x3] }
  0xf0   :  { %v2455_v6 = vrot.slane %v2242_v57, 2  ;;  %v831_v54 = vadd.f32 %v767_v56, %v699_v61  ;;  %v1170_v4 = vadd.f32 %v1074_v62, %v974_v15  ;;  %v1951_v21 = vmul.f32 %v3076_v20, %v381_v32  ;;  %v384_v44 = vld [vmem:[#allocation2 + $0x130] sm:$0x3]  ;;  %v481_v62 = vld [vmem:[#allocation2 + $0x148] sm:$0x3] }
  0xf1   :  { %v2147_v22 = vmul.f32 %v3097_v35, %v478_v51  ;;  %v568_v59 = vmul.f32 %v3056_v10, %v3531_v42  ;;  %v636_v23 = vmul.f32 %v3058_v11, %v3588_v39  ;;  %v768_v25 = vmul.f32 %v3070_v17, %v3640_v50 }
  0xf2   :  { %v2456_v16 = vsel %vm2403_vm1, %v2454_v63, %v2455_v6  ;;  %v1366_v24 = vadd.f32 %v1270_v14, %v1170_v4  ;;  %v2047_v29 = vadd.f32 %v1951_v21, %v1851_v3  ;;  %v975_v1 = vmul.f32 %v3060_v12, %v3531_v42 }
  0xf3   :  { %v2648_v28 = vadd.f32 %v2456_v16, %v1771_v49  ;;  %v700_v31 = vadd.f32 %v636_v23, %v568_v59  ;;  %v976_v33 = vmul.f32 %v3060_v12, %v3544_v58  ;;  %v1075_v8 = vmul.f32 %v3062_v13, %v3588_v39  ;;  %v3692_v23 = vld [vmem:[#allocation2 + $0x150] sm:$0xff] }
  0xf4   :  { %v1580_v34 = vrot.slane %v1366_v24, 1  ;;  %v2243_v37 = vadd.f32 %v2147_v22, %v2047_v29  ;;  %v1076_v7 = vmul.f32 %v3062_v13, %v3601_v60  ;;  %v1271_v36 = vmul.f32 %v3072_v18, %v3640_v50 }
  0xf5   :  { %v2718_v41 = vadd.f32 %v3559_v0, %v2648_v28  ;;  %v832_v27 = vadd.f32 %v768_v25, %v700_v31  ;;  %v1171_v26 = vadd.f32 %v1075_v8, %v975_v1  ;;  %v1272_v40 = vmul.f32 %v3072_v18, %v3653_v2 }
  0xf6   :  { %v1581_v43 = vsel %vm1526_vm0, %v1578_v47, %v1580_v34  ;;  %v2457_v45 = vrot.slane %v2243_v37, 2  ;;  %v1172_v30 = vadd.f32 %v1076_v7, %v976_v33  ;;  %v1852_v5 = vmul.f32 %v3074_v19, %v3531_v42 }
  0xf7   :  { %2782 = vst [vmem:[#allocation8 + $0xa0] sm:$0xff] %v2718_v41  ;;  %v1772_v46 = vadd.f32 %v1581_v43, %v831_v54  ;;  %v1367_v48 = vadd.f32 %v1271_v36, %v1171_v26  ;;  %v1853_v32 = vmul.f32 %v3074_v19, %v3544_v58  ;;  %v1952_v9 = vmul.f32 %v3076_v20, %v3588_v39 }
  0xf8   :  { %v2458_v51 = vsel %vm2403_vm1, %v2455_v6, %v2457_v45  ;;  %v1368_v38 = vadd.f32 %v1272_v40, %v1172_v30  ;;  %v1953_v47 = vmul.f32 %v3076_v20, %v3601_v60  ;;  %v2148_v52 = vmul.f32 %v3097_v35, %v3640_v50 }
  0xf9   :  { %v2649_v42 = vadd.f32 %v2458_v51, %v1772_v46  ;;  %v1582_v55 = vrot.slane %v1367_v48, 1  ;;  %v2048_v56 = vadd.f32 %v1952_v9, %v1852_v5  ;;  %v2149_v15 = vmul.f32 %v3097_v35, %v3653_v2 }
  0xfa   :  { %v1583_v57 = vrot.slane %v1368_v38, 1  ;;  %v2049_v61 = vadd.f32 %v1953_v47, %v1853_v32  ;;  %v569_v49 = vmul.f32 %v3056_v10, %v3544_v58  ;;  %v637_v63 = vmul.f32 %v3058_v11, %v3601_v60 }
  0xfb   :  { %v2719_v14 = vadd.f32 %v3559_v0, %v2649_v42  ;;  %v2244_v3 = vadd.f32 %v2148_v52, %v2048_v56  ;;  %v769_v6 = vmul.f32 %v3070_v17, %v3653_v2  ;;  %v977_v54 = vmul.f32 %v3060_v12, %v288_v53 }
  0xfc   :  { %v1584_v4 = vsel %vm1526_vm0, %v1582_v55, %v1583_v57  ;;  %v2245_v21 = vadd.f32 %v2149_v15, %v2049_v61  ;;  %v701_v22 = vadd.f32 %v637_v63, %v569_v49  ;;  %v1077_v59 = vmul.f32 %v3062_v13, %v384_v44 }
  0xfd   :  { %2783 = vst [vmem:[#allocation8 + $0xa8] sm:$0xff] %v2719_v14  ;;  %v1773_v58 = vadd.f32 %v1584_v4, %v832_v27  ;;  %v2459_v25 = vrot.slane %v2244_v3, 2  ;;  %v1273_v16 = vmul.f32 %v3072_v18, %v481_v62  ;;  %v1854_v24 = vmul.f32 %v3074_v19, %v288_v53  ;;  %v3705_v27 = vld [vmem:[#allocation2 + $0x158] sm:$0xff]  ;;  %v291_v14 = vld [vmem:[#allocation2 + $0x130] sm:$0x3] }
  0xfe   :  { %v2460_v29 = vrot.slane %v2245_v21, 2  ;;  %v833_v1 = vadd.f32 %v769_v6, %v701_v22  ;;  %v1173_v28 = vadd.f32 %v1077_v59, %v977_v54  ;;  %v1954_v31 = vmul.f32 %v3076_v20, %v384_v44  ;;  %v387_v4 = vld [vmem:[#allocation2 + $0x148] sm:$0x3]  ;;  %v484_v59 = vld [vmem:[#allocation2 + $0x160] sm:$0x3] }
  0xff   :  { %v2150_v33 = vmul.f32 %v3097_v35, %v481_v62  ;;  %v570_v8 = vmul.f32 %v3056_v10, %v3588_v39  ;;  %v638_v34 = vmul.f32 %v3058_v11, %v3640_v50  ;;  %v770_v37 = vmul.f32 %v3070_v17, %v3692_v23 }
 0x100   :  { %v2461_v7 = vsel %vm2403_vm1, %v2459_v25, %v2460_v29  ;;  %v1369_v36 = vadd.f32 %v1273_v16, %v1173_v28  ;;  %v2050_v41 = vadd.f32 %v1954_v31, %v1854_v24  ;;  %v978_v26 = vmul.f32 %v3060_v12, %v3588_v39 }
 0x101   :  { %v2650_v40 = vadd.f32 %v2461_v7, %v1773_v58  ;;  %v702_v43 = vadd.f32 %v638_v34, %v570_v8  ;;  %v979_v45 = vmul.f32 %v3060_v12, %v3601_v60  ;;  %v1078_v30 = vmul.f32 %v3062_v13, %v3640_v50  ;;  %v3744_v34 = vld [vmem:[#allocation2 + $0x168] sm:$0xff] }
 0x102   :  { %v1585_v5 = vrot.slane %v1369_v36, 1  ;;  %v2246_v46 = vadd.f32 %v2150_v33, %v2050_v41  ;;  %v1079_v48 = vmul.f32 %v3062_v13, %v3653_v2  ;;  %v1274_v32 = vmul.f32 %v3072_v18, %v3692_v23 }
 0x103   :  { %v2720_v9 = vadd.f32 %v3559_v0, %v2650_v40  ;;  %v834_v51 = vadd.f32 %v770_v37, %v702_v43  ;;  %v1174_v38 = vadd.f32 %v1078_v30, %v978_v26  ;;  %v1275_v47 = vmul.f32 %v3072_v18, %v3705_v27 }
 0x104   :  { %v1586_v52 = vsel %vm1526_vm0, %v1583_v57, %v1585_v5  ;;  %v2462_v53 = vrot.slane %v2246_v46, 2  ;;  %v1175_v42 = vadd.f32 %v1079_v48, %v979_v45  ;;  %v1855_v55 = vmul.f32 %v3074_v19, %v3588_v39 }
 0x105   :  { %2784 = vst [vmem:[#allocation8 + $0xb0] sm:$0xff] %v2720_v9  ;;  %v1774_v56 = vadd.f32 %v1586_v52, %v833_v1  ;;  %v1370_v15 = vadd.f32 %v1274_v32, %v1174_v38  ;;  %v1856_v44 = vmul.f32 %v3074_v19, %v3601_v60  ;;  %v1955_v61 = vmul.f32 %v3076_v20, %v3640_v50 }
 0x106   :  { %v2463_v62 = vsel %vm2403_vm1, %v2460_v29, %v2462_v53  ;;  %v1371_v49 = vadd.f32 %v1275_v47, %v1175_v42  ;;  %v1956_v57 = vmul.f32 %v3076_v20, %v3653_v2  ;;  %v2151_v63 = vmul.f32 %v3097_v35, %v3692_v23 }
 0x107   :  { %v2651_v39 = vadd.f32 %v2463_v62, %v1774_v56  ;;  %v1587_v3 = vrot.slane %v1370_v15, 1  ;;  %v2051_v6 = vadd.f32 %v1955_v61, %v1855_v55  ;;  %v2152_v54 = vmul.f32 %v3097_v35, %v3705_v27 }
 0x108   :  { %v1588_v21 = vrot.slane %v1371_v49, 1  ;;  %v2052_v22 = vadd.f32 %v1956_v57, %v1856_v44  ;;  %v571_v58 = vmul.f32 %v3056_v10, %v3601_v60  ;;  %v639_v25 = vmul.f32 %v3058_v11, %v3653_v2 }
 0x109   :  { %v2721_v16 = vadd.f32 %v3559_v0, %v2651_v39  ;;  %v2247_v24 = vadd.f32 %v2151_v63, %v2051_v6  ;;  %v771_v29 = vmul.f32 %v3070_v17, %v3705_v27  ;;  %v980_v1 = vmul.f32 %v3060_v12, %v291_v14 }
 0x10a   :  { %v1589_v28 = vsel %vm1526_vm0, %v1587_v3, %v1588_v21  ;;  %v2248_v31 = vadd.f32 %v2152_v54, %v2052_v22  ;;  %v703_v33 = vadd.f32 %v639_v25, %v571_v58  ;;  %v1080_v8 = vmul.f32 %v3062_v13, %v387_v4 }
 0x10b   :  { %2785 = vst [vmem:[#allocation8 + $0xb8] sm:$0xff] %v2721_v16  ;;  %v1775_v60 = vadd.f32 %v1589_v28, %v834_v51  ;;  %v2464_v37 = vrot.slane %v2247_v24, 2  ;;  %v1276_v7 = vmul.f32 %v3072_v18, %v484_v59  ;;  %v1857_v36 = vmul.f32 %v3074_v19, %v291_v14  ;;  %v3757_v51 = vld [vmem:[#allocation2 + $0x170] sm:$0xff]  ;;  %v294_v16 = vld [vmem:[#allocation2 + $0x148] sm:$0x3] }
 0x10c   :  { %v2465_v41 = vrot.slane %v2248_v31, 2  ;;  %v835_v26 = vadd.f32 %v771_v29, %v703_v33  ;;  %v1176_v40 = vadd.f32 %v1080_v8, %v980_v1  ;;  %v1957_v43 = vmul.f32 %v3076_v20, %v387_v4  ;;  %v390_v28 = vld [vmem:[#allocation2 + $0x160] sm:$0x3]  ;;  %v487_v8 = vld [vmem:[#allocation2 + $0x178] sm:$0x3] }
 0x10d   :  { %v2153_v45 = vmul.f32 %v3097_v35, %v484_v59  ;;  %v572_v30 = vmul.f32 %v3056_v10, %v3640_v50  ;;  %v640_v5 = vmul.f32 %v3058_v11, %v3692_v23  ;;  %v772_v46 = vmul.f32 %v3070_v17, %v3744_v34 }
 0x10e   :  { %v2466_v48 = vsel %vm2403_vm1, %v2464_v37, %v2465_v41  ;;  %v1372_v32 = vadd.f32 %v1276_v7, %v1176_v40  ;;  %v2053_v9 = vadd.f32 %v1957_v43, %v1857_v36  ;;  %v981_v38 = vmul.f32 %v3060_v12, %v3640_v50 }
 0x10f   :  { %v2652_v47 = vadd.f32 %v2466_v48, %v1775_v60  ;;  %v704_v52 = vadd.f32 %v640_v5, %v572_v30  ;;  %v982_v53 = vmul.f32 %v3060_v12, %v3653_v2  ;;  %v1081_v42 = vmul.f32 %v3062_v13, %v3692_v23  ;;  %v3796_v5 = vld [vmem:[#allocation2 + $0x180] sm:$0xff] }
 0x110   :  { %v1590_v55 = vrot.slane %v1372_v32, 1  ;;  %v2249_v56 = vadd.f32 %v2153_v45, %v2053_v9  ;;  %v1082_v15 = vmul.f32 %v3062_v13, %v3705_v27  ;;  %v1277_v44 = vmul.f32 %v3072_v18, %v3744_v34 }
 0x111   :  { %v2722_v61 = vadd.f32 %v3559_v0, %v2652_v47  ;;  %v836_v62 = vadd.f32 %v772_v46, %v704_v52  ;;  %v1177_v49 = vadd.f32 %v1081_v42, %v981_v38  ;;  %v1278_v57 = vmul.f32 %v3072_v18, %v3757_v51 }
 0x112   :  { %v1591_v63 = vsel %vm1526_vm0, %v1588_v21, %v1590_v55  ;;  %v2467_v14 = vrot.slane %v2249_v56, 2  ;;  %v1178_v39 = vadd.f32 %v1082_v15, %v982_v53  ;;  %v1858_v3 = vmul.f32 %v3074_v19, %v3640_v50 }
 0x113   :  { %2786 = vst [vmem:[#allocation8 + $0xc0] sm:$0xff] %v2722_v61  ;;  %v1776_v6 = vadd.f32 %v1591_v63, %v835_v26  ;;  %v1373_v54 = vadd.f32 %v1277_v44, %v1177_v49  ;;  %v1859_v4 = vmul.f32 %v3074_v19, %v3653_v2  ;;  %v1958_v22 = vmul.f32 %v3076_v20, %v3692_v23 }
 0x114   :  { %v2468_v59 = vsel %vm2403_vm1, %v2465_v41, %v2467_v14  ;;  %v1374_v58 = vadd.f32 %v1278_v57, %v1178_v39  ;;  %v1959_v21 = vmul.f32 %v3076_v20, %v3705_v27  ;;  %v2154_v25 = vmul.f32 %v3097_v35, %v3744_v34 }
 0x115   :  { %v2653_v50 = vadd.f32 %v2468_v59, %v1776_v6  ;;  %v1592_v24 = vrot.slane %v1373_v54, 1  ;;  %v2054_v29 = vadd.f32 %v1958_v22, %v1858_v3  ;;  %v2155_v1 = vmul.f32 %v3097_v35, %v3757_v51 }
 0x116   :  { %v1593_v31 = vrot.slane %v1374_v58, 1  ;;  %v2055_v33 = vadd.f32 %v1959_v21, %v1859_v4  ;;  %v573_v60 = vmul.f32 %v3056_v10, %v3653_v2  ;;  %v641_v37 = vmul.f32 %v3058_v11, %v3705_v27 }
 0x117   :  { %v2723_v7 = vadd.f32 %v3559_v0, %v2653_v50  ;;  %v2250_v36 = vadd.f32 %v2154_v25, %v2054_v29  ;;  %v773_v41 = vmul.f32 %v3070_v17, %v3757_v51  ;;  %v983_v26 = vmul.f32 %v3060_v12, %v294_v16 }
 0x118   :  { %v1594_v40 = vsel %vm1526_vm0, %v1592_v24, %v1593_v31  ;;  %v2251_v43 = vadd.f32 %v2155_v1, %v2055_v33  ;;  %v705_v45 = vadd.f32 %v641_v37, %v573_v60  ;;  %v1083_v30 = vmul.f32 %v3062_v13, %v390_v28 }
 0x119   :  { %2787 = vst [vmem:[#allocation8 + $0xc8] sm:$0xff] %v2723_v7  ;;  %v1777_v2 = vadd.f32 %v1594_v40, %v836_v62  ;;  %v2469_v46 = vrot.slane %v2250_v36, 2  ;;  %v1279_v48 = vmul.f32 %v3072_v18, %v487_v8  ;;  %v1860_v32 = vmul.f32 %v3074_v19, %v294_v16  ;;  %v3809_v62 = vld [vmem:[#allocation2 + $0x188] sm:$0xff]  ;;  %v297_v7 = vld [vmem:[#allocation2 + $0x160] sm:$0x3] }
 0x11a   :  { %v2470_v9 = vrot.slane %v2251_v43, 2  ;;  %v837_v38 = vadd.f32 %v773_v41, %v705_v45  ;;  %v1179_v47 = vadd.f32 %v1083_v30, %v983_v26  ;;  %v1960_v52 = vmul.f32 %v3076_v20, %v390_v28  ;;  %v393_v40 = vld [vmem:[#allocation2 + $0x178] sm:$0x3]  ;;  %v490_v30 = vld [vmem:[#allocation2 + $0x190] sm:$0x3] }
 0x11b   :  { %v2156_v53 = vmul.f32 %v3097_v35, %v487_v8  ;;  %v574_v42 = vmul.f32 %v3056_v10, %v3692_v23  ;;  %v642_v55 = vmul.f32 %v3058_v11, %v3744_v34  ;;  %v774_v56 = vmul.f32 %v3070_v17, %v3796_v5 }
 0x11c   :  { %v2471_v15 = vsel %vm2403_vm1, %v2469_v46, %v2470_v9  ;;  %v1375_v44 = vadd.f32 %v1279_v48, %v1179_v47  ;;  %v2056_v61 = vadd.f32 %v1960_v52, %v1860_v32  ;;  %v984_v49 = vmul.f32 %v3060_v12, %v3692_v23 }
 0x11d   :  { %v2654_v57 = vadd.f32 %v2471_v15, %v1777_v2  ;;  %v706_v63 = vadd.f32 %v642_v55, %v574_v42  ;;  %v985_v14 = vmul.f32 %v3060_v12, %v3705_v27  ;;  %v1084_v39 = vmul.f32 %v3062_v13, %v3744_v34 }
 0x11e   :  { %v1595_v3 = vrot.slane %v1375_v44, 1  ;;  %v2252_v6 = vadd.f32 %v2156_v53, %v2056_v61  ;;  %v1085_v54 = vmul.f32 %v3062_v13, %v3757_v51  ;;  %v1280_v4 = vmul.f32 %v3072_v18, %v3796_v5 }
 0x11f   :  { %v2724_v22 = vadd.f32 %v3559_v0, %v2654_v57  ;;  %v838_v59 = vadd.f32 %v774_v56, %v706_v63  ;;  %v1180_v58 = vadd.f32 %v1084_v39, %v984_v49  ;;  %v1281_v21 = vmul.f32 %v3072_v18, %v3809_v62 }
 0x120   :  { %v1596_v25 = vsel %vm1526_vm0, %v1593_v31, %v1595_v3  ;;  %v2472_v16 = vrot.slane %v2252_v6, 2  ;;  %v1181_v50 = vadd.f32 %v1085_v54, %v985_v14  ;;  %v1861_v24 = vmul.f32 %v3074_v19, %v3692_v23  ;;  %v3856_v3 = vld [vmem:[#allocation2] sm:$0xff] }
 0x121   :  { %2788 = vst [vmem:[#allocation8 + $0xd0] sm:$0xff] %v2724_v22  ;;  %v1778_v29 = vadd.f32 %v1596_v25, %v837_v38  ;;  %v1376_v1 = vadd.f32 %v1280_v4, %v1180_v58  ;;  %v1862_v28 = vmul.f32 %v3074_v19, %v3705_v27  ;;  %v1961_v33 = vmul.f32 %v3076_v20, %v3744_v34 }
 0x122   :  { %v2473_v8 = vsel %vm2403_vm1, %v2470_v9, %v2472_v16  ;;  %v1377_v60 = vadd.f32 %v1281_v21, %v1181_v50  ;;  %v1962_v31 = vmul.f32 %v3076_v20, %v3757_v51  ;;  %v2157_v37 = vmul.f32 %v3097_v35, %v3796_v5 }
 0x123   :  { %v2655_v23 = vadd.f32 %v2473_v8, %v1778_v29  ;;  %v1597_v36 = vrot.slane %v1376_v1, 1  ;;  %v2057_v41 = vadd.f32 %v1961_v33, %v1861_v24  ;;  %v2158_v26 = vmul.f32 %v3097_v35, %v3809_v62 }
 0x124   :  { %v1598_v43 = vrot.slane %v1377_v60, 1  ;;  %v2058_v45 = vadd.f32 %v1962_v31, %v1862_v28  ;;  %v575_v2 = vmul.f32 %v3056_v10, %v3705_v27  ;;  %v643_v46 = vmul.f32 %v3058_v11, %v3757_v51 }
 0x125   :  { %v2725_v48 = vadd.f32 %v3559_v0, %v2655_v23  ;;  %v2253_v32 = vadd.f32 %v2157_v37, %v2057_v41  ;;  %v775_v9 = vmul.f32 %v3070_v17, %v3809_v62  ;;  %v986_v38 = vmul.f32 %v3060_v12, %v297_v7 }
 0x126   :  { %v1599_v47 = vsel %vm1526_vm0, %v1597_v36, %v1598_v43  ;;  %v2254_v52 = vadd.f32 %v2158_v26, %v2058_v45  ;;  %v707_v53 = vadd.f32 %v643_v46, %v575_v2  ;;  %v1086_v42 = vmul.f32 %v3062_v13, %v393_v40  ;;  %v300_v45 = vld [vmem:[#allocation2 + $0x178] sm:$0x3]  ;;  %v493_v46 = vld [vmem:[#allocation2 + $0x1a8] sm:$0x3] }
 0x127   :  { %2789 = vst [vmem:[#allocation8 + $0xd8] sm:$0xff] %v2725_v48  ;;  %v1779_v55 = vadd.f32 %v1599_v47, %v838_v59  ;;  %v2474_v27 = vrot.slane %v2253_v32, 2  ;;  %v1282_v56 = vmul.f32 %v3072_v18, %v490_v30  ;;  %v1863_v15 = vmul.f32 %v3074_v19, %v297_v7 }
 0x128   :  { %v2475_v44 = vrot.slane %v2254_v52, 2  ;;  %v839_v61 = vadd.f32 %v775_v9, %v707_v53  ;;  %v1182_v49 = vadd.f32 %v1086_v42, %v986_v38  ;;  %v1963_v57 = vmul.f32 %v3076_v20, %v393_v40 }
 0x129   :  { %v2159_v63 = vmul.f32 %v3097_v35, %v490_v30  ;;  %v576_v14 = vmul.f32 %v3056_v10, %v3744_v34  ;;  %v644_v39 = vmul.f32 %v3058_v11, %v3796_v5  ;;  %v776_v6 = vmul.f32 %v3856_v3, %v3070_v17  ;;  %v396_v30 = vld [vmem:[#allocation2 + $0x190] sm:$0x3] }
 0x12a   :  { %v2476_v54 = vsel %vm2403_vm1, %v2474_v27, %v2475_v44  ;;  %v1378_v4 = vadd.f32 %v1282_v56, %v1182_v49  ;;  %v2059_v22 = vadd.f32 %v1963_v57, %v1863_v15  ;;  %v987_v59 = vmul.f32 %v3060_v12, %v3744_v34  ;;  %v3894_v57 = vld [vmem:[#allocation2 + $0x1c8] sm:$0xff] }
 0x12b   :  { %v2656_v58 = vadd.f32 %v2476_v54, %v1779_v55  ;;  %v708_v21 = vadd.f32 %v644_v39, %v576_v14  ;;  %v988_v25 = vmul.f32 %v3060_v12, %v3757_v51  ;;  %v1087_v16 = vmul.f32 %v3062_v13, %v3796_v5 }
 0x12c   :  { %v1600_v50 = vrot.slane %v1378_v4, 1  ;;  %v2255_v24 = vadd.f32 %v2159_v63, %v2059_v22  ;;  %v1088_v29 = vmul.f32 %v3062_v13, %v3809_v62  ;;  %v1283_v1 = vmul.f32 %v3856_v3, %v3072_v18  ;;  %v3896_v63 = vld [vmem:[#allocation2 + $0x1e0] sm:$0xff] }
 0x12d   :  { %v2726_v28 = vadd.f32 %v3559_v0, %v2656_v58  ;;  %v840_v33 = vadd.f32 %v776_v6, %v708_v21  ;;  %v1183_v8 = vadd.f32 %v1087_v16, %v987_v59  ;;  %v1864_v60 = vmul.f32 %v3074_v19, %v3744_v34  ;;  %v3900_v58 = vld [vmem:[#allocation2 + $0x1d0] sm:$0xff] }
 0x12e   :  { %v1601_v31 = vsel %vm1526_vm0, %v1598_v43, %v1600_v50  ;;  %v2477_v37 = vrot.slane %v2255_v24, 2  ;;  %v1184_v7 = vadd.f32 %v1088_v29, %v988_v25  ;;  %v1865_v23 = vmul.f32 %v3074_v19, %v3757_v51  ;;  %v3905_v50 = vld [vmem:[#allocation2 + $0x1e8] sm:$0xff] }
 0x12f   :  { %2790 = vst [vmem:[#allocation8 + $0xe0] sm:$0xff] %v2726_v28  ;;  %v1780_v36 = vadd.f32 %v1601_v31, %v839_v61  ;;  %v1379_v41 = vadd.f32 %v1283_v1, %v1183_v8  ;;  %v1964_v26 = vmul.f32 %v3076_v20, %v3796_v5  ;;  %v1965_v40 = vmul.f32 %v3076_v20, %v3809_v62 }
 0x130   :  { %v2478_v34 = vsel %vm2403_vm1, %v2475_v44, %v2477_v37  ;;  %v1380_v2 = vadd.f32 %v1283_v1, %v1184_v7  ;;  %v2160_v43 = vmul.f32 %v3856_v3, %v3097_v35  ;;  %v577_v48 = vmul.f32 %v3056_v10, %v3757_v51 }
 0x131   :  { %v2657_v32 = vadd.f32 %v2478_v34, %v1780_v36  ;;  %v1602_v9 = vrot.slane %v1379_v41, 1  ;;  %v2060_v38 = vadd.f32 %v1964_v26, %v1864_v60  ;;  %v2061_v47 = vadd.f32 %v1965_v40, %v1865_v23 }
 0x132   :  { %v1603_v5 = vrot.slane %v1380_v2, 1  ;;  %v645_v52 = vmul.f32 %v3058_v11, %v3809_v62  ;;  %v989_v53 = vmul.f32 %v3060_v12, %v300_v45  ;;  %v1089_v42 = vmul.f32 %v3062_v13, %v396_v30 }
 0x133   :  { %v2727_v55 = vadd.f32 %v3559_v0, %v2657_v32  ;;  %v2256_v27 = vadd.f32 %v2160_v43, %v2060_v38  ;;  %v2257_v56 = vadd.f32 %v2160_v43, %v2061_v47  ;;  %v1285_v15 = vmul.f32 %v3072_v18, %v493_v46 }
 0x134   :  { %v1604_v51 = vsel %vm1526_vm0, %v1602_v9, %v1603_v5  ;;  %v709_v44 = vadd.f32 %v645_v52, %v577_v48  ;;  %v1185_v61 = vadd.f32 %v1089_v42, %v989_v53  ;;  %v1866_v49 = vmul.f32 %v3074_v19, %v300_v45  ;;  %v303_v48 = vld [vmem:[#allocation2 + $0x1c0] sm:$0x3] }
 0x135   :  { %2791 = vst [vmem:[#allocation8 + $0xe8] sm:$0xff] %v2727_v55  ;;  %v1781_v62 = vadd.f32 %v1604_v51, %v840_v33  ;;  %v2479_v14 = vrot.slane %v2256_v27, 2  ;;  %v2480_v39 = vrot.slane %v2257_v56, 2  ;;  %v1966_v54 = vmul.f32 %v3076_v20, %v396_v30  ;;  %v496_v55 = vld [vmem:[#allocation2 + $0x1f0] sm:$0x3] }
 0x136   :  { %v841_v4 = vadd.f32 %v776_v6, %v709_v44  ;;  %v1381_v22 = vadd.f32 %v1285_v15, %v1185_v61  ;;  %v2162_v59 = vmul.f32 %v3097_v35, %v493_v46  ;;  %v578_v21 = vmul.f32 %v3856_v3, %v3056_v10 }
 0x137   :  { %v2481_v25 = vsel %vm2403_vm1, %v2479_v14, %v2480_v39  ;;  %v2062_v16 = vadd.f32 %v1966_v54, %v1866_v49  ;;  %v646_v24 = vmul.f32 %v3058_v11, %v3894_v57  ;;  %v778_v29 = vmul.f32 %v3070_v17, %v3896_v63 }
 0x138   :  { %v2658_v6 = vadd.f32 %v2481_v25, %v1781_v62  ;;  %v1605_v1 = vrot.slane %v1381_v22, 1  ;;  %v990_v28 = vmul.f32 %v3856_v3, %v3060_v12  ;;  %v1090_v33 = vmul.f32 %v3062_v13, %v3894_v57  ;;  %v3944_v22 = vld [vmem:[#allocation2 + $0x1f8] sm:$0xff] }
 0x139   :  { %v2258_v8 = vadd.f32 %v2162_v59, %v2062_v16  ;;  %v710_v60 = vadd.f32 %v646_v24, %v578_v21  ;;  %v1091_v31 = vmul.f32 %v3062_v13, %v3900_v58  ;;  %v1286_v37 = vmul.f32 %v3072_v18, %v3896_v63 }
 0x13a   :  { %v2728_v7 = vadd.f32 %v3559_v0, %v2658_v6  ;;  %v1606_v23 = vsel %vm1526_vm0, %v1603_v5, %v1605_v1  ;;  %v1186_v36 = vadd.f32 %v1090_v33, %v990_v28  ;;  %v1287_v41 = vmul.f32 %v3072_v18, %v3905_v50  ;;  %v399_v5 = vld [vmem:[#allocation2 + $0x1d8] sm:$0x3] }
 0x13b   :  { %v1782_v26 = vadd.f32 %v1606_v23, %v841_v4  ;;  %v2482_v40 = vrot.slane %v2258_v8, 2  ;;  %v842_v45 = vadd.f32 %v778_v29, %v710_v60  ;;  %v1187_v30 = vadd.f32 %v1091_v31, %v990_v28  ;;  %v3951_v8 = vld [vmem:[#allocation2 + $0x200] sm:$0xff] }
 0x13c   :  { %2792 = vst [vmem:[#allocation8 + $0xf0] sm:$0xff] %v2728_v7  ;;  %v1382_v34 = vadd.f32 %v1286_v37, %v1186_v36  ;;  %v1867_v2 = vmul.f32 %v3856_v3, %v3074_v19  ;;  %v1967_v43 = vmul.f32 %v3076_v20, %v3894_v57  ;;  %v1968_v46 = vmul.f32 %v3076_v20, %v3900_v58 }
 0x13d   :  { %v2483_v32 = vsel %vm2403_vm1, %v2480_v39, %v2482_v40  ;;  %v1383_v9 = vadd.f32 %v1287_v41, %v1187_v30  ;;  %v2163_v38 = vmul.f32 %v3097_v35, %v3896_v63  ;;  %v2164_v47 = vmul.f32 %v3097_v35, %v3905_v50 }
 0x13e   :  { %v2659_v52 = vadd.f32 %v2483_v32, %v1782_v26  ;;  %v1607_v53 = vrot.slane %v1382_v34, 1  ;;  %v2063_v3 = vadd.f32 %v1967_v43, %v1867_v2  ;;  %v2064_v42 = vadd.f32 %v1968_v46, %v1867_v2 }
 0x13f   :  { %v1608_v27 = vrot.slane %v1383_v9, 1  ;;  %v647_v56 = vmul.f32 %v3058_v11, %v3900_v58  ;;  %v779_v15 = vmul.f32 %v3070_v17, %v3905_v50  ;;  %v992_v51 = vmul.f32 %v3060_v12, %v303_v48 }
 0x140   :  { %v2729_v44 = vadd.f32 %v3559_v0, %v2659_v52  ;;  %v2259_v61 = vadd.f32 %v2163_v38, %v2063_v3  ;;  %v2260_v49 = vadd.f32 %v2164_v47, %v2064_v42  ;;  %v1092_v62 = vmul.f32 %v3062_v13, %v399_v5 }
 0x141   :  { %v1609_v14 = vsel %vm1526_vm0, %v1607_v53, %v1608_v27  ;;  %v711_v39 = vadd.f32 %v647_v56, %v578_v21  ;;  %v1288_v54 = vmul.f32 %v3072_v18, %v496_v55  ;;  %v1869_v4 = vmul.f32 %v3074_v19, %v303_v48 }
 0x142   :  { %2793 = vst [vmem:[#allocation8 + $0xf8] sm:$0xff] %v2729_v44  ;;  %v1783_v59 = vadd.f32 %v1609_v14, %v842_v45  ;;  %v2484_v25 = vrot.slane %v2259_v61, 2  ;;  %v2485_v16 = vrot.slane %v2260_v49, 2  ;;  %v1188_v24 = vadd.f32 %v1092_v62, %v992_v51  ;;  %v499_v14 = vld [vmem:[#allocation2 + $0x208] sm:$0x3] }
 0x143   :  { %v843_v29 = vadd.f32 %v779_v15, %v711_v39  ;;  %v1969_v6 = vmul.f32 %v3076_v20, %v399_v5  ;;  %v2165_v1 = vmul.f32 %v3097_v35, %v496_v55  ;;  %v580_v28 = vmul.f32 %v3056_v10, %v3894_v57  ;;  %v306_v55 = vld [vmem:[#allocation2 + $0x1d8] sm:$0x3]  ;;  %v402_v15 = vld [vmem:[#allocation2 + $0x1f0] sm:$0x3] }
 0x144   :  { %v2486_v21 = vsel %vm2403_vm1, %v2484_v25, %v2485_v16  ;;  %v1384_v33 = vadd.f32 %v1288_v54, %v1188_v24  ;;  %v648_v60 = vmul.f32 %v3058_v11, %v3896_v63  ;;  %v780_v31 = vmul.f32 %v3070_v17, %v3944_v22  ;;  %v3994_v25 = vld [vmem:[%s4745_s2] ss:$0 sm:$0xff] }
 0x145   :  { %v2660_v37 = vadd.f32 %v2486_v21, %v1783_v59  ;;  %v2065_v7 = vadd.f32 %v1969_v6, %v1869_v4  ;;  %v993_v23 = vmul.f32 %v3060_v12, %v3894_v57  ;;  %v994_v36 = vmul.f32 %v3060_v12, %v3900_v58 }
 0x146   :  { %v1610_v41 = vrot.slane %v1384_v33, 1  ;;  %v712_v26 = vadd.f32 %v648_v60, %v580_v28  ;;  %v1093_v40 = vmul.f32 %v3062_v13, %v3896_v63  ;;  %v1094_v45 = vmul.f32 %v3062_v13, %v3905_v50  ;;  %v4000_v33 = vld [vmem:[#allocation2 + $0x210] sm:$0xff] }
 0x147   :  { %v2730_v30 = vadd.f32 %v3559_v0, %v2660_v37  ;;  %v2261_v34 = vadd.f32 %v2165_v1, %v2065_v7  ;;  %v1289_v2 = vmul.f32 %v3072_v18, %v3944_v22  ;;  %v1290_v43 = vmul.f32 %v3072_v18, %v3951_v8 }
 0x148   :  { %v1611_v46 = vsel %vm1526_vm0, %v1608_v27, %v1610_v41  ;;  %v844_v48 = vadd.f32 %v780_v31, %v712_v26  ;;  %v1189_v32 = vadd.f32 %v1093_v40, %v993_v23  ;;  %v1190_v9 = vadd.f32 %v1094_v45, %v994_v36 }
 0x149   :  { %2794 = vst [vmem:[#allocation8 + $0x100] sm:$0xff] %v2730_v30  ;;  %v1784_v38 = vadd.f32 %v1611_v46, %v843_v29  ;;  %v2487_v47 = vrot.slane %v2261_v34, 2  ;;  %v1870_v5 = vmul.f32 %v3074_v19, %v3894_v57  ;;  %v1871_v0 = vmul.f32 %v3074_v19, %v3900_v58  ;;  %v4007_v30 = vld [vmem:[#allocation2 + $0x218] sm:$0xff] }
 0x14a   :  { %v1385_v52 = vadd.f32 %v1289_v2, %v1189_v32  ;;  %v1386_v53 = vadd.f32 %v1290_v43, %v1190_v9  ;;  %v1970_v3 = vmul.f32 %v3076_v20, %v3896_v63  ;;  %v1971_v42 = vmul.f32 %v3076_v20, %v3905_v50 }
 0x14b   :  { %v2488_v27 = vsel %vm2403_vm1, %v2485_v16, %v2487_v47  ;;  %v2166_v56 = vmul.f32 %v3097_v35, %v3944_v22  ;;  %v2167_v57 = vmul.f32 %v3097_v35, %v3951_v8  ;;  %v581_v51 = vmul.f32 %v3056_v10, %v3900_v58 }
 0x14c   :  { %v2661_v44 = vadd.f32 %v2488_v27, %v1784_v38  ;;  %v1612_v61 = vrot.slane %v1385_v52, 1  ;;  %v1613_v49 = vrot.slane %v1386_v53, 1  ;;  %v2066_v62 = vadd.f32 %v1970_v3, %v1870_v5 }
 0x14d   :  { %v2067_v39 = vadd.f32 %v1971_v42, %v1871_v0  ;;  %v649_v54 = vmul.f32 %v3058_v11, %v3905_v50  ;;  %v781_v4 = vmul.f32 %v3070_v17, %v3951_v8  ;;  %v995_v59 = vmul.f32 %v3060_v12, %v306_v55 }
 0x14e   :  { %v2731_v58 = vadd.f32 %v3994_v25, %v2661_v44  ;;  %v1614_v16 = vsel %vm1526_vm0, %v1612_v61, %v1613_v49  ;;  %v2262_v24 = vadd.f32 %v2166_v56, %v2066_v62  ;;  %v1095_v29 = vmul.f32 %v3062_v13, %v402_v15 }
 0x14f   :  { %v1785_v6 = vadd.f32 %v1614_v16, %v844_v48  ;;  %v2263_v1 = vadd.f32 %v2167_v57, %v2067_v39  ;;  %v713_v28 = vadd.f32 %v649_v54, %v581_v51  ;;  %v1291_v21 = vmul.f32 %v3072_v18, %v499_v14 }
 0x150   :  { %2795 = vst [vmem:[#allocation8 + $0x108] sm:$0xff] %v2731_v58  ;;  %v2489_v60 = vrot.slane %v2262_v24, 2  ;;  %v1191_v31 = vadd.f32 %v1095_v29, %v995_v59  ;;  %v1872_v37 = vmul.f32 %v3074_v19, %v306_v55  ;;  %v1972_v7 = vmul.f32 %v3076_v20, %v402_v15  ;;  %v309_v58 = vld [vmem:[#allocation2 + $0x1f0] sm:$0x3] }
 0x151   :  { %v2490_v23 = vrot.slane %v2263_v1, 2  ;;  %v845_v36 = vadd.f32 %v781_v4, %v713_v28  ;;  %v2168_v41 = vmul.f32 %v3097_v35, %v499_v14  ;;  %v582_v26 = vmul.f32 %v3056_v10, %v3896_v63 }
 0x152   :  { %v1387_v40 = vadd.f32 %v1291_v21, %v1191_v31  ;;  %v2068_v45 = vadd.f32 %v1972_v7, %v1872_v37  ;;  %v650_v34 = vmul.f32 %v3058_v11, %v3944_v22  ;;  %v782_v2 = vmul.f32 %v3070_v17, %v4000_v33 }
 0x153   :  { %v2491_v43 = vsel %vm2403_vm1, %v2489_v60, %v2490_v23  ;;  %v996_v46 = vmul.f32 %v3060_v12, %v3896_v63  ;;  %v997_v48 = vmul.f32 %v3060_v12, %v3905_v50  ;;  %v1096_v32 = vmul.f32 %v3062_v13, %v3944_v22 }
 0x154   :  { %v2662_v9 = vadd.f32 %v2491_v43, %v1785_v6  ;;  %v1615_v38 = vrot.slane %v1387_v40, 1  ;;  %v2264_v47 = vadd.f32 %v2168_v41, %v2068_v45  ;;  %v714_v5 = vadd.f32 %v650_v34, %v582_v26  ;;  %v502_v6 = vld [vmem:[#allocation2 + $0x220] sm:$0x3]  ;;  %v4053_v45 = vld [vmem:[#allocation2 + $0x228] sm:$0xff] }
 0x155   :  { %v1097_v0 = vmul.f32 %v3062_v13, %v3951_v8  ;;  %v1192_v52 = vadd.f32 %v1096_v32, %v996_v46  ;;  %v1292_v53 = vmul.f32 %v3072_v18, %v4000_v33  ;;  %v1293_v3 = vmul.f32 %v3072_v18, %v4007_v30 }
 0x156   :  { %v2732_v42 = vadd.f32 %v3994_v25, %v2662_v9  ;;  %v1616_v55 = vsel %vm1526_vm0, %v1613_v49, %v1615_v38  ;;  %v2492_v27 = vrot.slane %v2264_v47, 2  ;;  %v846_v56 = vadd.f32 %v782_v2, %v714_v5 }
 0x157   :  { %v1786_v57 = vadd.f32 %v1616_v55, %v845_v36  ;;  %v1193_v15 = vadd.f32 %v1097_v0, %v997_v48  ;;  %v1388_v51 = vadd.f32 %v1292_v53, %v1192_v52  ;;  %v1873_v44 = vmul.f32 %v3074_v19, %v3896_v63  ;;  %v405_v63 = vld [vmem:[#allocation2 + $0x208] sm:$0x3]  ;;  %v4060_v0 = vld [vmem:[#allocation2 + $0x230] sm:$0xff] }
 0x158   :  { %2796 = vst [vmem:[#allocation8 + $0x110] sm:$0xff] %v2732_v42  ;;  %v2493_v61 = vsel %vm2403_vm1, %v2490_v23, %v2492_v27  ;;  %v1874_v62 = vmul.f32 %v3074_v19, %v3905_v50  ;;  %v1973_v14 = vmul.f32 %v3076_v20, %v3944_v22  ;;  %v1974_v49 = vmul.f32 %v3076_v20, %v3951_v8 }
 0x159   :  { %v2663_v39 = vadd.f32 %v2493_v61, %v1786_v57  ;;  %v1389_v54 = vadd.f32 %v1293_v3, %v1193_v15  ;;  %v1617_v4 = vrot.slane %v1388_v51, 1  ;;  %v2169_v59 = vmul.f32 %v3097_v35, %v4000_v33 }
 0x15a   :  { %v2069_v16 = vadd.f32 %v1973_v14, %v1873_v44  ;;  %v2070_v24 = vadd.f32 %v1974_v49, %v1874_v62  ;;  %v2170_v29 = vmul.f32 %v3097_v35, %v4007_v30  ;;  %v583_v1 = vmul.f32 %v3056_v10, %v3905_v50 }
 0x15b   :  { %v2733_v28 = vadd.f32 %v3994_v25, %v2663_v39  ;;  %v1618_v21 = vrot.slane %v1389_v54, 1  ;;  %v651_v60 = vmul.f32 %v3058_v11, %v3951_v8  ;;  %v783_v31 = vmul.f32 %v3070_v17, %v4007_v30 }
 0x15c   :  { %v2265_v37 = vadd.f32 %v2169_v59, %v2069_v16  ;;  %v2266_v7 = vadd.f32 %v2170_v29, %v2070_v24  ;;  %v998_v23 = vmul.f32 %v3060_v12, %v309_v58  ;;  %v1098_v36 = vmul.f32 %v3062_v13, %v405_v63 }
 0x15d   :  { %2797 = vst [vmem:[#allocation8 + $0x118] sm:$0xff] %v2733_v28  ;;  %v1619_v41 = vsel %vm1526_vm0, %v1617_v4, %v1618_v21  ;;  %v715_v26 = vadd.f32 %v651_v60, %v583_v1  ;;  %v1294_v50 = vmul.f32 %v3072_v18, %v502_v6  ;;  %v1875_v40 = vmul.f32 %v3074_v19, %v309_v58  ;;  %v312_v28 = vld [vmem:[#allocation2 + $0x208] sm:$0x3] }
 0x15e   :  { %v1787_v34 = vadd.f32 %v1619_v41, %v846_v56  ;;  %v2494_v2 = vrot.slane %v2265_v37, 2  ;;  %v2495_v43 = vrot.slane %v2266_v7, 2  ;;  %v1194_v46 = vadd.f32 %v1098_v36, %v998_v23 }
 0x15f   :  { %v847_v48 = vadd.f32 %v783_v31, %v715_v26  ;;  %v1975_v32 = vmul.f32 %v3076_v20, %v405_v63  ;;  %v2171_v9 = vmul.f32 %v3097_v35, %v502_v6  ;;  %v584_v38 = vmul.f32 %v3056_v10, %v3944_v22  ;;  %v408_v31 = vld [vmem:[#allocation2 + $0x220] sm:$0x3]  ;;  %v505_v26 = vld [vmem:[#allocation2 + $0x238] sm:$0x3] }
 0x160   :  { %v2496_v47 = vsel %vm2403_vm1, %v2494_v2, %v2495_v43  ;;  %v1390_v5 = vadd.f32 %v1294_v50, %v1194_v46  ;;  %v652_v52 = vmul.f32 %v3058_v11, %v4000_v33  ;;  %v784_v53 = vmul.f32 %v3070_v17, %v4053_v45 }
 0x161   :  { %v2664_v3 = vadd.f32 %v2496_v47, %v1787_v34  ;;  %v2071_v42 = vadd.f32 %v1975_v32, %v1875_v40  ;;  %v999_v55 = vmul.f32 %v3060_v12, %v3944_v22  ;;  %v1000_v27 = vmul.f32 %v3060_v12, %v3951_v8 }
 0x162   :  { %v1620_v56 = vrot.slane %v1390_v5, 1  ;;  %v716_v57 = vadd.f32 %v652_v52, %v584_v38  ;;  %v1099_v15 = vmul.f32 %v3062_v13, %v4000_v33  ;;  %v1100_v51 = vmul.f32 %v3062_v13, %v4007_v30  ;;  %v4104_v5 = vld [vmem:[#allocation2 + $0x240] sm:$0xff] }
 0x163   :  { %v2734_v44 = vadd.f32 %v3994_v25, %v2664_v3  ;;  %v2267_v61 = vadd.f32 %v2171_v9, %v2071_v42  ;;  %v1295_v62 = vmul.f32 %v3072_v18, %v4053_v45  ;;  %v1296_v14 = vmul.f32 %v3072_v18, %v4060_v0 }
 0x164   :  { %v1621_v49 = vsel %vm1526_vm0, %v1618_v21, %v1620_v56  ;;  %v848_v39 = vadd.f32 %v784_v53, %v716_v57  ;;  %v1195_v54 = vadd.f32 %v1099_v15, %v999_v55  ;;  %v1196_v4 = vadd.f32 %v1100_v51, %v1000_v27 }
 0x165   :  { %2798 = vst [vmem:[#allocation8 + $0x120] sm:$0xff] %v2734_v44  ;;  %v1788_v59 = vadd.f32 %v1621_v49, %v847_v48  ;;  %v2497_v58 = vrot.slane %v2267_v61, 2  ;;  %v1876_v63 = vmul.f32 %v3074_v19, %v3944_v22  ;;  %v1877_v16 = vmul.f32 %v3074_v19, %v3951_v8  ;;  %v4111_v44 = vld [vmem:[#allocation2 + $0x248] sm:$0xff] }
 0x166   :  { %v1391_v24 = vadd.f32 %v1295_v62, %v1195_v54  ;;  %v1392_v29 = vadd.f32 %v1296_v14, %v1196_v4  ;;  %v1976_v6 = vmul.f32 %v3076_v20, %v4000_v33  ;;  %v1977_v1 = vmul.f32 %v3076_v20, %v4007_v30 }
 0x167   :  { %v2498_v21 = vsel %vm2403_vm1, %v2495_v43, %v2497_v58  ;;  %v2172_v60 = vmul.f32 %v3097_v35, %v4053_v45  ;;  %v2173_v22 = vmul.f32 %v3097_v35, %v4060_v0  ;;  %v585_v37 = vmul.f32 %v3056_v10, %v3951_v8 }
 0x168   :  { %v2665_v7 = vadd.f32 %v2498_v21, %v1788_v59  ;;  %v1622_v23 = vrot.slane %v1391_v24, 1  ;;  %v1623_v36 = vrot.slane %v1392_v29, 1  ;;  %v2072_v41 = vadd.f32 %v1976_v6, %v1876_v63 }
 0x169   :  { %v2073_v50 = vadd.f32 %v1977_v1, %v1877_v16  ;;  %v653_v40 = vmul.f32 %v3058_v11, %v4007_v30  ;;  %v785_v34 = vmul.f32 %v3070_v17, %v4060_v0  ;;  %v1001_v2 = vmul.f32 %v3060_v12, %v312_v28 }
 0x16a   :  { %v2735_v43 = vadd.f32 %v3994_v25, %v2665_v7  ;;  %v1624_v46 = vsel %vm1526_vm0, %v1622_v23, %v1623_v36  ;;  %v2268_v48 = vadd.f32 %v2172_v60, %v2072_v41  ;;  %v1101_v8 = vmul.f32 %v3062_v13, %v408_v31 }
 0x16b   :  { %v1789_v32 = vadd.f32 %v1624_v46, %v848_v39  ;;  %v2269_v9 = vadd.f32 %v2173_v22, %v2073_v50  ;;  %v717_v38 = vadd.f32 %v653_v40, %v585_v37  ;;  %v1297_v47 = vmul.f32 %v3072_v18, %v505_v26 }
 0x16c   :  { %2799 = vst [vmem:[#allocation8 + $0x128] sm:$0xff] %v2735_v43  ;;  %v2499_v52 = vrot.slane %v2268_v48, 2  ;;  %v1197_v53 = vadd.f32 %v1101_v8, %v1001_v2  ;;  %v1878_v3 = vmul.f32 %v3074_v19, %v312_v28  ;;  %v1978_v42 = vmul.f32 %v3076_v20, %v408_v31  ;;  %v315_v43 = vld [vmem:[#allocation2 + $0x220] sm:$0x3] }
 0x16d   :  { %v2500_v55 = vrot.slane %v2269_v9, 2  ;;  %v849_v27 = vadd.f32 %v785_v34, %v717_v38  ;;  %v2174_v56 = vmul.f32 %v3097_v35, %v505_v26  ;;  %v586_v57 = vmul.f32 %v3056_v10, %v4000_v33 }
 0x16e   :  { %v1393_v15 = vadd.f32 %v1297_v47, %v1197_v53  ;;  %v2074_v51 = vadd.f32 %v1978_v42, %v1878_v3  ;;  %v654_v61 = vmul.f32 %v3058_v11, %v4053_v45  ;;  %v786_v62 = vmul.f32 %v3070_v17, %v4104_v5 }
 0x16f   :  { %v2501_v14 = vsel %vm2403_vm1, %v2499_v52, %v2500_v55  ;;  %v1002_v49 = vmul.f32 %v3060_v12, %v4000_v33  ;;  %v1003_v39 = vmul.f32 %v3060_v12, %v4007_v30  ;;  %v1102_v54 = vmul.f32 %v3062_v13, %v4053_v45 }
 0x170   :  { %v2666_v4 = vadd.f32 %v2501_v14, %v1789_v32  ;;  %v1625_v59 = vrot.slane %v1393_v15, 1  ;;  %v2270_v58 = vadd.f32 %v2174_v56, %v2074_v51  ;;  %v718_v63 = vadd.f32 %v654_v61, %v586_v57  ;;  %v508_v32 = vld [vmem:[#allocation2 + $0x250] sm:$0x3]  ;;  %v4157_v51 = vld [vmem:[#allocation2 + $0x258] sm:$0xff] }
 0x171   :  { %v1103_v16 = vmul.f32 %v3062_v13, %v4060_v0  ;;  %v1198_v24 = vadd.f32 %v1102_v54, %v1002_v49  ;;  %v1298_v29 = vmul.f32 %v3072_v18, %v4104_v5  ;;  %v1299_v6 = vmul.f32 %v3072_v18, %v4111_v44 }
 0x172   :  { %v2736_v1 = vadd.f32 %v3994_v25, %v2666_v4  ;;  %v1626_v28 = vsel %vm1526_vm0, %v1623_v36, %v1625_v59  ;;  %v2502_v21 = vrot.slane %v2270_v58, 2  ;;  %v850_v60 = vadd.f32 %v786_v62, %v718_v63 }
 0x173   :  { %v1790_v22 = vadd.f32 %v1626_v28, %v849_v27  ;;  %v1199_v31 = vadd.f32 %v1103_v16, %v1003_v39  ;;  %v1394_v37 = vadd.f32 %v1298_v29, %v1198_v24  ;;  %v1879_v7 = vmul.f32 %v3074_v19, %v4000_v33  ;;  %v411_v33 = vld [vmem:[#allocation2 + $0x238] sm:$0x3]  ;;  %v4164_v16 = vld [vmem:[#allocation2 + $0x260] sm:$0xff] }
 0x174   :  { %2800 = vst [vmem:[#allocation8 + $0x130] sm:$0xff] %v2736_v1  ;;  %v2503_v23 = vsel %vm2403_vm1, %v2500_v55, %v2502_v21  ;;  %v1880_v41 = vmul.f32 %v3074_v19, %v4007_v30  ;;  %v1979_v26 = vmul.f32 %v3076_v20, %v4053_v45  ;;  %v1980_v36 = vmul.f32 %v3076_v20, %v4060_v0 }
 0x175   :  { %v2667_v50 = vadd.f32 %v2503_v23, %v1790_v22  ;;  %v1395_v40 = vadd.f32 %v1299_v6, %v1199_v31  ;;  %v1627_v34 = vrot.slane %v1394_v37, 1  ;;  %v2175_v2 = vmul.f32 %v3097_v35, %v4104_v5 }
 0x176   :  { %v2075_v46 = vadd.f32 %v1979_v26, %v1879_v7  ;;  %v2076_v48 = vadd.f32 %v1980_v36, %v1880_v41  ;;  %v2176_v8 = vmul.f32 %v3097_v35, %v4111_v44  ;;  %v587_v9 = vmul.f32 %v3056_v10, %v4007_v30 }
 0x177   :  { %v2737_v38 = vadd.f32 %v3994_v25, %v2667_v50  ;;  %v1628_v47 = vrot.slane %v1395_v40, 1  ;;  %v655_v52 = vmul.f32 %v3058_v11, %v4060_v0  ;;  %v787_v53 = vmul.f32 %v3070_v17, %v4111_v44 }
 0x178   :  { %v2271_v3 = vadd.f32 %v2175_v2, %v2075_v46  ;;  %v2272_v42 = vadd.f32 %v2176_v8, %v2076_v48  ;;  %v1004_v55 = vmul.f32 %v3060_v12, %v315_v43  ;;  %v1104_v27 = vmul.f32 %v3062_v13, %v411_v33 }
 0x179   :  { %2801 = vst [vmem:[#allocation8 + $0x138] sm:$0xff] %v2737_v38  ;;  %v1629_v56 = vsel %vm1526_vm0, %v1627_v34, %v1628_v47  ;;  %v719_v57 = vadd.f32 %v655_v52, %v587_v9  ;;  %v1300_v30 = vmul.f32 %v3072_v18, %v508_v32  ;;  %v1881_v15 = vmul.f32 %v3074_v19, %v315_v43  ;;  %v318_v38 = vld [vmem:[#allocation2 + $0x238] sm:$0x3] }
 0x17a   :  { %v1791_v61 = vadd.f32 %v1629_v56, %v850_v60  ;;  %v2504_v62 = vrot.slane %v2271_v3, 2  ;;  %v2505_v14 = vrot.slane %v2272_v42, 2  ;;  %v1200_v49 = vadd.f32 %v1104_v27, %v1004_v55 }
 0x17b   :  { %v851_v39 = vadd.f32 %v787_v53, %v719_v57  ;;  %v1981_v54 = vmul.f32 %v3076_v20, %v411_v33  ;;  %v2177_v4 = vmul.f32 %v3097_v35, %v508_v32  ;;  %v588_v59 = vmul.f32 %v3056_v10, %v4053_v45  ;;  %v414_v53 = vld [vmem:[#allocation2 + $0x250] sm:$0x3]  ;;  %v511_v57 = vld [vmem:[#allocation2 + $0x268] sm:$0x3] }
 0x17c   :  { %v2506_v58 = vsel %vm2403_vm1, %v2504_v62, %v2505_v14  ;;  %v1396_v63 = vadd.f32 %v1300_v30, %v1200_v49  ;;  %v656_v24 = vmul.f32 %v3058_v11, %v4104_v5  ;;  %v788_v29 = vmul.f32 %v3070_v17, %v4157_v51 }
 0x17d   :  { %v2668_v6 = vadd.f32 %v2506_v58, %v1791_v61  ;;  %v2077_v1 = vadd.f32 %v1981_v54, %v1881_v15  ;;  %v1005_v28 = vmul.f32 %v3060_v12, %v4053_v45  ;;  %v1006_v21 = vmul.f32 %v3060_v12, %v4060_v0 }
 0x17e   :  { %v1630_v60 = vrot.slane %v1396_v63, 1  ;;  %v720_v22 = vadd.f32 %v656_v24, %v588_v59  ;;  %v1105_v31 = vmul.f32 %v3062_v13, %v4104_v5  ;;  %v1106_v37 = vmul.f32 %v3062_v13, %v4111_v44  ;;  %v4208_v63 = vld [vmem:[#allocation2 + $0x270] sm:$0xff] }
 0x17f   :  { %v2738_v7 = vadd.f32 %v3994_v25, %v2668_v6  ;;  %v2273_v23 = vadd.f32 %v2177_v4, %v2077_v1  ;;  %v1301_v41 = vmul.f32 %v3072_v18, %v4157_v51  ;;  %v1302_v26 = vmul.f32 %v3072_v18, %v4164_v16 }
 0x180   :  { %v1631_v36 = vsel %vm1526_vm0, %v1628_v47, %v1630_v60  ;;  %v852_v50 = vadd.f32 %v788_v29, %v720_v22  ;;  %v1201_v40 = vadd.f32 %v1105_v31, %v1005_v28  ;;  %v1202_v34 = vadd.f32 %v1106_v37, %v1006_v21 }
 0x181   :  { %2802 = vst [vmem:[#allocation8 + $0x140] sm:$0xff] %v2738_v7  ;;  %v1792_v2 = vadd.f32 %v1631_v36, %v851_v39  ;;  %v2507_v43 = vrot.slane %v2273_v23, 2  ;;  %v1882_v33 = vmul.f32 %v3074_v19, %v4053_v45  ;;  %v1883_v46 = vmul.f32 %v3074_v19, %v4060_v0  ;;  %v4215_v7 = vld [vmem:[#allocation2 + $0x278] sm:$0xff] }
 0x182   :  { %v1397_v48 = vadd.f32 %v1301_v41, %v1201_v40  ;;  %v1398_v8 = vadd.f32 %v1302_v26, %v1202_v34  ;;  %v1982_v32 = vmul.f32 %v3076_v20, %v4104_v5  ;;  %v1983_v9 = vmul.f32 %v3076_v20, %v4111_v44 }
 0x183   :  { %v2508_v47 = vsel %vm2403_vm1, %v2505_v14, %v2507_v43  ;;  %v2178_v52 = vmul.f32 %v3097_v35, %v4157_v51  ;;  %v2179_v45 = vmul.f32 %v3097_v35, %v4164_v16  ;;  %v589_v3 = vmul.f32 %v3056_v10, %v4060_v0 }
 0x184   :  { %v2669_v42 = vadd.f32 %v2508_v47, %v1792_v2  ;;  %v1632_v55 = vrot.slane %v1397_v48, 1  ;;  %v1633_v27 = vrot.slane %v1398_v8, 1  ;;  %v2078_v56 = vadd.f32 %v1982_v32, %v1882_v33 }
 0x185   :  { %v2079_v30 = vadd.f32 %v1983_v9, %v1883_v46  ;;  %v657_v15 = vmul.f32 %v3058_v11, %v4111_v44  ;;  %v789_v61 = vmul.f32 %v3070_v17, %v4164_v16  ;;  %v1007_v62 = vmul.f32 %v3060_v12, %v318_v38 }
 0x186   :  { %v2739_v14 = vadd.f32 %v3994_v25, %v2669_v42  ;;  %v1634_v49 = vsel %vm1526_vm0, %v1632_v55, %v1633_v27  ;;  %v2274_v39 = vadd.f32 %v2178_v52, %v2078_v56  ;;  %v1107_v0 = vmul.f32 %v3062_v13, %v414_v53 }
 0x187   :  { %v1793_v54 = vadd.f32 %v1634_v49, %v852_v50  ;;  %v2275_v4 = vadd.f32 %v2179_v45, %v2079_v30  ;;  %v721_v59 = vadd.f32 %v657_v15, %v589_v3  ;;  %v1303_v58 = vmul.f32 %v3072_v18, %v511_v57 }
 0x188   :  { %2803 = vst [vmem:[#allocation8 + $0x148] sm:$0xff] %v2739_v14  ;;  %v2509_v24 = vrot.slane %v2274_v39, 2  ;;  %v1203_v29 = vadd.f32 %v1107_v0, %v1007_v62  ;;  %v1884_v6 = vmul.f32 %v3074_v19, %v318_v38  ;;  %v1984_v1 = vmul.f32 %v3076_v20, %v414_v53  ;;  %v321_v14 = vld [vmem:[#allocation2 + $0x250] sm:$0x3] }
 0x189   :  { %v2510_v28 = vrot.slane %v2275_v4, 2  ;;  %v853_v21 = vadd.f32 %v789_v61, %v721_v59  ;;  %v2180_v60 = vmul.f32 %v3097_v35, %v511_v57  ;;  %v590_v22 = vmul.f32 %v3056_v10, %v4104_v5 }
 0x18a   :  { %v1399_v31 = vadd.f32 %v1303_v58, %v1203_v29  ;;  %v2080_v37 = vadd.f32 %v1984_v1, %v1884_v6  ;;  %v658_v23 = vmul.f32 %v3058_v11, %v4157_v51  ;;  %v790_v41 = vmul.f32 %v3070_v17, %v4208_v63 }
 0x18b   :  { %v2511_v26 = vsel %vm2403_vm1, %v2509_v24, %v2510_v28  ;;  %v1008_v36 = vmul.f32 %v3060_v12, %v4104_v5  ;;  %v1009_v50 = vmul.f32 %v3060_v12, %v4111_v44  ;;  %v1108_v40 = vmul.f32 %v3062_v13, %v4157_v51 }
 0x18c   :  { %v2670_v34 = vadd.f32 %v2511_v26, %v1793_v54  ;;  %v1635_v2 = vrot.slane %v1399_v31, 1  ;;  %v2276_v43 = vadd.f32 %v2180_v60, %v2080_v37  ;;  %v722_v33 = vadd.f32 %v658_v23, %v590_v22  ;;  %v514_v54 = vld [vmem:[#allocation2 + $0x280] sm:$0x3]  ;;  %v4261_v37 = vld [vmem:[#allocation2 + $0x288] sm:$0xff] }
 0x18d   :  { %v1109_v46 = vmul.f32 %v3062_v13, %v4164_v16  ;;  %v1204_v48 = vadd.f32 %v1108_v40, %v1008_v36  ;;  %v1304_v8 = vmul.f32 %v3072_v18, %v4208_v63  ;;  %v1305_v32 = vmul.f32 %v3072_v18, %v4215_v7 }
 0x18e   :  { %v2740_v9 = vadd.f32 %v3994_v25, %v2670_v34  ;;  %v1636_v38 = vsel %vm1526_vm0, %v1633_v27, %v1635_v2  ;;  %v2512_v47 = vrot.slane %v2276_v43, 2  ;;  %v854_v52 = vadd.f32 %v790_v41, %v722_v33 }
 0x18f   :  { %v1794_v45 = vadd.f32 %v1636_v38, %v853_v21  ;;  %v1205_v53 = vadd.f32 %v1109_v46, %v1009_v50  ;;  %v1400_v3 = vadd.f32 %v1304_v8, %v1204_v48  ;;  %v1885_v42 = vmul.f32 %v3074_v19, %v4104_v5  ;;  %v417_v5 = vld [vmem:[#allocation2 + $0x268] sm:$0x3]  ;;  %v4268_v46 = vld [vmem:[#allocation2 + $0x290] sm:$0xff] }
 0x190   :  { %2804 = vst [vmem:[#allocation8 + $0x150] sm:$0xff] %v2740_v9  ;;  %v2513_v55 = vsel %vm2403_vm1, %v2510_v28, %v2512_v47  ;;  %v1886_v56 = vmul.f32 %v3074_v19, %v4111_v44  ;;  %v1985_v57 = vmul.f32 %v3076_v20, %v4157_v51  ;;  %v1986_v27 = vmul.f32 %v3076_v20, %v4164_v16 }
 0x191   :  { %v2671_v30 = vadd.f32 %v2513_v55, %v1794_v45  ;;  %v1401_v15 = vadd.f32 %v1305_v32, %v1205_v53  ;;  %v1637_v61 = vrot.slane %v1400_v3, 1  ;;  %v2181_v62 = vmul.f32 %v3097_v35, %v4208_v63 }
 0x192   :  { %v2081_v49 = vadd.f32 %v1985_v57, %v1885_v42  ;;  %v2082_v39 = vadd.f32 %v1986_v27, %v1886_v56  ;;  %v2182_v0 = vmul.f32 %v3097_v35, %v4215_v7  ;;  %v591_v4 = vmul.f32 %v3056_v10, %v4111_v44 }
 0x193   :  { %v2741_v59 = vadd.f32 %v3994_v25, %v2671_v30  ;;  %v1638_v58 = vrot.slane %v1401_v15, 1  ;;  %v659_v24 = vmul.f32 %v3058_v11, %v4164_v16  ;;  %v791_v29 = vmul.f32 %v3070_v17, %v4215_v7 }
 0x194   :  { %v2277_v6 = vadd.f32 %v2181_v62, %v2081_v49  ;;  %v2278_v1 = vadd.f32 %v2182_v0, %v2082_v39  ;;  %v1010_v28 = vmul.f32 %v3060_v12, %v321_v14  ;;  %v1110_v21 = vmul.f32 %v3062_v13, %v417_v5 }
 0x195   :  { %2805 = vst [vmem:[#allocation8 + $0x158] sm:$0xff] %v2741_v59  ;;  %v1639_v60 = vsel %vm1526_vm0, %v1637_v61, %v1638_v58  ;;  %v723_v22 = vadd.f32 %v659_v24, %v591_v4  ;;  %v1306_v44 = vmul.f32 %v3072_v18, %v514_v54  ;;  %v1887_v31 = vmul.f32 %v3074_v19, %v321_v14  ;;  %v324_v59 = vld [vmem:[#allocation2 + $0x268] sm:$0x3] }
 0x196   :  { %v1795_v23 = vadd.f32 %v1639_v60, %v854_v52  ;;  %v2514_v41 = vrot.slane %v2277_v6, 2  ;;  %v2515_v26 = vrot.slane %v2278_v1, 2  ;;  %v1206_v36 = vadd.f32 %v1110_v21, %v1010_v28 }
 0x197   :  { %v855_v50 = vadd.f32 %v791_v29, %v723_v22  ;;  %v1987_v40 = vmul.f32 %v3076_v20, %v417_v5  ;;  %v2183_v34 = vmul.f32 %v3097_v35, %v514_v54  ;;  %v592_v2 = vmul.f32 %v3056_v10, %v4157_v51  ;;  %v420_v29 = vld [vmem:[#allocation2 + $0x280] sm:$0x3]  ;;  %v517_v22 = vld [vmem:[#allocation2 + $0x298] sm:$0x3] }
 0x198   :  { %v2516_v43 = vsel %vm2403_vm1, %v2514_v41, %v2515_v26  ;;  %v1402_v33 = vadd.f32 %v1306_v44, %v1206_v36  ;;  %v660_v48 = vmul.f32 %v3058_v11, %v4208_v63  ;;  %v792_v8 = vmul.f32 %v3070_v17, %v4261_v37 }
 0x199   :  { %v2672_v32 = vadd.f32 %v2516_v43, %v1795_v23  ;;  %v2083_v9 = vadd.f32 %v1987_v40, %v1887_v31  ;;  %v1011_v38 = vmul.f32 %v3060_v12, %v4157_v51  ;;  %v1012_v47 = vmul.f32 %v3060_v12, %v4164_v16 }
 0x19a   :  { %v1640_v52 = vrot.slane %v1402_v33, 1  ;;  %v724_v45 = vadd.f32 %v660_v48, %v592_v2  ;;  %v1111_v53 = vmul.f32 %v3062_v13, %v4208_v63  ;;  %v1112_v3 = vmul.f32 %v3062_v13, %v4215_v7  ;;  %v4312_v33 = vld [vmem:[#allocation2 + $0x2a0] sm:$0xff] }
 0x19b   :  { %v2742_v42 = vadd.f32 %v3994_v25, %v2672_v32  ;;  %v2279_v55 = vadd.f32 %v2183_v34, %v2083_v9  ;;  %v1307_v56 = vmul.f32 %v3072_v18, %v4261_v37  ;;  %v1308_v57 = vmul.f32 %v3072_v18, %v4268_v46 }
 0x19c   :  { %v1641_v27 = vsel %vm1526_vm0, %v1638_v58, %v1640_v52  ;;  %v856_v30 = vadd.f32 %v792_v8, %v724_v45  ;;  %v1207_v15 = vadd.f32 %v1111_v53, %v1011_v38  ;;  %v1208_v61 = vadd.f32 %v1112_v3, %v1012_v47 }
 0x19d   :  { %2806 = vst [vmem:[#allocation8 + $0x160] sm:$0xff] %v2742_v42  ;;  %v1796_v62 = vadd.f32 %v1641_v27, %v855_v50  ;;  %v2517_v14 = vrot.slane %v2279_v55, 2  ;;  %v1888_v5 = vmul.f32 %v3074_v19, %v4157_v51  ;;  %v1889_v49 = vmul.f32 %v3074_v19, %v4164_v16  ;;  %v4319_v42 = vld [vmem:[#allocation2 + $0x2a8] sm:$0xff] }
 0x19e   :  { %v1403_v39 = vadd.f32 %v1307_v56, %v1207_v15  ;;  %v1404_v0 = vadd.f32 %v1308_v57, %v1208_v61  ;;  %v1988_v54 = vmul.f32 %v3076_v20, %v4208_v63  ;;  %v1989_v4 = vmul.f32 %v3076_v20, %v4215_v7 }
 0x19f   :  { %v2518_v58 = vsel %vm2403_vm1, %v2515_v26, %v2517_v14  ;;  %v2184_v24 = vmul.f32 %v3097_v35, %v4261_v37  ;;  %v2185_v51 = vmul.f32 %v3097_v35, %v4268_v46  ;;  %v593_v6 = vmul.f32 %v3056_v10, %v4164_v16 }
 0x1a0   :  { %v2673_v1 = vadd.f32 %v2518_v58, %v1796_v62  ;;  %v1642_v28 = vrot.slane %v1403_v39, 1  ;;  %v1643_v21 = vrot.slane %v1404_v0, 1  ;;  %v2084_v60 = vadd.f32 %v1988_v54, %v1888_v5 }
 0x1a1   :  { %v2085_v44 = vadd.f32 %v1989_v4, %v1889_v49  ;;  %v661_v31 = vmul.f32 %v3058_v11, %v4215_v7  ;;  %v793_v23 = vmul.f32 %v3070_v17, %v4268_v46  ;;  %v1013_v41 = vmul.f32 %v3060_v12, %v324_v59 }
 0x1a2   :  { %v2743_v26 = vadd.f32 %v3994_v25, %v2673_v1  ;;  %v1644_v36 = vsel %vm1526_vm0, %v1642_v28, %v1643_v21  ;;  %v2280_v50 = vadd.f32 %v2184_v24, %v2084_v60  ;;  %v1113_v16 = vmul.f32 %v3062_v13, %v420_v29 }
 0x1a3   :  { %v1797_v40 = vadd.f32 %v1644_v36, %v856_v30  ;;  %v2281_v34 = vadd.f32 %v2185_v51, %v2085_v44  ;;  %v725_v2 = vadd.f32 %v661_v31, %v593_v6  ;;  %v1309_v43 = vmul.f32 %v3072_v18, %v517_v22 }
 0x1a4   :  { %2807 = vst [vmem:[#allocation8 + $0x168] sm:$0xff] %v2743_v26  ;;  %v2519_v48 = vrot.slane %v2280_v50, 2  ;;  %v1209_v8 = vadd.f32 %v1113_v16, %v1013_v41  ;;  %v1890_v32 = vmul.f32 %v3074_v19, %v324_v59  ;;  %v1990_v9 = vmul.f32 %v3076_v20, %v420_v29  ;;  %v327_v26 = vld [vmem:[#allocation2 + $0x280] sm:$0x3] }
 0x1a5   :  { %v2520_v38 = vrot.slane %v2281_v34, 2  ;;  %v857_v47 = vadd.f32 %v793_v23, %v725_v2  ;;  %v2186_v52 = vmul.f32 %v3097_v35, %v517_v22  ;;  %v594_v45 = vmul.f32 %v3056_v10, %v4208_v63 }
 0x1a6   :  { %v1405_v53 = vadd.f32 %v1309_v43, %v1209_v8  ;;  %v2086_v3 = vadd.f32 %v1990_v9, %v1890_v32  ;;  %v662_v55 = vmul.f32 %v3058_v11, %v4261_v37  ;;  %v794_v56 = vmul.f32 %v3070_v17, %v4312_v33 }
 0x1a7   :  { %v2521_v57 = vsel %vm2403_vm1, %v2519_v48, %v2520_v38  ;;  %v1014_v27 = vmul.f32 %v3060_v12, %v4208_v63  ;;  %v1015_v30 = vmul.f32 %v3060_v12, %v4215_v7  ;;  %v1114_v15 = vmul.f32 %v3062_v13, %v4261_v37 }
 0x1a8   :  { %v2674_v61 = vadd.f32 %v2521_v57, %v1797_v40  ;;  %v1645_v62 = vrot.slane %v1405_v53, 1  ;;  %v2282_v14 = vadd.f32 %v2186_v52, %v2086_v3  ;;  %v726_v5 = vadd.f32 %v662_v55, %v594_v45  ;;  %v520_v40 = vld [vmem:[#allocation2 + $0x2b0] sm:$0x3]  ;;  %v4365_v3 = vld [vmem:[#allocation2 + $0x2b8] sm:$0xff] }
 0x1a9   :  { %v1115_v49 = vmul.f32 %v3062_v13, %v4268_v46  ;;  %v1210_v39 = vadd.f32 %v1114_v15, %v1014_v27  ;;  %v1310_v0 = vmul.f32 %v3072_v18, %v4312_v33  ;;  %v1311_v54 = vmul.f32 %v3072_v18, %v4319_v42 }
 0x1aa   :  { %v2744_v4 = vadd.f32 %v3994_v25, %v2674_v61  ;;  %v1646_v59 = vsel %vm1526_vm0, %v1643_v21, %v1645_v62  ;;  %v2522_v58 = vrot.slane %v2282_v14, 2  ;;  %v858_v24 = vadd.f32 %v794_v56, %v726_v5 }
 0x1ab   :  { %v1798_v51 = vadd.f32 %v1646_v59, %v857_v47  ;;  %v1211_v29 = vadd.f32 %v1115_v49, %v1015_v30  ;;  %v1406_v6 = vadd.f32 %v1310_v0, %v1210_v39  ;;  %v1891_v1 = vmul.f32 %v3074_v19, %v4208_v63  ;;  %v423_v63 = vld [vmem:[#allocation2 + $0x298] sm:$0x3]  ;;  %v4372_v49 = vld [vmem:[#allocation2 + $0x2c0] sm:$0xff] }
 0x1ac   :  { %2808 = vst [vmem:[#allocation8 + $0x170] sm:$0xff] %v2744_v4  ;;  %v2523_v28 = vsel %vm2403_vm1, %v2520_v38, %v2522_v58  ;;  %v1892_v60 = vmul.f32 %v3074_v19, %v4215_v7  ;;  %v1991_v22 = vmul.f32 %v3076_v20, %v4261_v37  ;;  %v1992_v21 = vmul.f32 %v3076_v20, %v4268_v46 }
 0x1ad   :  { %v2675_v44 = vadd.f32 %v2523_v28, %v1798_v51  ;;  %v1407_v31 = vadd.f32 %v1311_v54, %v1211_v29  ;;  %v1647_v23 = vrot.slane %v1406_v6, 1  ;;  %v2187_v41 = vmul.f32 %v3097_v35, %v4312_v33 }
 0x1ae   :  { %v2087_v36 = vadd.f32 %v1991_v22, %v1891_v1  ;;  %v2088_v50 = vadd.f32 %v1992_v21, %v1892_v60  ;;  %v2188_v16 = vmul.f32 %v3097_v35, %v4319_v42  ;;  %v595_v34 = vmul.f32 %v3056_v10, %v4215_v7 }
 0x1af   :  { %v2745_v2 = vadd.f32 %v3994_v25, %v2675_v44  ;;  %v1648_v43 = vrot.slane %v1407_v31, 1  ;;  %v663_v48 = vmul.f32 %v3058_v11, %v4268_v46  ;;  %v795_v8 = vmul.f32 %v3070_v17, %v4319_v42 }
 0x1b0   :  { %v2283_v32 = vadd.f32 %v2187_v41, %v2087_v36  ;;  %v2284_v9 = vadd.f32 %v2188_v16, %v2088_v50  ;;  %v1016_v38 = vmul.f32 %v3060_v12, %v327_v26  ;;  %v1116_v47 = vmul.f32 %v3062_v13, %v423_v63 }
 0x1b1   :  { %2809 = vst [vmem:[#allocation8 + $0x178] sm:$0xff] %v2745_v2  ;;  %v1649_v52 = vsel %vm1526_vm0, %v1647_v23, %v1648_v43  ;;  %v727_v45 = vadd.f32 %v663_v48, %v595_v34  ;;  %v1312_v7 = vmul.f32 %v3072_v18, %v520_v40  ;;  %v1893_v53 = vmul.f32 %v3074_v19, %v327_v26  ;;  %v330_v2 = vld [vmem:[#allocation2 + $0x298] sm:$0x3] }
 0x1b2   :  { %v1799_v55 = vadd.f32 %v1649_v52, %v858_v24  ;;  %v2524_v56 = vrot.slane %v2283_v32, 2  ;;  %v2525_v57 = vrot.slane %v2284_v9, 2  ;;  %v1212_v27 = vadd.f32 %v1116_v47, %v1016_v38 }
 0x1b3   :  { %v859_v30 = vadd.f32 %v795_v8, %v727_v45  ;;  %v1993_v15 = vmul.f32 %v3076_v20, %v423_v63  ;;  %v2189_v61 = vmul.f32 %v3097_v35, %v520_v40  ;;  %v596_v62 = vmul.f32 %v3056_v10, %v4261_v37  ;;  %v426_v8 = vld [vmem:[#allocation2 + $0x2b0] sm:$0x3]  ;;  %v523_v45 = vld [vmem:[#allocation2 + $0x2c8] sm:$0x3] }
 0x1b4   :  { %v2526_v14 = vsel %vm2403_vm1, %v2524_v56, %v2525_v57  ;;  %v1408_v5 = vadd.f32 %v1312_v7, %v1212_v27  ;;  %v664_v39 = vmul.f32 %v3058_v11, %v4312_v33  ;;  %v796_v0 = vmul.f32 %v3070_v17, %v4365_v3 }
 0x1b5   :  { %v2676_v54 = vadd.f32 %v2526_v14, %v1799_v55  ;;  %v2089_v4 = vadd.f32 %v1993_v15, %v1893_v53  ;;  %v1017_v59 = vmul.f32 %v3060_v12, %v4261_v37  ;;  %v1018_v58 = vmul.f32 %v3060_v12, %v4268_v46 }
 0x1b6   :  { %v1650_v24 = vrot.slane %v1408_v5, 1  ;;  %v728_v51 = vadd.f32 %v664_v39, %v596_v62  ;;  %v1117_v29 = vmul.f32 %v3062_v13, %v4312_v33  ;;  %v1118_v6 = vmul.f32 %v3062_v13, %v4319_v42  ;;  %v4416_v5 = vld [vmem:[#allocation2 + $0x2d0] sm:$0xff] }
 0x1b7   :  { %v2746_v1 = vadd.f32 %v3994_v25, %v2676_v54  ;;  %v2285_v28 = vadd.f32 %v2189_v61, %v2089_v4  ;;  %v1313_v60 = vmul.f32 %v3072_v18, %v4365_v3  ;;  %v1314_v22 = vmul.f32 %v3072_v18, %v4372_v49 }
 0x1b8   :  { %v1651_v21 = vsel %vm1526_vm0, %v1648_v43, %v1650_v24  ;;  %v860_v44 = vadd.f32 %v796_v0, %v728_v51  ;;  %v1213_v31 = vadd.f32 %v1117_v29, %v1017_v59  ;;  %v1214_v23 = vadd.f32 %v1118_v6, %v1018_v58  ;;  %v4423_v6 = vld [vmem:[#allocation2 + $0x2d8] sm:$0xff] }
 0x1b9   :  { %2810 = vst [vmem:[#allocation8 + $0x180] sm:$0xff] %v2746_v1  ;;  %v1800_v41 = vadd.f32 %v1651_v21, %v859_v30  ;;  %v2527_v26 = vrot.slane %v2285_v28, 2  ;;  %v1894_v63 = vmul.f32 %v3074_v19, %v4261_v37  ;;  %v1895_v36 = vmul.f32 %v3074_v19, %v4268_v46 }
 0x1ba   :  { %v1409_v50 = vadd.f32 %v1313_v60, %v1213_v31  ;;  %v1410_v16 = vadd.f32 %v1314_v22, %v1214_v23  ;;  %v1994_v40 = vmul.f32 %v3076_v20, %v4312_v33  ;;  %v1995_v34 = vmul.f32 %v3076_v20, %v4319_v42 }
 0x1bb   :  { %v2528_v43 = vsel %vm2403_vm1, %v2525_v57, %v2527_v26  ;;  %v2190_v48 = vmul.f32 %v3097_v35, %v4365_v3  ;;  %v2191_v37 = vmul.f32 %v3097_v35, %v4372_v49  ;;  %v597_v32 = vmul.f32 %v3056_v10, %v4268_v46 }
 0x1bc   :  { %v2677_v9 = vadd.f32 %v2528_v43, %v1800_v41  ;;  %v1652_v38 = vrot.slane %v1409_v50, 1  ;;  %v1653_v47 = vrot.slane %v1410_v16, 1  ;;  %v2090_v52 = vadd.f32 %v1994_v40, %v1894_v63  ;;  %v4445_v40 = vld [vmem:[%s4745_s2] ss:$0 sm:$0xff]  ;;  %s2937_s2 = smov [#allocation8]  }
 0x1bd   :  { %v2091_v7 = vadd.f32 %v1995_v34, %v1895_v36  ;;  %v665_v53 = vmul.f32 %v3058_v11, %v4319_v42  ;;  %v797_v55 = vmul.f32 %v3070_v17, %v4372_v49  ;;  %v1019_v56 = vmul.f32 %v3060_v12, %v330_v2  ;;  %s2831_s19 = sshll.u32 %s2937_s2, 4  ;;  %s2832_s19 = int_to_ptr.vmem [resolvable:$true] %s2831_s19 }
 0x1be   :  { %v2747_v57 = vadd.f32 %v3994_v25, %v2677_v9  ;;  %v1654_v27 = vsel %vm1526_vm0, %v1652_v38, %v1653_v47  ;;  %v2286_v30 = vadd.f32 %v2190_v48, %v2090_v52  ;;  %v1119_v46 = vmul.f32 %v3062_v13, %v426_v8  ;;  %s2902_s20 = scalar_lea.vmem %s2832_s19, 8192  ;;  %p2907_p3 = scmp.lt.s32.totalorder %s2832_s19, %s2832_s19 }
 0x1bf   :  { %v1801_v15 = vadd.f32 %v1654_v27, %v860_v44  ;;  %v2287_v61 = vadd.f32 %v2191_v37, %v2091_v7  ;;  %v729_v62 = vadd.f32 %v665_v53, %v597_v32  ;;  %v1315_v14 = vmul.f32 %v3072_v18, %v523_v45  ;;  %p2903_p2 = scmp.ne.s32.totalorder %s2832_s19, %s2902_s20  ;;  %p2908_p4 = scmp.lt.s32.totalorder %s2902_s20, %s2902_s20 }
 0x1c0   :  { %2811 = vst [vmem:[#allocation8 + $0x188] sm:$0xff] %v2747_v57  ;;  %v2529_v39 = vrot.slane %v2286_v30, 2  ;;  %v1215_v0 = vadd.f32 %v1119_v46, %v1019_v56  ;;  %v1896_v54 = vmul.f32 %v3074_v19, %v330_v2  ;;  %v1996_v4 = vmul.f32 %v3076_v20, %v426_v8  ;;  %v333_v57 = vld [vmem:[#allocation2 + $0x2b0] sm:$0x3] }
 0x1c1   :  { %v2530_v25 = vrot.slane %v2287_v61, 2  ;;  %v861_v59 = vadd.f32 %v797_v55, %v729_v62  ;;  %v2192_v58 = vmul.f32 %v3097_v35, %v523_v45  ;;  %v598_v24 = vmul.f32 %v3056_v10, %v4312_v33  ;;  %p2909_p5 = por %p2908_p4, %p2907_p3 }
 0x1c2   :  { %v1411_v51 = vadd.f32 %v1315_v14, %v1215_v0  ;;  %v2092_v29 = vadd.f32 %v1996_v4, %v1896_v54  ;;  %v666_v1 = vmul.f32 %v3058_v11, %v4365_v3  ;;  %v798_v28 = vmul.f32 %v3070_v17, %v4416_v5 }
 0x1c3   :  { %v2531_v60 = vsel %vm2403_vm1, %v2529_v39, %v2530_v25  ;;  %v1020_v22 = vmul.f32 %v3060_v12, %v4312_v33  ;;  %v1021_v21 = vmul.f32 %v3060_v12, %v4319_v42  ;;  %v1120_v44 = vmul.f32 %v3062_v13, %v4365_v3  ;;  %p2910_p6 = pnand %p2909_p5, %p2903_p2 }
 0x1c4   :  { %v2678_v31 = vadd.f32 %v2531_v60, %v1801_v15  ;;  %v1655_v23 = vrot.slane %v1411_v51, 1  ;;  %v2288_v41 = vadd.f32 %v2192_v58, %v2092_v29  ;;  %v730_v26 = vadd.f32 %v666_v1, %v598_v24  ;;  %v526_v15 = vld [vmem:[#allocation2 + $0x2e0] sm:$0x3]  ;;  %v4474_v29 = vld [vmem:[#allocation2 + $0x2e8] sm:$0xff] }
 0x1c5   :  { %v1121_v63 = vmul.f32 %v3062_v13, %v4372_v49  ;;  %v1216_v36 = vadd.f32 %v1120_v44, %v1020_v22  ;;  %v1316_v50 = vmul.f32 %v3072_v18, %v4416_v5  ;;  %v1317_v16 = vmul.f32 %v3072_v18, %v4423_v6 }
 0x1c6   :  { %v2748_v34 = vadd.f32 %v4445_v40, %v2678_v31  ;;  %v1656_v2 = vsel %vm1526_vm0, %v1653_v47, %v1655_v23  ;;  %v2532_v43 = vrot.slane %v2288_v41, 2  ;;  %v862_v48 = vadd.f32 %v798_v28, %v730_v26 }
 0x1c7   :  { %v1802_v37 = vadd.f32 %v1656_v2, %v861_v59  ;;  %v1217_v8 = vadd.f32 %v1121_v63, %v1021_v21  ;;  %v1412_v32 = vadd.f32 %v1316_v50, %v1216_v36  ;;  %v1897_v9 = vmul.f32 %v3074_v19, %v4312_v33  ;;  %v429_v33 = vld [vmem:[#allocation2 + $0x2c8] sm:$0x3]  ;;  %v4481_v63 = vld [vmem:[#allocation2 + $0x2f0] sm:$0xff] }
 0x1c8   :  { %2812 = vst [vmem:[#allocation8 + $0x190] sm:$0xff] %v2748_v34  ;;  %v2533_v38 = vsel %vm2403_vm1, %v2530_v25, %v2532_v43  ;;  %v1898_v52 = vmul.f32 %v3074_v19, %v4319_v42  ;;  %v1997_v45 = vmul.f32 %v3076_v20, %v4365_v3  ;;  %v1998_v47 = vmul.f32 %v3076_v20, %v4372_v49 }
 0x1c9   :  { %v2679_v7 = vadd.f32 %v2533_v38, %v1802_v37  ;;  %v1413_v53 = vadd.f32 %v1317_v16, %v1217_v8  ;;  %v1657_v55 = vrot.slane %v1412_v32, 1  ;;  %v2193_v56 = vmul.f32 %v3097_v35, %v4416_v5 }
 0x1ca   :  { %v2093_v27 = vadd.f32 %v1997_v45, %v1897_v9  ;;  %v2094_v30 = vadd.f32 %v1998_v47, %v1898_v52  ;;  %v2194_v46 = vmul.f32 %v3097_v35, %v4423_v6  ;;  %v599_v61 = vmul.f32 %v3056_v10, %v4319_v42 }
 0x1cb   :  { %v2749_v62 = vadd.f32 %v4445_v40, %v2679_v7  ;;  %v1658_v14 = vrot.slane %v1413_v53, 1  ;;  %v667_v39 = vmul.f32 %v3058_v11, %v4372_v49  ;;  %v799_v0 = vmul.f32 %v3070_v17, %v4423_v6 }
 0x1cc   :  { %v2289_v54 = vadd.f32 %v2193_v56, %v2093_v27  ;;  %v2290_v4 = vadd.f32 %v2194_v46, %v2094_v30  ;;  %v1022_v25 = vmul.f32 %v3060_v12, %v333_v57  ;;  %v1122_v59 = vmul.f32 %v3062_v13, %v429_v33 }
 0x1cd   :  { %2813 = vst [vmem:[#allocation8 + $0x198] sm:$0xff] %v2749_v62  ;;  %v1659_v58 = vsel %vm1526_vm0, %v1657_v55, %v1658_v14  ;;  %v731_v24 = vadd.f32 %v667_v39, %v599_v61  ;;  %v1318_v42 = vmul.f32 %v3072_v18, %v526_v15  ;;  %v1899_v51 = vmul.f32 %v3074_v19, %v333_v57  ;;  %v336_v62 = vld [vmem:[#allocation2 + $0x2c8] sm:$0x3] }
 0x1ce   :  { %v1803_v1 = vadd.f32 %v1659_v58, %v862_v48  ;;  %v2534_v28 = vrot.slane %v2289_v54, 2  ;;  %v2535_v60 = vrot.slane %v2290_v4, 2  ;;  %v1218_v22 = vadd.f32 %v1122_v59, %v1022_v25 }
 0x1cf   :  { %v863_v21 = vadd.f32 %v799_v0, %v731_v24  ;;  %v1999_v44 = vmul.f32 %v3076_v20, %v429_v33  ;;  %v2195_v31 = vmul.f32 %v3097_v35, %v526_v15  ;;  %v600_v23 = vmul.f32 %v3056_v10, %v4365_v3  ;;  %v432_v0 = vld [vmem:[#allocation2 + $0x2e0] sm:$0x3]  ;;  %v529_v24 = vld [vmem:[#allocation2 + $0x2f8] sm:$0x3] }
 0x1d0   :  { %v2536_v41 = vsel %vm2403_vm1, %v2534_v28, %v2535_v60  ;;  %v1414_v26 = vadd.f32 %v1318_v42, %v1218_v22  ;;  %v668_v36 = vmul.f32 %v3058_v11, %v4416_v5  ;;  %v800_v50 = vmul.f32 %v3070_v17, %v4474_v29 }
 0x1d1   :  { %v2680_v16 = vadd.f32 %v2536_v41, %v1803_v1  ;;  %v2095_v34 = vadd.f32 %v1999_v44, %v1899_v51  ;;  %v1023_v2 = vmul.f32 %v3060_v12, %v4365_v3  ;;  %v1024_v43 = vmul.f32 %v3060_v12, %v4372_v49 }
 0x1d2   :  { %v1660_v48 = vrot.slane %v1414_v26, 1  ;;  %v732_v37 = vadd.f32 %v668_v36, %v600_v23  ;;  %v1123_v8 = vmul.f32 %v3062_v13, %v4416_v5  ;;  %v1124_v32 = vmul.f32 %v3062_v13, %v4423_v6  ;;  %v4525_v26 = vld [vmem:[#allocation2 + $0x300] sm:$0xff] }
 0x1d3   :  { %v2750_v9 = vadd.f32 %v4445_v40, %v2680_v16  ;;  %v2291_v38 = vadd.f32 %v2195_v31, %v2095_v34  ;;  %v1319_v52 = vmul.f32 %v3072_v18, %v4474_v29  ;;  %v1320_v45 = vmul.f32 %v3072_v18, %v4481_v63 }
 0x1d4   :  { %v1661_v47 = vsel %vm1526_vm0, %v1658_v14, %v1660_v48  ;;  %v864_v7 = vadd.f32 %v800_v50, %v732_v37  ;;  %v1219_v53 = vadd.f32 %v1123_v8, %v1023_v2  ;;  %v1220_v55 = vadd.f32 %v1124_v32, %v1024_v43 }
 0x1d5   :  { %2814 = vst [vmem:[#allocation8 + $0x1a0] sm:$0xff] %v2750_v9  ;;  %v1804_v56 = vadd.f32 %v1661_v47, %v863_v21  ;;  %v2537_v57 = vrot.slane %v2291_v38, 2  ;;  %v1900_v33 = vmul.f32 %v3074_v19, %v4365_v3  ;;  %v1901_v27 = vmul.f32 %v3074_v19, %v4372_v49  ;;  %v4532_v9 = vld [vmem:[#allocation2 + $0x308] sm:$0xff] }
 0x1d6   :  { %v1415_v30 = vadd.f32 %v1319_v52, %v1219_v53  ;;  %v1416_v46 = vadd.f32 %v1320_v45, %v1220_v55  ;;  %v2000_v15 = vmul.f32 %v3076_v20, %v4416_v5  ;;  %v2001_v61 = vmul.f32 %v3076_v20, %v4423_v6 }
 0x1d7   :  { %v2538_v14 = vsel %vm2403_vm1, %v2535_v60, %v2537_v57  ;;  %v2196_v39 = vmul.f32 %v3097_v35, %v4474_v29  ;;  %v2197_v3 = vmul.f32 %v3097_v35, %v4481_v63  ;;  %v601_v54 = vmul.f32 %v3056_v10, %v4372_v49 }
 0x1d8   :  { %v2681_v4 = vadd.f32 %v2538_v14, %v1804_v56  ;;  %v1662_v25 = vrot.slane %v1415_v30, 1  ;;  %v1663_v59 = vrot.slane %v1416_v46, 1  ;;  %v2096_v58 = vadd.f32 %v2000_v15, %v1900_v33 }
 0x1d9   :  { %v2097_v42 = vadd.f32 %v2001_v61, %v1901_v27  ;;  %v669_v51 = vmul.f32 %v3058_v11, %v4423_v6  ;;  %v801_v1 = vmul.f32 %v3070_v17, %v4481_v63  ;;  %v1025_v28 = vmul.f32 %v3060_v12, %v336_v62 }
 0x1da   :  { %v2751_v60 = vadd.f32 %v4445_v40, %v2681_v4  ;;  %v1664_v22 = vsel %vm1526_vm0, %v1662_v25, %v1663_v59  ;;  %v2292_v21 = vadd.f32 %v2196_v39, %v2096_v58  ;;  %v1125_v49 = vmul.f32 %v3062_v13, %v432_v0 }
 0x1db   :  { %v1805_v44 = vadd.f32 %v1664_v22, %v864_v7  ;;  %v2293_v31 = vadd.f32 %v2197_v3, %v2097_v42  ;;  %v733_v23 = vadd.f32 %v669_v51, %v601_v54  ;;  %v1321_v41 = vmul.f32 %v3072_v18, %v529_v24 }
 0x1dc   :  { %2815 = vst [vmem:[#allocation8 + $0x1a8] sm:$0xff] %v2751_v60  ;;  %v2539_v36 = vrot.slane %v2292_v21, 2  ;;  %v1221_v50 = vadd.f32 %v1125_v49, %v1025_v28  ;;  %v1902_v16 = vmul.f32 %v3074_v19, %v336_v62  ;;  %v2002_v34 = vmul.f32 %v3076_v20, %v432_v0  ;;  %v339_v60 = vld [vmem:[#allocation2 + $0x2e0] sm:$0x3] }
 0x1dd   :  { %v2540_v2 = vrot.slane %v2293_v31, 2  ;;  %v865_v43 = vadd.f32 %v801_v1, %v733_v23  ;;  %v2198_v48 = vmul.f32 %v3097_v35, %v529_v24  ;;  %v602_v37 = vmul.f32 %v3056_v10, %v4416_v5 }
 0x1de   :  { %v1417_v8 = vadd.f32 %v1321_v41, %v1221_v50  ;;  %v2098_v32 = vadd.f32 %v2002_v34, %v1902_v16  ;;  %v670_v38 = vmul.f32 %v3058_v11, %v4474_v29  ;;  %v802_v52 = vmul.f32 %v3070_v17, %v4525_v26 }
 0x1df   :  { %v2541_v45 = vsel %vm2403_vm1, %v2539_v36, %v2540_v2  ;;  %v1026_v47 = vmul.f32 %v3060_v12, %v4416_v5  ;;  %v1027_v7 = vmul.f32 %v3060_v12, %v4423_v6  ;;  %v1126_v53 = vmul.f32 %v3062_v13, %v4474_v29 }
 0x1e0   :  { %v2682_v55 = vadd.f32 %v2541_v45, %v1805_v44  ;;  %v1665_v56 = vrot.slane %v1417_v8, 1  ;;  %v2294_v57 = vadd.f32 %v2198_v48, %v2098_v32  ;;  %v734_v33 = vadd.f32 %v670_v38, %v602_v37  ;;  %v532_v44 = vld [vmem:[#allocation2 + $0x310] sm:$0x3]  ;;  %v4578_v32 = vld [vmem:[#allocation2 + $0x318] sm:$0xff] }
 0x1e1   :  { %v1127_v27 = vmul.f32 %v3062_v13, %v4481_v63  ;;  %v1222_v30 = vadd.f32 %v1126_v53, %v1026_v47  ;;  %v1322_v46 = vmul.f32 %v3072_v18, %v4525_v26  ;;  %v1323_v15 = vmul.f32 %v3072_v18, %v4532_v9 }
 0x1e2   :  { %v2752_v61 = vadd.f32 %v4445_v40, %v2682_v55  ;;  %v1666_v62 = vsel %vm1526_vm0, %v1663_v59, %v1665_v56  ;;  %v2542_v14 = vrot.slane %v2294_v57, 2  ;;  %v866_v39 = vadd.f32 %v802_v52, %v734_v33 }
 0x1e3   :  { %v1806_v3 = vadd.f32 %v1666_v62, %v865_v43  ;;  %v1223_v0 = vadd.f32 %v1127_v27, %v1027_v7  ;;  %v1418_v54 = vadd.f32 %v1322_v46, %v1222_v30  ;;  %v1903_v4 = vmul.f32 %v3074_v19, %v4416_v5  ;;  %v435_v5 = vld [vmem:[#allocation2 + $0x2f8] sm:$0x3]  ;;  %v4585_v27 = vld [vmem:[#allocation2 + $0x320] sm:$0xff] }
 0x1e4   :  { %2816 = vst [vmem:[#allocation8 + $0x1b0] sm:$0xff] %v2752_v61  ;;  %v2543_v25 = vsel %vm2403_vm1, %v2540_v2, %v2542_v14  ;;  %v1904_v58 = vmul.f32 %v3074_v19, %v4423_v6  ;;  %v2003_v24 = vmul.f32 %v3076_v20, %v4474_v29  ;;  %v2004_v59 = vmul.f32 %v3076_v20, %v4481_v63 }
 0x1e5   :  { %v2683_v42 = vadd.f32 %v2543_v25, %v1806_v3  ;;  %v1419_v51 = vadd.f32 %v1323_v15, %v1223_v0  ;;  %v1667_v1 = vrot.slane %v1418_v54, 1  ;;  %v2199_v28 = vmul.f32 %v3097_v35, %v4525_v26 }
 0x1e6   :  { %v2099_v22 = vadd.f32 %v2003_v24, %v1903_v4  ;;  %v2100_v21 = vadd.f32 %v2004_v59, %v1904_v58  ;;  %v2200_v49 = vmul.f32 %v3097_v35, %v4532_v9  ;;  %v603_v31 = vmul.f32 %v3056_v10, %v4423_v6 }
 0x1e7   :  { %v2753_v23 = vadd.f32 %v4445_v40, %v2683_v42  ;;  %v1668_v41 = vrot.slane %v1419_v51, 1  ;;  %v671_v36 = vmul.f32 %v3058_v11, %v4481_v63  ;;  %v803_v50 = vmul.f32 %v3070_v17, %v4532_v9 }
 0x1e8   :  { %v2295_v16 = vadd.f32 %v2199_v28, %v2099_v22  ;;  %v2296_v34 = vadd.f32 %v2200_v49, %v2100_v21  ;;  %v1028_v2 = vmul.f32 %v3060_v12, %v339_v60  ;;  %v1128_v43 = vmul.f32 %v3062_v13, %v435_v5 }
 0x1e9   :  { %2817 = vst [vmem:[#allocation8 + $0x1b8] sm:$0xff] %v2753_v23  ;;  %v1669_v48 = vsel %vm1526_vm0, %v1667_v1, %v1668_v41  ;;  %v735_v37 = vadd.f32 %v671_v36, %v603_v31  ;;  %v1324_v6 = vmul.f32 %v3072_v18, %v532_v44  ;;  %v1905_v8 = vmul.f32 %v3074_v19, %v339_v60  ;;  %v342_v23 = vld [vmem:[#allocation2 + $0x2f8] sm:$0x3] }
 0x1ea   :  { %v1807_v38 = vadd.f32 %v1669_v48, %v866_v39  ;;  %v2544_v52 = vrot.slane %v2295_v16, 2  ;;  %v2545_v45 = vrot.slane %v2296_v34, 2  ;;  %v1224_v47 = vadd.f32 %v1128_v43, %v1028_v2 }
 0x1eb   :  { %v867_v7 = vadd.f32 %v803_v50, %v735_v37  ;;  %v2005_v53 = vmul.f32 %v3076_v20, %v435_v5  ;;  %v2201_v55 = vmul.f32 %v3097_v35, %v532_v44  ;;  %v604_v56 = vmul.f32 %v3056_v10, %v4474_v29  ;;  %v438_v50 = vld [vmem:[#allocation2 + $0x310] sm:$0x3]  ;;  %v535_v37 = vld [vmem:[#allocation2 + $0x328] sm:$0x3] }
 0x1ec   :  { %v2546_v57 = vsel %vm2403_vm1, %v2544_v52, %v2545_v45  ;;  %v1420_v33 = vadd.f32 %v1324_v6, %v1224_v47  ;;  %v672_v30 = vmul.f32 %v3058_v11, %v4525_v26  ;;  %v804_v46 = vmul.f32 %v3070_v17, %v4578_v32 }
 0x1ed   :  { %v2684_v15 = vadd.f32 %v2546_v57, %v1807_v38  ;;  %v2101_v61 = vadd.f32 %v2005_v53, %v1905_v8  ;;  %v1029_v62 = vmul.f32 %v3060_v12, %v4474_v29  ;;  %v1030_v14 = vmul.f32 %v3060_v12, %v4481_v63 }
 0x1ee   :  { %v1670_v39 = vrot.slane %v1420_v33, 1  ;;  %v736_v3 = vadd.f32 %v672_v30, %v604_v56  ;;  %v1129_v0 = vmul.f32 %v3062_v13, %v4525_v26  ;;  %v1130_v54 = vmul.f32 %v3062_v13, %v4532_v9  ;;  %v4629_v33 = vld [vmem:[#allocation2 + $0x330] sm:$0xff] }
 0x1ef   :  { %v2754_v4 = vadd.f32 %v4445_v40, %v2684_v15  ;;  %v2297_v25 = vadd.f32 %v2201_v55, %v2101_v61  ;;  %v1325_v58 = vmul.f32 %v3072_v18, %v4578_v32  ;;  %v1326_v24 = vmul.f32 %v3072_v18, %v4585_v27 }
 0x1f0   :  { %v1671_v59 = vsel %vm1526_vm0, %v1668_v41, %v1670_v39  ;;  %v868_v42 = vadd.f32 %v804_v46, %v736_v3  ;;  %v1225_v51 = vadd.f32 %v1129_v0, %v1029_v62  ;;  %v1226_v1 = vadd.f32 %v1130_v54, %v1030_v14 }
 0x1f1   :  { %2818 = vst [vmem:[#allocation8 + $0x1c0] sm:$0xff] %v2754_v4  ;;  %v1808_v28 = vadd.f32 %v1671_v59, %v867_v7  ;;  %v2547_v60 = vrot.slane %v2297_v25, 2  ;;  %v1906_v5 = vmul.f32 %v3074_v19, %v4474_v29  ;;  %v1907_v22 = vmul.f32 %v3074_v19, %v4481_v63  ;;  %v4636_v4 = vld [vmem:[#allocation2 + $0x338] sm:$0xff] }
 0x1f2   :  { %v1421_v21 = vadd.f32 %v1325_v58, %v1225_v51  ;;  %v1422_v49 = vadd.f32 %v1326_v24, %v1226_v1  ;;  %v2006_v44 = vmul.f32 %v3076_v20, %v4525_v26  ;;  %v2007_v31 = vmul.f32 %v3076_v20, %v4532_v9 }
 0x1f3   :  { %v2548_v41 = vsel %vm2403_vm1, %v2545_v45, %v2547_v60  ;;  %v2202_v36 = vmul.f32 %v3097_v35, %v4578_v32  ;;  %v2203_v29 = vmul.f32 %v3097_v35, %v4585_v27  ;;  %v605_v16 = vmul.f32 %v3056_v10, %v4481_v63 }
 0x1f4   :  { %v2685_v34 = vadd.f32 %v2548_v41, %v1808_v28  ;;  %v1672_v2 = vrot.slane %v1421_v21, 1  ;;  %v1673_v43 = vrot.slane %v1422_v49, 1  ;;  %v2102_v48 = vadd.f32 %v2006_v44, %v1906_v5 }
 0x1f5   :  { %v2103_v6 = vadd.f32 %v2007_v31, %v1907_v22  ;;  %v673_v8 = vmul.f32 %v3058_v11, %v4532_v9  ;;  %v805_v38 = vmul.f32 %v3070_v17, %v4585_v27  ;;  %v1031_v52 = vmul.f32 %v3060_v12, %v342_v23 }
 0x1f6   :  { %v2755_v45 = vadd.f32 %v4445_v40, %v2685_v34  ;;  %v1674_v47 = vsel %vm1526_vm0, %v1672_v2, %v1673_v43  ;;  %v2298_v7 = vadd.f32 %v2202_v36, %v2102_v48  ;;  %v1131_v63 = vmul.f32 %v3062_v13, %v438_v50 }
 0x1f7   :  { %v1809_v53 = vadd.f32 %v1674_v47, %v868_v42  ;;  %v2299_v55 = vadd.f32 %v2203_v29, %v2103_v6  ;;  %v737_v56 = vadd.f32 %v673_v8, %v605_v16  ;;  %v1327_v57 = vmul.f32 %v3072_v18, %v535_v37 }
 0x1f8   :  { %2819 = vst [vmem:[#allocation8 + $0x1c8] sm:$0xff] %v2755_v45  ;;  %v2549_v30 = vrot.slane %v2298_v7, 2  ;;  %v1227_v46 = vadd.f32 %v1131_v63, %v1031_v52  ;;  %v1908_v15 = vmul.f32 %v3074_v19, %v342_v23  ;;  %v2008_v61 = vmul.f32 %v3076_v20, %v438_v50  ;;  %v345_v45 = vld [vmem:[#allocation2 + $0x310] sm:$0x3] }
 0x1f9   :  { %v2550_v62 = vrot.slane %v2299_v55, 2  ;;  %v869_v14 = vadd.f32 %v805_v38, %v737_v56  ;;  %v2204_v39 = vmul.f32 %v3097_v35, %v535_v37  ;;  %v606_v3 = vmul.f32 %v3056_v10, %v4525_v26 }
 0x1fa   :  { %v1423_v0 = vadd.f32 %v1327_v57, %v1227_v46  ;;  %v2104_v54 = vadd.f32 %v2008_v61, %v1908_v15  ;;  %v674_v25 = vmul.f32 %v3058_v11, %v4578_v32  ;;  %v806_v58 = vmul.f32 %v3070_v17, %v4629_v33 }
 0x1fb   :  { %v2551_v24 = vsel %vm2403_vm1, %v2549_v30, %v2550_v62  ;;  %v1032_v59 = vmul.f32 %v3060_v12, %v4525_v26  ;;  %v1033_v42 = vmul.f32 %v3060_v12, %v4532_v9  ;;  %v1132_v51 = vmul.f32 %v3062_v13, %v4578_v32 }
 0x1fc   :  { %v2686_v1 = vadd.f32 %v2551_v24, %v1809_v53  ;;  %v1675_v28 = vrot.slane %v1423_v0, 1  ;;  %v2300_v60 = vadd.f32 %v2204_v39, %v2104_v54  ;;  %v738_v5 = vadd.f32 %v674_v25, %v606_v3  ;;  %v538_v53 = vld [vmem:[#allocation2 + $0x340] sm:$0x3] }
 0x1fd   :  { %v1133_v22 = vmul.f32 %v3062_v13, %v4585_v27  ;;  %v1228_v21 = vadd.f32 %v1132_v51, %v1032_v59  ;;  %v1328_v49 = vmul.f32 %v3072_v18, %v4629_v33  ;;  %v1329_v44 = vmul.f32 %v3072_v18, %v4636_v4 }
 0x1fe   :  { %v2756_v31 = vadd.f32 %v4445_v40, %v2686_v1  ;;  %v1676_v23 = vsel %vm1526_vm0, %v1673_v43, %v1675_v28  ;;  %v2552_v41 = vrot.slane %v2300_v60, 2  ;;  %v870_v36 = vadd.f32 %v806_v58, %v738_v5 }
 0x1ff   :  { %v1810_v29 = vadd.f32 %v1676_v23, %v869_v14  ;;  %v1229_v50 = vadd.f32 %v1133_v22, %v1033_v42  ;;  %v1424_v16 = vadd.f32 %v1328_v49, %v1228_v21  ;;  %v1909_v34 = vmul.f32 %v3074_v19, %v4525_v26  ;;  %v441_v26 = vld [vmem:[#allocation2 + $0x328] sm:$0x3]  ;;  %v2857_v23 = vld [vmem:[#allocation2] sm:$0xff] }
 0x200   :  { %2820 = vst [vmem:[#allocation8 + $0x1d0] sm:$0xff] %v2756_v31  ;;  %v2553_v2 = vsel %vm2403_vm1, %v2550_v62, %v2552_v41  ;;  %v1910_v48 = vmul.f32 %v3074_v19, %v4532_v9  ;;  %v2009_v37 = vmul.f32 %v3076_v20, %v4578_v32  ;;  %v2010_v43 = vmul.f32 %v3076_v20, %v4585_v27 }
 0x201   :  { %v2687_v6 = vadd.f32 %v2553_v2, %v1810_v29  ;;  %v1425_v8 = vadd.f32 %v1329_v44, %v1229_v50  ;;  %v1677_v38 = vrot.slane %v1424_v16, 1  ;;  %v2205_v52 = vmul.f32 %v3097_v35, %v4629_v33 }
 0x202   :  { %v2105_v47 = vadd.f32 %v2009_v37, %v1909_v34  ;;  %v2106_v7 = vadd.f32 %v2010_v43, %v1910_v48  ;;  %v2206_v63 = vmul.f32 %v3097_v35, %v4636_v4  ;;  %v607_v55 = vmul.f32 %v3056_v10, %v4532_v9 }
 0x203   :  { %v2757_v56 = vadd.f32 %v4445_v40, %v2687_v6  ;;  %v1678_v57 = vrot.slane %v1425_v8, 1  ;;  %v675_v30 = vmul.f32 %v3058_v11, %v4585_v27  ;;  %v807_v46 = vmul.f32 %v3070_v17, %v4636_v4 }
 0x204   :  { %v2301_v15 = vadd.f32 %v2205_v52, %v2105_v47  ;;  %v2302_v61 = vadd.f32 %v2206_v63, %v2106_v7  ;;  %v1034_v62 = vmul.f32 %v3060_v12, %v345_v45  ;;  %v1134_v14 = vmul.f32 %v3062_v13, %v441_v26  ;;  %v348_v7 = vld [vmem:[#allocation2 + $0x328] sm:$0x3]  ;;  %v444_v63 = vld [vmem:[#allocation2 + $0x340] sm:$0x3] }
 0x205   :  { %2821 = vst [vmem:[#allocation8 + $0x1d8] sm:$0xff] %v2757_v56  ;;  %v1679_v39 = vsel %vm1526_vm0, %v1677_v38, %v1678_v57  ;;  %v739_v3 = vadd.f32 %v675_v30, %v607_v55  ;;  %v1330_v9 = vmul.f32 %v3072_v18, %v538_v53  ;;  %v1911_v0 = vmul.f32 %v3074_v19, %v345_v45  ;;  %v541_v56 = vld [vmem:[#allocation2 + $0x358] sm:$0x3] }
 0x206   :  { %v1811_v54 = vadd.f32 %v1679_v39, %v870_v36  ;;  %v2554_v25 = vrot.slane %v2301_v15, 2  ;;  %v2555_v58 = vrot.slane %v2302_v61, 2  ;;  %v1230_v24 = vadd.f32 %v1134_v14, %v1034_v62 }
 0x207   :  { %v871_v59 = vadd.f32 %v807_v46, %v739_v3  ;;  %v2011_v42 = vmul.f32 %v3076_v20, %v441_v26  ;;  %v2207_v51 = vmul.f32 %v3097_v35, %v538_v53  ;;  %v608_v60 = vmul.f32 %v3056_v10, %v4578_v32 }
 0x208   :  { %v2556_v1 = vsel %vm2403_vm1, %v2554_v25, %v2555_v58  ;;  %v1426_v28 = vadd.f32 %v1330_v9, %v1230_v24  ;;  %v676_v5 = vmul.f32 %v3058_v11, %v4629_v33  ;;  %v1035_v49 = vmul.f32 %v3060_v12, %v4578_v32 }
 0x209   :  { %v2688_v22 = vadd.f32 %v2556_v1, %v1811_v54  ;;  %v2107_v21 = vadd.f32 %v2011_v42, %v1911_v0  ;;  %v1036_v44 = vmul.f32 %v3060_v12, %v4585_v27  ;;  %v808_v41 = vmul.f32 %v2857_v23, %v3070_v17 }
 0x20a   :  { %v1680_v31 = vrot.slane %v1426_v28, 1  ;;  %v1135_v36 = vmul.f32 %v3062_v13, %v4629_v33  ;;  %v1136_v29 = vmul.f32 %v3062_v13, %v4636_v4  ;;  %v1331_v34 = vmul.f32 %v2857_v23, %v3072_v18 }
 0x20b   :  { %v2758_v50 = vadd.f32 %v4445_v40, %v2688_v22  ;;  %v2303_v16 = vadd.f32 %v2207_v51, %v2107_v21  ;;  %v1912_v2 = vmul.f32 %v3074_v19, %v4578_v32  ;;  %v740_v37 = vadd.f32 %v676_v5, %v608_v60 }
 0x20c   :  { %v1681_v48 = vsel %vm1526_vm0, %v1678_v57, %v1680_v31  ;;  %v1231_v43 = vadd.f32 %v1135_v36, %v1035_v49  ;;  %v1232_v6 = vadd.f32 %v1136_v29, %v1036_v44  ;;  %v1913_v38 = vmul.f32 %v3074_v19, %v4585_v27 }
 0x20d   :  { %2822 = vst [vmem:[#allocation8 + $0x1e0] sm:$0xff] %v2758_v50  ;;  %v1812_v17 = vadd.f32 %v1681_v48, %v871_v59  ;;  %v2557_v8 = vrot.slane %v2303_v16, 2  ;;  %v2012_v52 = vmul.f32 %v3076_v20, %v4629_v33  ;;  %v2013_v47 = vmul.f32 %v3076_v20, %v4636_v4 }
 0x20e   :  { %v1427_v45 = vadd.f32 %v1331_v34, %v1231_v43  ;;  %v1428_v26 = vadd.f32 %v1331_v34, %v1232_v6  ;;  %v2208_v32 = vmul.f32 %v2857_v23, %v3097_v35  ;;  %v609_v57 = vmul.f32 %v3056_v10, %v4585_v27 }
 0x20f   :  { %v2558_v53 = vsel %vm2403_vm1, %v2555_v58, %v2557_v8  ;;  %v2108_v55 = vadd.f32 %v2012_v52, %v1912_v2  ;;  %v677_v30 = vmul.f32 %v3058_v11, %v4636_v4  ;;  %v2109_v61 = vadd.f32 %v2013_v47, %v1913_v38 }
 0x210   :  { %v2689_v33 = vadd.f32 %v2558_v53, %v1812_v17  ;;  %v1682_v46 = vrot.slane %v1427_v45, 1  ;;  %v1683_v15 = vrot.slane %v1428_v26, 1  ;;  %v872_v62 = vadd.f32 %v808_v41, %v740_v37 }
 0x211   :  { %v2304_v14 = vadd.f32 %v2208_v32, %v2108_v55  ;;  %v1037_v39 = vmul.f32 %v3060_v12, %v348_v7  ;;  %v1137_v3 = vmul.f32 %v3062_v13, %v444_v63  ;;  %v2305_v54 = vadd.f32 %v2208_v32, %v2109_v61 }
 0x212   :  { %v2759_v9 = vadd.f32 %v4445_v40, %v2689_v33  ;;  %v1684_v0 = vsel %vm1526_vm0, %v1682_v46, %v1683_v15  ;;  %v1333_v10 = vmul.f32 %v3072_v18, %v541_v56  ;;  %v741_v11 = vadd.f32 %v677_v30, %v609_v57 }
 0x213   :  { %v1813_v27 = vadd.f32 %v1684_v0, %v872_v62  ;;  %v2559_v25 = vrot.slane %v2304_v14, 2  ;;  %v1233_v4 = vadd.f32 %v1137_v3, %v1037_v39  ;;  %v2560_v58 = vrot.slane %v2305_v54, 2 }
 0x214   :  { %2823 = vst [vmem:[#allocation8 + $0x1e8] sm:$0xff] %v2759_v9  ;;  %v1914_v24 = vmul.f32 %v3074_v19, %v348_v7  ;;  %v2014_v59 = vmul.f32 %v3076_v20, %v444_v63  ;;  %v2210_v12 = vmul.f32 %v3097_v35, %v541_v56  ;;  %v873_v60 = vadd.f32 %v808_v41, %v741_v11 }
 0x215   :  { %v1429_v13 = vadd.f32 %v1333_v10, %v1233_v4  ;;  %v2561_v42 = vsel %vm2403_vm1, %v2559_v25, %v2560_v58 }
 0x216   :  { %v2110_v51 = vadd.f32 %v2014_v59, %v1914_v24  ;;  %v2690_v1 = vadd.f32 %v2561_v42, %v1813_v27 }
 0x217   :  { %v1685_v28 = vrot.slane %v1429_v13, 1 }
 0x218   :  { %v2306_v18 = vadd.f32 %v2210_v12, %v2110_v51  ;;  %v2760_v5 = vadd.f32 %v4445_v40, %v2690_v1 }
 0x219   :  { %v1686_v22 = vsel %vm1526_vm0, %v1683_v15, %v1685_v28 }
 0x21a   :  { %v1814_v21 = vadd.f32 %v1686_v22, %v873_v60  ;;  %v2562_v49 = vrot.slane %v2306_v18, 2  ;;  %2824 = vst [vmem:[#allocation8 + $0x1f0] sm:$0xff] %v2760_v5 }
 0x21c   :  { %v2563_v19 = vsel %vm2403_vm1, %v2560_v58, %v2562_v49 }
 0x21d   :  { %v2691_v20 = vadd.f32 %v2563_v19, %v1814_v21 }
 0x21f   :  { %v2761_v35 = vadd.f32 %v4445_v40, %v2691_v20 }
 0x221   :  { %2825 = vst [vmem:[#allocation8 + $0x1f8] sm:$0xff] %v2761_v35 }
 0x222   :  { %2913 = shalt.err (!%p2910_p6)
}
 0x223   :  { %s2914_s25 = scalar_lea.hbm %s4746_s3, 8192 }
 0x224   :  { %p2915_p7 = scmp.ne.s32.totalorder %s4746_s3, %s2914_s25  ;;  %p2918_p8 = scmp.lt.u32.totalorder %s2914_s25, %s4746_s3 }
 0x226   :  { %p2920_p9 = pnand %p2918_p8, %p2915_p7 }
 0x228   :  { %2923 = shalt.err (!%p2920_p9)
}
 0x229   :  { %2837 = dma.vmem_to_hbm [thread:$0]  %s2832_s19, 8192, %s4746_s3, [#allocation5], %s2931_s22, %s2931_s22, %s2932_s23  }
 0x22a   :  { %2928 = dma.done.wait [#allocation5], 8192  }
 0x22b   :  { %2929 = vsyncadd [#allocation5], 4294959104 }
 0x22c   :  { %2841 = vsyncpa [#allocation4], 1 }
 0x22d   :  { %2842 = vsyncpa [#allocation7], 1 }
 0x22e   :  { %2843 = vsyncpa [#allocation5], 1 }

</bundles_post_ra>
